<compile_context>
chip_gen: v7x
topology: tpu7x:2x2x1
jax: 0.10.0
libtpu: 0.0.40
codegen_flags: <defaults>
</compile_context>

<pallas_src>
import jax
import jax.numpy as jnp
from jax.experimental import pallas as pl
from jax.experimental.pallas import tpu as pltpu

# ----------------------------- model hyper-params (small) -------------------
B, L = 2, 8
ESM_FEATS = 32          # esm.embed_dim
ESM_LAYERS = 3          # esm.num_layers  -> NL1 = 4 representation layers
NL1 = ESM_LAYERS + 1
C_S = 32                # trunk.sequence_state_dim
C_Z = 16                # trunk.pairwise_state_dim (real model: 128, lane-dense)
C_S_SM = 32             # trunk.structure_module.c_s
LDDT_HID = 32           # cfg.lddt_head_hid_dim
N_TOKENS = 23           # restype_num + 3
DISTO_BINS = 64
LDDT_BINS = 50
N_ATOMS = 37
N_STRUCT_BLOCKS = 2     # leading dim of structure['states']
ESM_VOCAB = 33
LN_EPS = 1e-5
LANE = 128
N_LDDT = N_ATOMS * LDDT_BINS          # 1850
N_LDDT_PAD = ((N_LDDT + LANE - 1) // LANE) * LANE   # 1920 = 15*128
# Row-tile cap: lddt output block is tile*1920*4 B double-buffered; 512 rows
# (~7.5 MiB) is safe inside the default scoped VMEM on v5e/v6e (32/128 MiB) and
# v7x (32/64 MiB).  Raise with care on v7x.
ROW_TILE_CAP = 512


# ----------------------------- tiling helpers --------------------------------
def _pad_to(n, m):
    return ((n + m - 1) // m) * m


def _choose_tile(rows, mult=8, cap=ROW_TILE_CAP):
    """Row tile that is a multiple of `mult`, divides `rows`, and (when it fits
    under the cap) yields exactly 2 grid programs so the 'parallel' grid axis
    can shard across v7x's two TensorCores.  On single-TC v5e/v6e the extra
    pipeline step costs ~0.35 us, which is negligible."""
    assert cap % mult == 0 and rows % mult == 0
    half = rows // 2
    if half >= mult and half % mult == 0 and half <= cap:
        tile = half
    else:
        tile = min(cap, rows)
        tile -= tile % mult
        while tile > mult and rows % tile != 0:
            tile -= mult
        tile = max(tile, mult)
    assert tile % mult == 0 and tile % 8 == 0        # (8,128) sublane constraint
    return tile


def _prep_rows(rows, mult=8):
    r_pad = _pad_to(rows, mult)
    tile = _choose_tile(r_pad, mult)
    r_pad = _pad_to(r_pad, tile)
    return r_pad, tile


def _pad_rows(x, r_pad):
    r = x.shape[0]
    if r_pad == r:
        return x
    # Padded rows flow through LayerNorm/rsqrt with eps>0 (cannot NaN) and are
    # never read back -- benign, but keep this invariant if editing the kernels.
    return jnp.pad(x, ((0, r_pad - r), (0, 0)))


# ----------------------------- Pallas kernels -------------------------------
def _combine_lm_kernel(x_ref, emb_ref, wc_ref, g_ref, be_ref,
                       w1_ref, b1_ref, w2_ref, b2_ref, wh_ref, bh_ref, o_ref):
    """(softmax layer-combine as K=128 bf16 matmul) -> LayerNorm(f32) ->
    Linear+ReLU -> Linear -> +embed -> fused [identity | lm_head | 0] head so
    the single output is 128 lanes (cols 0:C_S = s_s, C_S:C_S+N_TOKENS = lm)."""
    x = x_ref[...].astype(jnp.bfloat16)
    s = jnp.dot(x, wc_ref[...], preferred_element_type=jnp.float32)
    mu = jnp.mean(s, axis=-1, keepdims=True)
    var = jnp.mean((s - mu) ** 2, axis=-1, keepdims=True)
    s = (s - mu) * jax.lax.rsqrt(var + LN_EPS) * g_ref[...] + be_ref[...]
    h = jnp.dot(s.astype(jnp.bfloat16), w1_ref[...],
                preferred_element_type=jnp.float32) + b1_ref[...]
    h = jnp.maximum(h, 0.0)
    h = jnp.dot(h.astype(jnp.bfloat16), w2_ref[...],
                preferred_element_type=jnp.float32) + b2_ref[...]
    s_s = h + emb_ref[...]
    o_ref[...] = (jnp.dot(s_s.astype(jnp.bfloat16), wh_ref[...],
                          preferred_element_type=jnp.float32) + bh_ref[...])


def combine_lm_pallas(x, emb, prep):
    n = x.shape[0]
    r_pad, tile = _prep_rows(n, mult=8)
    x = _pad_rows(x, r_pad)
    emb = _pad_rows(emb, r_pad)
    kc, f, c, nout = NL1 * ESM_FEATS, ESM_FEATS, C_S, LANE
    out = pl.pallas_call(
        _combine_lm_kernel,
        out_shape=jax.ShapeDtypeStruct((r_pad, nout), jnp.float32),
        grid=(r_pad // tile,),
        in_specs=[
            pl.BlockSpec((tile, kc), lambda i: (i, 0)),
            pl.BlockSpec((tile, c), lambda i: (i, 0)),
            pl.BlockSpec((kc, f), lambda i: (0, 0)),
            pl.BlockSpec((1, f), lambda i: (0, 0)),
            pl.BlockSpec((1, f), lambda i: (0, 0)),
            pl.BlockSpec((f, c), lambda i: (0, 0)),
            pl.BlockSpec((1, c), lambda i: (0, 0)),
            pl.BlockSpec((c, c), lambda i: (0, 0)),
            pl.BlockSpec((1, c), lambda i: (0, 0)),
            pl.BlockSpec((c, nout), lambda i: (0, 0)),
            pl.BlockSpec((1, nout), lambda i: (0, 0)),
        ],
        out_specs=pl.BlockSpec((tile, nout), lambda i: (i, 0)),
        compiler_params=pltpu.CompilerParams(dimension_semantics=("parallel",)),
    )(x, emb, prep["w_comb"], prep["mlp_ln_g"], prep["mlp_ln_b"],
      prep["mlp_w1"], prep["mlp_b1"], prep["mlp_w2"], prep["mlp_b2"],
      prep["w_head"], prep["b_head"])
    return out[:n]


def _pair_kernel(z_ref, zs_ref, w_ref, b_ref, cen_ref, tmb_ref, o_ref):
    """Fused pair heads + post-processing over one row-tile of pair positions.
    Inputs: z = s_z (ptm head), zs = symmetrized s_z (distogram head).
    Output (tile, 256):
      [0:64]   distogram logits (already symmetrized, since the head is affine)
      [64:128] ptm logits
      [128:192] softmax(ptm logits)        (aligned_confidence_probs)
      [192]    predicted_aligned_error
      [193]    per-pair predicted-TM term
      [194:256] zero pad (keeps the store 256 = 2*128 lanes, unmasked)."""
    x = jnp.concatenate([z_ref[...], zs_ref[...]], axis=-1)      # bf16 (tile, 32)
    logits = jnp.dot(x, w_ref[...], preferred_element_type=jnp.float32) + b_ref[...]
    ptm = logits[:, DISTO_BINS:]
    m = jnp.max(ptm, axis=-1, keepdims=True)
    e = jnp.exp(ptm - m)
    probs = e / jnp.sum(e, axis=-1, keepdims=True)
    pae = jnp.sum(probs * cen_ref[...], axis=-1, keepdims=True)
    tm = jnp.sum(probs * tmb_ref[...], axis=-1, keepdims=True)
    pad = jnp.zeros((logits.shape[0], 2 * LANE - 3 * DISTO_BINS - 2), jnp.float32)
    o_ref[...] = jnp.concatenate([logits, probs, pae, tm, pad], axis=-1)


def pair_heads_pallas(z, z_sym, prep):
    r = z.shape[0]
    r_pad, tile = _prep_rows(r, mult=16)     # bf16 activations -> 16-row tiles
    z = _pad_rows(z.astype(jnp.bfloat16), r_pad)
    z_sym = _pad_rows(z_sym.astype(jnp.bfloat16), r_pad)
    nout = 2 * LANE
    out = pl.pallas_call(
        _pair_kernel,
        out_shape=jax.ShapeDtypeStruct((r_pad, nout), jnp.float32),
        grid=(r_pad // tile,),
        in_specs=[
            pl.BlockSpec((tile, C_Z), lambda i: (i, 0)),
            pl.BlockSpec((tile, C_Z), lambda i: (i, 0)),
            pl.BlockSpec((2 * C_Z, 2 * DISTO_BINS), lambda i: (0, 0)),
            pl.BlockSpec((1, 2 * DISTO_BINS), lambda i: (0, 0)),
            pl.BlockSpec((1, DISTO_BINS), lambda i: (0, 0)),
            pl.BlockSpec((1, DISTO_BINS), lambda i: (0, 0)),
        ],
        out_specs=pl.BlockSpec((tile, nout), lambda i: (i, 0)),
        compiler_params=pltpu.CompilerParams(dimension_semantics=("parallel",)),
    )(z, z_sym, prep["w_pair"], prep["b_pair"], prep["pae_centers"], prep["tm_per_bin"])
    return out[:r]


def _lddt_kernel(x_ref, g_ref, be_ref, w_ref, b_ref, post_ref, o_ref, p_ref):
    """LayerNorm -> single folded lddt matmul (1920 = 15*128 lanes), plus fused
    plddt: per-atom 50-bin softmax + bin-center expectation computed via one
    constant group-reduction matmul (avoids a lane-relayout reshape).  Using the
    row-global max as the softmax shift is exact (any constant cancels)."""
    x = x_ref[...]
    mu = jnp.mean(x, axis=-1, keepdims=True)
    var = jnp.mean((x - mu) ** 2, axis=-1, keepdims=True)
    xn = (x - mu) * jax.lax.rsqrt(var + LN_EPS) * g_ref[...] + be_ref[...]
    logits = jnp.dot(xn.astype(jnp.bfloat16), w_ref[...],
                     preferred_element_type=jnp.float32) + b_ref[...]
    o_ref[...] = logits
    m = jnp.max(logits, axis=-1, keepdims=True)
    e = jnp.exp(logits - m)                                   # padded lanes unused
    post = jnp.dot(e, post_ref[...], preferred_element_type=jnp.float32)
    numer = post[:, :N_ATOMS]
    denom = post[:, N_ATOMS:2 * N_ATOMS]
    plddt = 100.0 * numer / denom
    p_ref[...] = jnp.concatenate(
        [plddt, jnp.zeros((plddt.shape[0], LANE - N_ATOMS), jnp.float32)], axis=-1)


def lddt_pallas(x, prep):
    r = x.shape[0]
    r_pad, tile = _prep_rows(r, mult=8)
    x = _pad_rows(x, r_pad)
    nout = N_LDDT_PAD
    logits, plddt = pl.pallas_call(
        _lddt_kernel,
        out_shape=(jax.ShapeDtypeStruct((r_pad, nout), jnp.float32),
                   jax.ShapeDtypeStruct((r_pad, LANE), jnp.float32)),
        grid=(r_pad // tile,),
        in_specs=[
            pl.BlockSpec((tile, C_S_SM), lambda i: (i, 0)),
            pl.BlockSpec((1, C_S_SM), lambda i: (0, 0)),
            pl.BlockSpec((1, C_S_SM), lambda i: (0, 0)),
            pl.BlockSpec((C_S_SM, nout), lambda i: (0, 0)),
            pl.BlockSpec((1, nout), lambda i: (0, 0)),
            pl.BlockSpec((nout, LANE), lambda i: (0, 0)),
        ],
        out_specs=(pl.BlockSpec((tile, nout), lambda i: (i, 0)),
                   pl.BlockSpec((tile, LANE), lambda i: (i, 0))),
        compiler_params=pltpu.CompilerParams(dimension_semantics=("parallel",)),
    )(x, prep["lddt_ln_g"], prep["lddt_ln_b"], prep["lddt_w"], prep["lddt_b"],
      prep["lddt_post"])
    return logits[:r], plddt[:r]


# ----------------------------- parameters & one-time prep -------------------
def init_params(key):
    ks = jax.random.split(key, 16)
    sc = 0.05
    p = {}
    # af2 -> esm token remap (deterministic stand-in for the ESM alphabet).
    p["af2_to_esm"] = jnp.array([1] + list(range(4, 4 + 21)), dtype=jnp.int32)  # (22,)
    # TODO(synk): pretrained ESM-2 LM has no Pallas equivalent; stub it with a
    # deterministic per-token, per-representation-layer embedding table.
    p["esm_stub_table"] = sc * jax.random.normal(ks[0], (ESM_VOCAB, NL1, ESM_FEATS), jnp.float32)
    p["esm_s_combine"] = jnp.zeros((NL1,), jnp.float32)
    # esm_s_mlp: LayerNorm(esm_feats), Linear(esm_feats, c_s), ReLU, Linear(c_s, c_s)
    p["mlp_ln_g"] = jnp.ones((ESM_FEATS,), jnp.float32)
    p["mlp_ln_b"] = jnp.zeros((ESM_FEATS,), jnp.float32)
    p["mlp_w1"] = sc * jax.random.normal(ks[1], (ESM_FEATS, C_S), jnp.float32)
    p["mlp_b1"] = jnp.zeros((C_S,), jnp.float32)
    p["mlp_w2"] = sc * jax.random.normal(ks[2], (C_S, C_S), jnp.float32)
    p["mlp_b2"] = jnp.zeros((C_S,), jnp.float32)
    # token embedding (padding_idx = 0 -> zero row)
    emb = sc * jax.random.normal(ks[3], (N_TOKENS, C_S), jnp.float32)
    p["embedding"] = emb.at[0].set(0.0)
    # heads
    p["disto_w"] = sc * jax.random.normal(ks[4], (C_Z, DISTO_BINS), jnp.float32)
    p["disto_b"] = jnp.zeros((DISTO_BINS,), jnp.float32)
    p["ptm_w"] = sc * jax.random.normal(ks[5], (C_Z, DISTO_BINS), jnp.float32)
    p["ptm_b"] = jnp.zeros((DISTO_BINS,), jnp.float32)
    p["lm_w"] = sc * jax.random.normal(ks[6], (C_S, N_TOKENS), jnp.float32)
    p["lm_b"] = jnp.zeros((N_TOKENS,), jnp.float32)
    # lddt head: LayerNorm(c_s_sm), Linear(c_s_sm, hid), Linear(hid, hid), Linear(hid, 37*50)
    p["lddt_ln_g"] = jnp.ones((C_S_SM,), jnp.float32)
    p["lddt_ln_b"] = jnp.zeros((C_S_SM,), jnp.float32)
    p["lddt_w1"] = sc * jax.random.normal(ks[7], (C_S_SM, LDDT_HID), jnp.float32)
    p["lddt_b1"] = jnp.zeros((LDDT_HID,), jnp.float32)
    p["lddt_w2"] = sc * jax.random.normal(ks[8], (LDDT_HID, LDDT_HID), jnp.float32)
    p["lddt_b2"] = jnp.zeros((LDDT_HID,), jnp.float32)
    p["lddt_w3"] = sc * jax.random.normal(ks[9], (LDDT_HID, N_ATOMS * LDDT_BINS), jnp.float32)
    p["lddt_b3"] = jnp.zeros((N_ATOMS * LDDT_BINS,), jnp.float32)
    return p


def prepare_params(params, seq_len):
    """One-time prep of all derived / fused / padded weights (hoisted out of
    the forward so the jitted forward issues only the three pallas_calls plus
    light glue)."""
    bf = jnp.bfloat16
    prep = {"af2_to_esm": params["af2_to_esm"],
            "esm_stub_table": params["esm_stub_table"],
            "embedding": params["embedding"]}

    # --- kernel #1: layer-combine + esm_s_mlp + embed add + lm head ---
    cw = jax.nn.softmax(params["esm_s_combine"], axis=0)
    prep["w_comb"] = jnp.kron(cw.reshape(NL1, 1),
                              jnp.eye(ESM_FEATS, dtype=jnp.float32)).astype(bf)  # (NL1*F, F)
    prep["mlp_ln_g"] = params["mlp_ln_g"].reshape(1, -1)
    prep["mlp_ln_b"] = params["mlp_ln_b"].reshape(1, -1)
    prep["mlp_w1"] = params["mlp_w1"].astype(bf)
    prep["mlp_b1"] = params["mlp_b1"].reshape(1, -1)
    prep["mlp_w2"] = params["mlp_w2"].astype(bf)
    prep["mlp_b2"] = params["mlp_b2"].reshape(1, -1)
    pad_head = LANE - C_S - N_TOKENS
    prep["w_head"] = jnp.concatenate(
        [jnp.eye(C_S, dtype=jnp.float32), params["lm_w"],
         jnp.zeros((C_S, pad_head), jnp.float32)], axis=1).astype(bf)            # (C_S, 128)
    prep["b_head"] = jnp.concatenate(
        [jnp.zeros((C_S,), jnp.float32), params["lm_b"],
         jnp.zeros((pad_head,), jnp.float32)]).reshape(1, -1)                    # (1, 128)

    # --- kernel #2: fused pair heads.  x = [z | z_sym]; cols 0:64 distogram
    # (from z_sym), cols 64:128 ptm (from z). ---
    w_pair = jnp.zeros((2 * C_Z, 2 * DISTO_BINS), jnp.float32)
    w_pair = w_pair.at[:C_Z, DISTO_BINS:].set(params["ptm_w"])
    w_pair = w_pair.at[C_Z:, :DISTO_BINS].set(params["disto_w"])
    prep["w_pair"] = w_pair.astype(bf)
    prep["b_pair"] = jnp.concatenate([params["disto_b"], params["ptm_b"]]).reshape(1, -1)
    boundaries = jnp.linspace(0.0, 31.0, DISTO_BINS - 1)
    step = boundaries[1] - boundaries[0]
    centers = jnp.concatenate([boundaries + step / 2, boundaries[-1:] + 1.5 * step])  # (64,)
    prep["pae_centers"] = centers.reshape(1, -1)
    prep["max_pae"] = centers[-1]
    clipped_n = max(float(seq_len), 19.0)
    d0 = 1.24 * (clipped_n - 15.0) ** (1.0 / 3.0) - 1.8
    prep["tm_per_bin"] = (1.0 / (1.0 + (centers ** 2) / (d0 ** 2))).reshape(1, -1)

    # --- kernel #3: lddt head.  Exact fold of the three ACTIVATION-FREE Linears
    # (W = W1@W2@W3, b = (b1@W2 + b2)@W3 + b3); not bit-identical to the
    # sequential f32 reference due to reassociation. ---
    lddt_w = params["lddt_w1"] @ params["lddt_w2"] @ params["lddt_w3"]            # (C_S_SM, 1850)
    lddt_b = (params["lddt_b1"] @ params["lddt_w2"]
              + params["lddt_b2"]) @ params["lddt_w3"] + params["lddt_b3"]        # (1850,)
    prep["lddt_ln_g"] = params["lddt_ln_g"].reshape(1, -1)
    prep["lddt_ln_b"] = params["lddt_ln_b"].reshape(1, -1)
    prep["lddt_w"] = jnp.pad(lddt_w, ((0, 0), (0, N_LDDT_PAD - N_LDDT))).astype(bf)
    prep["lddt_b"] = jnp.pad(lddt_b, (0, N_LDDT_PAD - N_LDDT)).reshape(1, -1)
    # plddt group-reduction matrix: col a < 37 -> bin-center-weighted indicator,
    # col 37+a -> plain indicator of atom a's 50 bins; padded rows/cols zero.
    centers50 = (jnp.arange(LDDT_BINS, dtype=jnp.float32) + 0.5) / LDDT_BINS
    g = jnp.repeat(jnp.eye(N_ATOMS, dtype=jnp.float32), LDDT_BINS, axis=0)        # (1850, 37)
    c = g * jnp.tile(centers50, N_ATOMS)[:, None]
    post = jnp.zeros((N_LDDT_PAD, LANE), jnp.float32)
    post = post.at[:N_LDDT, :N_ATOMS].set(c)
    post = post.at[:N_LDDT, N_ATOMS:2 * N_ATOMS].set(g)
    prep["lddt_post"] = post
    return prep


# ----------------------------- forward (jitted) ------------------------------
def esmfold_forward(prep, aa, mask, residx):
    b, l = aa.shape
    n = b * l

    # _af2_idx_to_esm_idx
    aa_shift = jnp.where(mask == 1, aa + 1, 0)
    esmaa = prep["af2_to_esm"][aa_shift]                          # (B, L)

    # TODO(synk): _compute_language_model_representations (ESM-2 transformer,
    # bos/eos handling, attention maps) is stubbed by a deterministic lookup.
    esm_s = prep["esm_stub_table"][esmaa]                         # (B, L, NL1, F)
    hidden_repre = esm_s

    # ---- fused kernel #1: layer-combine + esm_s_mlp + embed add + lm head ----
    emb = prep["embedding"][aa]                                   # (B, L, C_S)
    fused = combine_lm_pallas(esm_s.reshape(n, NL1 * ESM_FEATS),
                              emb.reshape(n, C_S), prep)          # (n, 128)
    s_s_0 = fused[:, :C_S].reshape(b, l, C_S)
    lm_logits = fused[:, C_S:C_S + N_TOKENS].reshape(b, l, N_TOKENS)
    s_z_0 = jnp.zeros((b, l, l, C_Z), jnp.float32)                # use_esm_attn_map=False

    # TODO(synk): FoldingTrunk (evoformer blocks + structure module) has no
    # Pallas equivalent here; deterministic stub producing the tensors the
    # downstream heads consume.
    s_s = s_s_0
    s_z = s_z_0 + s_s[:, :, None, :C_Z] + s_s[:, None, :, :C_Z]
    states = jnp.stack(
        [s_s * (0.5 + 0.25 * i) for i in range(N_STRUCT_BLOCKS)], axis=0)  # (nb, B, L, C_S_SM)

    structure = {"s_s": s_s, "s_z": s_z, "states": states}

    # ---- fused kernel #2: distogram + pTM heads + pTM/PAE post-processing ----
    # The heads are affine, so symmetrizing the 16-wide s_z before the head is
    # exactly (disto + disto^T)/2 and 4x cheaper than transposing the logits.
    s_z_sym = 0.5 * (s_z + jnp.swapaxes(s_z, 1, 2))
    pair = pair_heads_pallas(s_z.reshape(n * l, C_Z),
                             s_z_sym.reshape(n * l, C_Z), prep).reshape(b, l, l, 2 * LANE)
    structure["distogram_logits"] = pair[..., :DISTO_BINS]
    ptm_logits = pair[..., DISTO_BINS:2 * DISTO_BINS]
    probs = pair[..., 2 * DISTO_BINS:3 * DISTO_BINS]
    pae = pair[..., 3 * DISTO_BINS]
    tm_term = pair[..., 3 * DISTO_BINS + 1]

    structure["lm_logits"] = lm_logits
    structure["aatype"] = aa
    # TODO(synk): make_atom14_masks / atom37_atom_exists need openfold
    # residue-constant tables; skipped in this synthetic kernel.
    structure["residue_index"] = residx

    # ---- fused kernel #3: lddt head (LN + folded matmul) + fused plddt ----
    lddt_flat, plddt_flat = lddt_pallas(states.reshape(N_STRUCT_BLOCKS * n, C_S_SM), prep)
    lddt_head = lddt_flat[:, :N_LDDT].reshape(N_STRUCT_BLOCKS, b, l, N_ATOMS, LDDT_BINS)
    structure["lddt_head"] = lddt_head
    structure["plddt"] = plddt_flat[:, :N_ATOMS].reshape(
        N_STRUCT_BLOCKS, b, l, N_ATOMS)[-1]                       # already *100 in-kernel

    # ---- pTM / PAE finalization (O(L^2) scalars only) ----
    structure["ptm_logits"] = ptm_logits
    # TODO(synk): the original slices each pTM map to the masked seqlen; the
    # synthetic mask is all-ones so the full map is equivalent here.
    rw = jnp.ones((l,), jnp.float32)
    normed = rw / (1e-8 + rw.sum())
    per_alignment = jnp.sum(tm_term * normed, axis=-1)            # (B, L)
    structure["ptm"] = jnp.max(per_alignment * rw / jnp.maximum(rw, 1e-8), axis=-1)
    structure["aligned_confidence_probs"] = probs
    structure["predicted_aligned_error"] = pae
    structure["max_predicted_aligned_error"] = prep["max_pae"]
    return structure, hidden_repre


esmfold_forward_jit = jax.jit(esmfold_forward)


if __name__ == "__main__":
    key = jax.random.PRNGKey(0)
    pkey, akey = jax.random.split(key)
    params = init_params(pkey)
    prep = prepare_params(params, seq_len=L)          # one-time derived-weight prep

    aa = jax.random.randint(akey, (B, L), 0, 20, dtype=jnp.int32)
    mask = jnp.ones((B, L), jnp.int32)
    residx = jnp.broadcast_to(jnp.arange(L, dtype=jnp.int32), (B, L))

    structure, hidden = esmfold_forward_jit(prep, aa, mask, residx)
    jax.block_until_ready((structure, hidden))

    # light sanity checks on shapes / values
    assert structure["distogram_logits"].shape == (B, L, L, DISTO_BINS)
    assert structure["lm_logits"].shape == (B, L, N_TOKENS)
    assert structure["lddt_head"].shape == (N_STRUCT_BLOCKS, B, L, N_ATOMS, LDDT_BINS)
    assert structure["plddt"].shape == (B, L, N_ATOMS)
    assert structure["ptm"].shape == (B,)
    assert structure["predicted_aligned_error"].shape == (B, L, L)
    assert structure["aligned_confidence_probs"].shape == (B, L, L, DISTO_BINS)
    assert hidden.shape == (B, L, NL1, ESM_FEATS)
    # distogram symmetrized (affine head on symmetrized s_z)
    d = structure["distogram_logits"]
    assert bool(jnp.allclose(d, jnp.swapaxes(d, 1, 2), atol=1e-4))
    probs_sum = structure["aligned_confidence_probs"].sum(-1)
    assert bool(jnp.allclose(probs_sum, 1.0, atol=1e-3))
    assert bool(jnp.all(jnp.isfinite(structure["plddt"])))
    assert bool(jnp.all(jnp.isfinite(structure["predicted_aligned_error"])))
    assert bool(jnp.all(jnp.isfinite(structure["ptm"])))
    print("KERNEL_OK")
</pallas_src>

<mosaic_0001>
module attributes {stable_mosaic.version = 11 : i64} {
  func.func @_combine_lm_kernel(%arg0: i32, %arg1: memref<8x128xf32, #tpu.memory_space<vmem>>, %arg2: memref<8x32xf32, #tpu.memory_space<vmem>>, %arg3: memref<128x32xbf16, #tpu.memory_space<vmem>>, %arg4: memref<1x32xf32, #tpu.memory_space<vmem>>, %arg5: memref<1x32xf32, #tpu.memory_space<vmem>>, %arg6: memref<32x32xbf16, #tpu.memory_space<vmem>>, %arg7: memref<1x32xf32, #tpu.memory_space<vmem>>, %arg8: memref<32x32xbf16, #tpu.memory_space<vmem>>, %arg9: memref<1x32xf32, #tpu.memory_space<vmem>>, %arg10: memref<32x128xbf16, #tpu.memory_space<vmem>>, %arg11: memref<1x128xf32, #tpu.memory_space<vmem>>, %arg12: memref<8x128xf32, #tpu.memory_space<vmem>>) attributes {dimension_semantics = [#tpu.dimension_semantics<parallel>], iteration_bounds = array<i64: 2>, scalar_prefetch = 0 : i64, scratch_operands = 0 : i64, tpu.core_type = #tpu.core_type<tc>, window_params = [{transform_indices = @transform_0, window_bounds = array<i64: 8, 128>}, {transform_indices = @transform_1, window_bounds = array<i64: 8, 32>}, {pipeline_mode = #tpu.pipeline_mode<synchronous>, transform_indices = @transform_2, window_bounds = array<i64: 128, 32>}, {pipeline_mode = #tpu.pipeline_mode<synchronous>, transform_indices = @transform_3, window_bounds = array<i64: 1, 32>}, {pipeline_mode = #tpu.pipeline_mode<synchronous>, transform_indices = @transform_4, window_bounds = array<i64: 1, 32>}, {pipeline_mode = #tpu.pipeline_mode<synchronous>, transform_indices = @transform_5, window_bounds = array<i64: 32, 32>}, {pipeline_mode = #tpu.pipeline_mode<synchronous>, transform_indices = @transform_6, window_bounds = array<i64: 1, 32>}, {pipeline_mode = #tpu.pipeline_mode<synchronous>, transform_indices = @transform_7, window_bounds = array<i64: 32, 32>}, {pipeline_mode = #tpu.pipeline_mode<synchronous>, transform_indices = @transform_8, window_bounds = array<i64: 1, 32>}, {pipeline_mode = #tpu.pipeline_mode<synchronous>, transform_indices = @transform_9, window_bounds = array<i64: 32, 128>}, {pipeline_mode = #tpu.pipeline_mode<synchronous>, transform_indices = @transform_10, window_bounds = array<i64: 1, 128>}, {transform_indices = @transform_11, window_bounds = array<i64: 8, 128>}]} {
    %c0 = arith.constant 0 : index
    %c0_0 = arith.constant 0 : index
    %0 = vector.load %arg1[%c0, %c0_0] : memref<8x128xf32, #tpu.memory_space<vmem>>, vector<8x128xf32>
    %1 = arith.truncf %0 : vector<8x128xf32> to vector<8x128xbf16>
    %c0_1 = arith.constant 0 : index
    %c0_2 = arith.constant 0 : index
    %2 = vector.load %arg3[%c0_1, %c0_2] : memref<128x32xbf16, #tpu.memory_space<vmem>>, vector<128x32xbf16>
    %cst = arith.constant dense<0.000000e+00> : vector<8x32xf32>
    %3 = tpu.matmul %1, %2, %cst {dimension_numbers = #tpu.dot_dimension_numbers<[1], [0], [0], [1], [0, 0, 1, 1], [], []>} : vector<8x128xbf16>, vector<128x32xbf16>, vector<8x32xf32> -> vector<8x32xf32>
    %cst_3 = arith.constant dense<0.000000e+00> : vector<8xf32>
    %4 = vector.multi_reduction <add>, %3, %cst_3 [1] : vector<8x32xf32> to vector<8xf32>
    %5 = vector.shape_cast %4 : vector<8xf32> to vector<8x1xf32>
    %cst_4 = arith.constant 3.200000e+01 : f32
    %6 = vector.broadcast %cst_4 : f32 to vector<8x1xf32>
    %7 = arith.divf %5, %6 : vector<8x1xf32>
    %8 = vector.broadcast %7 : vector<8x1xf32> to vector<8x32xf32>
    %9 = arith.subf %3, %8 : vector<8x32xf32>
    %10 = arith.mulf %9, %9 : vector<8x32xf32>
    %cst_5 = arith.constant dense<0.000000e+00> : vector<8xf32>
    %11 = vector.multi_reduction <add>, %10, %cst_5 [1] : vector<8x32xf32> to vector<8xf32>
    %12 = vector.shape_cast %11 : vector<8xf32> to vector<8x1xf32>
    %cst_6 = arith.constant 3.200000e+01 : f32
    %13 = vector.broadcast %cst_6 : f32 to vector<8x1xf32>
    %14 = arith.divf %12, %13 : vector<8x1xf32>
    %15 = vector.broadcast %7 : vector<8x1xf32> to vector<8x32xf32>
    %16 = arith.subf %3, %15 : vector<8x32xf32>
    %cst_7 = arith.constant 9.99999974E-6 : f32
    %17 = vector.broadcast %cst_7 : f32 to vector<8x1xf32>
    %18 = arith.addf %14, %17 : vector<8x1xf32>
    %19 = math.rsqrt %18 : vector<8x1xf32>
    %20 = vector.broadcast %19 : vector<8x1xf32> to vector<8x32xf32>
    %21 = arith.mulf %16, %20 : vector<8x32xf32>
    %c0_8 = arith.constant 0 : index
    %c0_9 = arith.constant 0 : index
    %22 = vector.load %arg4[%c0_8, %c0_9] : memref<1x32xf32, #tpu.memory_space<vmem>>, vector<1x32xf32>
    %23 = vector.broadcast %22 : vector<1x32xf32> to vector<8x32xf32>
    %24 = arith.mulf %21, %23 : vector<8x32xf32>
    %c0_10 = arith.constant 0 : index
    %c0_11 = arith.constant 0 : index
    %25 = vector.load %arg5[%c0_10, %c0_11] : memref<1x32xf32, #tpu.memory_space<vmem>>, vector<1x32xf32>
    %26 = vector.broadcast %25 : vector<1x32xf32> to vector<8x32xf32>
    %27 = arith.addf %24, %26 : vector<8x32xf32>
    %28 = arith.truncf %27 : vector<8x32xf32> to vector<8x32xbf16>
    %c0_12 = arith.constant 0 : index
    %c0_13 = arith.constant 0 : index
    %29 = vector.load %arg6[%c0_12, %c0_13] : memref<32x32xbf16, #tpu.memory_space<vmem>>, vector<32x32xbf16>
    %cst_14 = arith.constant dense<0.000000e+00> : vector<8x32xf32>
    %30 = tpu.matmul %28, %29, %cst_14 {dimension_numbers = #tpu.dot_dimension_numbers<[1], [0], [0], [1], [0, 0, 1, 1], [], []>} : vector<8x32xbf16>, vector<32x32xbf16>, vector<8x32xf32> -> vector<8x32xf32>
    %c0_15 = arith.constant 0 : index
    %c0_16 = arith.constant 0 : index
    %31 = vector.load %arg7[%c0_15, %c0_16] : memref<1x32xf32, #tpu.memory_space<vmem>>, vector<1x32xf32>
    %32 = vector.broadcast %31 : vector<1x32xf32> to vector<8x32xf32>
    %33 = arith.addf %30, %32 : vector<8x32xf32>
    %cst_17 = arith.constant 0.000000e+00 : f32
    %34 = vector.broadcast %cst_17 : f32 to vector<8x32xf32>
    %35 = arith.maximumf %33, %34 : vector<8x32xf32>
    %36 = arith.truncf %35 : vector<8x32xf32> to vector<8x32xbf16>
    %c0_18 = arith.constant 0 : index
    %c0_19 = arith.constant 0 : index
    %37 = vector.load %arg8[%c0_18, %c0_19] : memref<32x32xbf16, #tpu.memory_space<vmem>>, vector<32x32xbf16>
    %cst_20 = arith.constant dense<0.000000e+00> : vector<8x32xf32>
    %38 = tpu.matmul %36, %37, %cst_20 {dimension_numbers = #tpu.dot_dimension_numbers<[1], [0], [0], [1], [0, 0, 1, 1], [], []>} : vector<8x32xbf16>, vector<32x32xbf16>, vector<8x32xf32> -> vector<8x32xf32>
    %c0_21 = arith.constant 0 : index
    %c0_22 = arith.constant 0 : index
    %39 = vector.load %arg9[%c0_21, %c0_22] : memref<1x32xf32, #tpu.memory_space<vmem>>, vector<1x32xf32>
    %40 = vector.broadcast %39 : vector<1x32xf32> to vector<8x32xf32>
    %41 = arith.addf %38, %40 : vector<8x32xf32>
    %c0_23 = arith.constant 0 : index
    %c0_24 = arith.constant 0 : index
    %42 = vector.load %arg2[%c0_23, %c0_24] : memref<8x32xf32, #tpu.memory_space<vmem>>, vector<8x32xf32>
    %43 = arith.addf %41, %42 : vector<8x32xf32>
    %44 = arith.truncf %43 : vector<8x32xf32> to vector<8x32xbf16>
    %c0_25 = arith.constant 0 : index
    %c0_26 = arith.constant 0 : index
    %45 = vector.load %arg10[%c0_25, %c0_26] : memref<32x128xbf16, #tpu.memory_space<vmem>>, vector<32x128xbf16>
    %cst_27 = arith.constant dense<0.000000e+00> : vector<8x128xf32>
    %46 = tpu.matmul %44, %45, %cst_27 {dimension_numbers = #tpu.dot_dimension_numbers<[1], [0], [0], [1], [0, 0, 1, 1], [], []>} : vector<8x32xbf16>, vector<32x128xbf16>, vector<8x128xf32> -> vector<8x128xf32>
    %c0_28 = arith.constant 0 : index
    %c0_29 = arith.constant 0 : index
    %47 = vector.load %arg11[%c0_28, %c0_29] : memref<1x128xf32, #tpu.memory_space<vmem>>, vector<1x128xf32>
    %48 = vector.broadcast %47 : vector<1x128xf32> to vector<8x128xf32>
    %49 = arith.addf %46, %48 : vector<8x128xf32>
    %c0_30 = arith.constant 0 : index
    %c0_31 = arith.constant 0 : index
    %50 = vector.load %arg12[%c0_30, %c0_31] : memref<8x128xf32, #tpu.memory_space<vmem>>, vector<8x128xf32>
    tpu.vector_store %arg12[%c0_30, %c0_31], %49 {strides = array<i32>} : memref<8x128xf32, #tpu.memory_space<vmem>>, vector<8x128xf32>,
    return
  }
  func.func @transform_0(%arg0: i32) -> (i32, i32) {
    %c0_i32 = arith.constant 0 : i32
    %c0_i32_0 = arith.constant 0 : i32
    return %arg0, %c0_i32 : i32, i32
  }
  func.func @transform_1(%arg0: i32) -> (i32, i32) {
    %c0_i32 = arith.constant 0 : i32
    %c0_i32_0 = arith.constant 0 : i32
    return %arg0, %c0_i32 : i32, i32
  }
  func.func @transform_2(%arg0: i32) -> (i32, i32) {
    %c0_i32 = arith.constant 0 : i32
    %c0_i32_0 = arith.constant 0 : i32
    %c0_i32_1 = arith.constant 0 : i32
    return %c0_i32, %c0_i32_0 : i32, i32
  }
  func.func @transform_3(%arg0: i32) -> (i32, i32) {
    %c0_i32 = arith.constant 0 : i32
    %c0_i32_0 = arith.constant 0 : i32
    %c0_i32_1 = arith.constant 0 : i32
    return %c0_i32, %c0_i32_0 : i32, i32
  }
  func.func @transform_4(%arg0: i32) -> (i32, i32) {
    %c0_i32 = arith.constant 0 : i32
    %c0_i32_0 = arith.constant 0 : i32
    %c0_i32_1 = arith.constant 0 : i32
    return %c0_i32, %c0_i32_0 : i32, i32
  }
  func.func @transform_5(%arg0: i32) -> (i32, i32) {
    %c0_i32 = arith.constant 0 : i32
    %c0_i32_0 = arith.constant 0 : i32
    %c0_i32_1 = arith.constant 0 : i32
    return %c0_i32, %c0_i32_0 : i32, i32
  }
  func.func @transform_6(%arg0: i32) -> (i32, i32) {
    %c0_i32 = arith.constant 0 : i32
    %c0_i32_0 = arith.constant 0 : i32
    %c0_i32_1 = arith.constant 0 : i32
    return %c0_i32, %c0_i32_0 : i32, i32
  }
  func.func @transform_7(%arg0: i32) -> (i32, i32) {
    %c0_i32 = arith.constant 0 : i32
    %c0_i32_0 = arith.constant 0 : i32
    %c0_i32_1 = arith.constant 0 : i32
    return %c0_i32, %c0_i32_0 : i32, i32
  }
  func.func @transform_8(%arg0: i32) -> (i32, i32) {
    %c0_i32 = arith.constant 0 : i32
    %c0_i32_0 = arith.constant 0 : i32
    %c0_i32_1 = arith.constant 0 : i32
    return %c0_i32, %c0_i32_0 : i32, i32
  }
  func.func @transform_9(%arg0: i32) -> (i32, i32) {
    %c0_i32 = arith.constant 0 : i32
    %c0_i32_0 = arith.constant 0 : i32
    %c0_i32_1 = arith.constant 0 : i32
    return %c0_i32, %c0_i32_0 : i32, i32
  }
  func.func @transform_10(%arg0: i32) -> (i32, i32) {
    %c0_i32 = arith.constant 0 : i32
    %c0_i32_0 = arith.constant 0 : i32
    %c0_i32_1 = arith.constant 0 : i32
    return %c0_i32, %c0_i32_0 : i32, i32
  }
  func.func @transform_11(%arg0: i32) -> (i32, i32) {
    %c0_i32 = arith.constant 0 : i32
    %c0_i32_0 = arith.constant 0 : i32
    return %arg0, %c0_i32 : i32, i32
  }
}

module attributes {stable_mosaic.version = 11 : i64} {
  func.func @_pair_kernel(%arg0: i32, %arg1: memref<64x16xbf16, #tpu.memory_space<vmem>>, %arg2: memref<64x16xbf16, #tpu.memory_space<vmem>>, %arg3: memref<32x128xbf16, #tpu.memory_space<vmem>>, %arg4: memref<1x128xf32, #tpu.memory_space<vmem>>, %arg5: memref<1x64xf32, #tpu.memory_space<vmem>>, %arg6: memref<1x64xf32, #tpu.memory_space<vmem>>, %arg7: memref<64x256xf32, #tpu.memory_space<vmem>>) attributes {dimension_semantics = [#tpu.dimension_semantics<parallel>], iteration_bounds = array<i64: 2>, scalar_prefetch = 0 : i64, scratch_operands = 0 : i64, tpu.core_type = #tpu.core_type<tc>, window_params = [{transform_indices = @transform_0, window_bounds = array<i64: 64, 16>}, {transform_indices = @transform_1, window_bounds = array<i64: 64, 16>}, {pipeline_mode = #tpu.pipeline_mode<synchronous>, transform_indices = @transform_2, window_bounds = array<i64: 32, 128>}, {pipeline_mode = #tpu.pipeline_mode<synchronous>, transform_indices = @transform_3, window_bounds = array<i64: 1, 128>}, {pipeline_mode = #tpu.pipeline_mode<synchronous>, transform_indices = @transform_4, window_bounds = array<i64: 1, 64>}, {pipeline_mode = #tpu.pipeline_mode<synchronous>, transform_indices = @transform_5, window_bounds = array<i64: 1, 64>}, {transform_indices = @transform_6, window_bounds = array<i64: 64, 256>}]} {
    %c0 = arith.constant 0 : index
    %c0_0 = arith.constant 0 : index
    %0 = vector.load %arg1[%c0, %c0_0] : memref<64x16xbf16, #tpu.memory_space<vmem>>, vector<64x16xbf16>
    %c0_1 = arith.constant 0 : index
    %c0_2 = arith.constant 0 : index
    %1 = vector.load %arg2[%c0_1, %c0_2] : memref<64x16xbf16, #tpu.memory_space<vmem>>, vector<64x16xbf16>
    %2 = tpu.concatenate %0, %1 in 1 : vector<64x16xbf16>, vector<64x16xbf16> -> vector<64x32xbf16>
    %c0_3 = arith.constant 0 : index
    %c0_4 = arith.constant 0 : index
    %3 = vector.load %arg3[%c0_3, %c0_4] : memref<32x128xbf16, #tpu.memory_space<vmem>>, vector<32x128xbf16>
    %cst = arith.constant dense<0.000000e+00> : vector<64x128xf32>
    %4 = tpu.matmul %2, %3, %cst {dimension_numbers = #tpu.dot_dimension_numbers<[1], [0], [0], [1], [0, 0, 1, 1], [], []>} : vector<64x32xbf16>, vector<32x128xbf16>, vector<64x128xf32> -> vector<64x128xf32>
    %c0_5 = arith.constant 0 : index
    %c0_6 = arith.constant 0 : index
    %5 = vector.load %arg4[%c0_5, %c0_6] : memref<1x128xf32, #tpu.memory_space<vmem>>, vector<1x128xf32>
    %6 = vector.broadcast %5 : vector<1x128xf32> to vector<64x128xf32>
    %7 = arith.addf %4, %6 : vector<64x128xf32>
    %8 = vector.extract_strided_slice %7 {offsets = [0, 64], sizes = [64, 64], strides = [1, 1]} : vector<64x128xf32> to vector<64x64xf32>
    %cst_7 = arith.constant dense<0xFF800000> : vector<64xf32>
    %9 = vector.multi_reduction <maximumf>, %8, %cst_7 [1] : vector<64x64xf32> to vector<64xf32>
    %10 = vector.shape_cast %9 : vector<64xf32> to vector<64x1xf32>
    %11 = vector.broadcast %10 : vector<64x1xf32> to vector<64x64xf32>
    %12 = arith.subf %8, %11 : vector<64x64xf32>
    %13 = math.exp %12 : vector<64x64xf32>
    %cst_8 = arith.constant dense<0.000000e+00> : vector<64xf32>
    %14 = vector.multi_reduction <add>, %13, %cst_8 [1] : vector<64x64xf32> to vector<64xf32>
    %15 = vector.shape_cast %14 : vector<64xf32> to vector<64x1xf32>
    %16 = vector.broadcast %15 : vector<64x1xf32> to vector<64x64xf32>
    %17 = arith.divf %13, %16 : vector<64x64xf32>
    %c0_9 = arith.constant 0 : index
    %c0_10 = arith.constant 0 : index
    %18 = vector.load %arg5[%c0_9, %c0_10] : memref<1x64xf32, #tpu.memory_space<vmem>>, vector<1x64xf32>
    %19 = vector.broadcast %18 : vector<1x64xf32> to vector<64x64xf32>
    %20 = arith.mulf %17, %19 : vector<64x64xf32>
    %cst_11 = arith.constant dense<0.000000e+00> : vector<64xf32>
    %21 = vector.multi_reduction <add>, %20, %cst_11 [1] : vector<64x64xf32> to vector<64xf32>
    %22 = vector.shape_cast %21 : vector<64xf32> to vector<64x1xf32>
    %c0_12 = arith.constant 0 : index
    %c0_13 = arith.constant 0 : index
    %23 = vector.load %arg6[%c0_12, %c0_13] : memref<1x64xf32, #tpu.memory_space<vmem>>, vector<1x64xf32>
    %24 = vector.broadcast %23 : vector<1x64xf32> to vector<64x64xf32>
    %25 = arith.mulf %17, %24 : vector<64x64xf32>
    %cst_14 = arith.constant dense<0.000000e+00> : vector<64xf32>
    %26 = vector.multi_reduction <add>, %25, %cst_14 [1] : vector<64x64xf32> to vector<64xf32>
    %27 = vector.shape_cast %26 : vector<64xf32> to vector<64x1xf32>
    %cst_15 = arith.constant 0.000000e+00 : f32
    %28 = vector.broadcast %cst_15 : f32 to vector<64x62xf32>
    %29 = tpu.concatenate %7, %17, %22, %27, %28 in 1 : vector<64x128xf32>, vector<64x64xf32>, vector<64x1xf32>, vector<64x1xf32>, vector<64x62xf32> -> vector<64x256xf32>
    %c0_16 = arith.constant 0 : index
    %c0_17 = arith.constant 0 : index
    %30 = vector.load %arg7[%c0_16, %c0_17] : memref<64x256xf32, #tpu.memory_space<vmem>>, vector<64x256xf32>
    tpu.vector_store %arg7[%c0_16, %c0_17], %29 {strides = array<i32>} : memref<64x256xf32, #tpu.memory_space<vmem>>, vector<64x256xf32>,
    return
  }
  func.func @transform_0(%arg0: i32) -> (i32, i32) {
    %c0_i32 = arith.constant 0 : i32
    %c0_i32_0 = arith.constant 0 : i32
    return %arg0, %c0_i32 : i32, i32
  }
  func.func @transform_1(%arg0: i32) -> (i32, i32) {
    %c0_i32 = arith.constant 0 : i32
    %c0_i32_0 = arith.constant 0 : i32
    return %arg0, %c0_i32 : i32, i32
  }
  func.func @transform_2(%arg0: i32) -> (i32, i32) {
    %c0_i32 = arith.constant 0 : i32
    %c0_i32_0 = arith.constant 0 : i32
    %c0_i32_1 = arith.constant 0 : i32
    return %c0_i32, %c0_i32_0 : i32, i32
  }
  func.func @transform_3(%arg0: i32) -> (i32, i32) {
    %c0_i32 = arith.constant 0 : i32
    %c0_i32_0 = arith.constant 0 : i32
    %c0_i32_1 = arith.constant 0 : i32
    return %c0_i32, %c0_i32_0 : i32, i32
  }
  func.func @transform_4(%arg0: i32) -> (i32, i32) {
    %c0_i32 = arith.constant 0 : i32
    %c0_i32_0 = arith.constant 0 : i32
    %c0_i32_1 = arith.constant 0 : i32
    return %c0_i32, %c0_i32_0 : i32, i32
  }
  func.func @transform_5(%arg0: i32) -> (i32, i32) {
    %c0_i32 = arith.constant 0 : i32
    %c0_i32_0 = arith.constant 0 : i32
    %c0_i32_1 = arith.constant 0 : i32
    return %c0_i32, %c0_i32_0 : i32, i32
  }
  func.func @transform_6(%arg0: i32) -> (i32, i32) {
    %c0_i32 = arith.constant 0 : i32
    %c0_i32_0 = arith.constant 0 : i32
    return %arg0, %c0_i32 : i32, i32
  }
}

module attributes {stable_mosaic.version = 11 : i64} {
  func.func @_lddt_kernel(%arg0: i32, %arg1: memref<16x32xf32, #tpu.memory_space<vmem>>, %arg2: memref<1x32xf32, #tpu.memory_space<vmem>>, %arg3: memref<1x32xf32, #tpu.memory_space<vmem>>, %arg4: memref<32x1920xbf16, #tpu.memory_space<vmem>>, %arg5: memref<1x1920xf32, #tpu.memory_space<vmem>>, %arg6: memref<1920x128xf32, #tpu.memory_space<vmem>>, %arg7: memref<16x1920xf32, #tpu.memory_space<vmem>>, %arg8: memref<16x128xf32, #tpu.memory_space<vmem>>) attributes {dimension_semantics = [#tpu.dimension_semantics<parallel>], iteration_bounds = array<i64: 2>, scalar_prefetch = 0 : i64, scratch_operands = 0 : i64, tpu.core_type = #tpu.core_type<tc>, window_params = [{transform_indices = @transform_0, window_bounds = array<i64: 16, 32>}, {pipeline_mode = #tpu.pipeline_mode<synchronous>, transform_indices = @transform_1, window_bounds = array<i64: 1, 32>}, {pipeline_mode = #tpu.pipeline_mode<synchronous>, transform_indices = @transform_2, window_bounds = array<i64: 1, 32>}, {pipeline_mode = #tpu.pipeline_mode<synchronous>, transform_indices = @transform_3, window_bounds = array<i64: 32, 1920>}, {pipeline_mode = #tpu.pipeline_mode<synchronous>, transform_indices = @transform_4, window_bounds = array<i64: 1, 1920>}, {pipeline_mode = #tpu.pipeline_mode<synchronous>, transform_indices = @transform_5, window_bounds = array<i64: 1920, 128>}, {transform_indices = @transform_6, window_bounds = array<i64: 16, 1920>}, {transform_indices = @transform_7, window_bounds = array<i64: 16, 128>}]} {
    %c0 = arith.constant 0 : index
    %c0_0 = arith.constant 0 : index
    %0 = vector.load %arg1[%c0, %c0_0] : memref<16x32xf32, #tpu.memory_space<vmem>>, vector<16x32xf32>
    %cst = arith.constant dense<0.000000e+00> : vector<16xf32>
    %1 = vector.multi_reduction <add>, %0, %cst [1] : vector<16x32xf32> to vector<16xf32>
    %2 = vector.shape_cast %1 : vector<16xf32> to vector<16x1xf32>
    %cst_1 = arith.constant 3.200000e+01 : f32
    %3 = vector.broadcast %cst_1 : f32 to vector<16x1xf32>
    %4 = arith.divf %2, %3 : vector<16x1xf32>
    %5 = vector.broadcast %4 : vector<16x1xf32> to vector<16x32xf32>
    %6 = arith.subf %0, %5 : vector<16x32xf32>
    %7 = arith.mulf %6, %6 : vector<16x32xf32>
    %cst_2 = arith.constant dense<0.000000e+00> : vector<16xf32>
    %8 = vector.multi_reduction <add>, %7, %cst_2 [1] : vector<16x32xf32> to vector<16xf32>
    %9 = vector.shape_cast %8 : vector<16xf32> to vector<16x1xf32>
    %cst_3 = arith.constant 3.200000e+01 : f32
    %10 = vector.broadcast %cst_3 : f32 to vector<16x1xf32>
    %11 = arith.divf %9, %10 : vector<16x1xf32>
    %12 = vector.broadcast %4 : vector<16x1xf32> to vector<16x32xf32>
    %13 = arith.subf %0, %12 : vector<16x32xf32>
    %cst_4 = arith.constant 9.99999974E-6 : f32
    %14 = vector.broadcast %cst_4 : f32 to vector<16x1xf32>
    %15 = arith.addf %11, %14 : vector<16x1xf32>
    %16 = math.rsqrt %15 : vector<16x1xf32>
    %17 = vector.broadcast %16 : vector<16x1xf32> to vector<16x32xf32>
    %18 = arith.mulf %13, %17 : vector<16x32xf32>
    %c0_5 = arith.constant 0 : index
    %c0_6 = arith.constant 0 : index
    %19 = vector.load %arg2[%c0_5, %c0_6] : memref<1x32xf32, #tpu.memory_space<vmem>>, vector<1x32xf32>
    %20 = vector.broadcast %19 : vector<1x32xf32> to vector<16x32xf32>
    %21 = arith.mulf %18, %20 : vector<16x32xf32>
    %c0_7 = arith.constant 0 : index
    %c0_8 = arith.constant 0 : index
    %22 = vector.load %arg3[%c0_7, %c0_8] : memref<1x32xf32, #tpu.memory_space<vmem>>, vector<1x32xf32>
    %23 = vector.broadcast %22 : vector<1x32xf32> to vector<16x32xf32>
    %24 = arith.addf %21, %23 : vector<16x32xf32>
    %25 = arith.truncf %24 : vector<16x32xf32> to vector<16x32xbf16>
    %c0_9 = arith.constant 0 : index
    %c0_10 = arith.constant 0 : index
    %26 = vector.load %arg4[%c0_9, %c0_10] : memref<32x1920xbf16, #tpu.memory_space<vmem>>, vector<32x1920xbf16>
    %cst_11 = arith.constant dense<0.000000e+00> : vector<16x1920xf32>
    %27 = tpu.matmul %25, %26, %cst_11 {dimension_numbers = #tpu.dot_dimension_numbers<[1], [0], [0], [1], [0, 0, 1, 1], [], []>} : vector<16x32xbf16>, vector<32x1920xbf16>, vector<16x1920xf32> -> vector<16x1920xf32>
    %c0_12 = arith.constant 0 : index
    %c0_13 = arith.constant 0 : index
    %28 = vector.load %arg5[%c0_12, %c0_13] : memref<1x1920xf32, #tpu.memory_space<vmem>>, vector<1x1920xf32>
    %29 = vector.broadcast %28 : vector<1x1920xf32> to vector<16x1920xf32>
    %30 = arith.addf %27, %29 : vector<16x1920xf32>
    %c0_14 = arith.constant 0 : index
    %c0_15 = arith.constant 0 : index
    %31 = vector.load %arg7[%c0_14, %c0_15] : memref<16x1920xf32, #tpu.memory_space<vmem>>, vector<16x1920xf32>
    tpu.vector_store %arg7[%c0_14, %c0_15], %30 {strides = array<i32>} : memref<16x1920xf32, #tpu.memory_space<vmem>>, vector<16x1920xf32>,
    %cst_16 = arith.constant dense<0xFF800000> : vector<16xf32>
    %32 = vector.multi_reduction <maximumf>, %30, %cst_16 [1] : vector<16x1920xf32> to vector<16xf32>
    %33 = vector.shape_cast %32 : vector<16xf32> to vector<16x1xf32>
    %34 = vector.broadcast %33 : vector<16x1xf32> to vector<16x1920xf32>
    %35 = arith.subf %30, %34 : vector<16x1920xf32>
    %36 = math.exp %35 : vector<16x1920xf32>
    %c0_17 = arith.constant 0 : index
    %c0_18 = arith.constant 0 : index
    %37 = vector.load %arg6[%c0_17, %c0_18] : memref<1920x128xf32, #tpu.memory_space<vmem>>, vector<1920x128xf32>
    %cst_19 = arith.constant dense<0.000000e+00> : vector<16x128xf32>
    %38 = tpu.matmul %36, %37, %cst_19 {dimension_numbers = #tpu.dot_dimension_numbers<[1], [0], [0], [1], [0, 0, 1, 1], [], []>} : vector<16x1920xf32>, vector<1920x128xf32>, vector<16x128xf32> -> vector<16x128xf32>
    %39 = vector.extract_strided_slice %38 {offsets = [0, 0], sizes = [16, 37], strides = [1, 1]} : vector<16x128xf32> to vector<16x37xf32>
    %40 = vector.extract_strided_slice %38 {offsets = [0, 37], sizes = [16, 37], strides = [1, 1]} : vector<16x128xf32> to vector<16x37xf32>
    %cst_20 = arith.constant 1.000000e+02 : f32
    %41 = vector.broadcast %cst_20 : f32 to vector<16x37xf32>
    %42 = arith.mulf %41, %39 : vector<16x37xf32>
    %43 = arith.divf %42, %40 : vector<16x37xf32>
    %cst_21 = arith.constant 0.000000e+00 : f32
    %44 = vector.broadcast %cst_21 : f32 to vector<16x91xf32>
    %45 = tpu.concatenate %43, %44 in 1 : vector<16x37xf32>, vector<16x91xf32> -> vector<16x128xf32>
    %c0_22 = arith.constant 0 : index
    %c0_23 = arith.constant 0 : index
    %46 = vector.load %arg8[%c0_22, %c0_23] : memref<16x128xf32, #tpu.memory_space<vmem>>, vector<16x128xf32>
    tpu.vector_store %arg8[%c0_22, %c0_23], %45 {strides = array<i32>} : memref<16x128xf32, #tpu.memory_space<vmem>>, vector<16x128xf32>,
    return
  }
  func.func @transform_0(%arg0: i32) -> (i32, i32) {
    %c0_i32 = arith.constant 0 : i32
    %c0_i32_0 = arith.constant 0 : i32
    return %arg0, %c0_i32 : i32, i32
  }
  func.func @transform_1(%arg0: i32) -> (i32, i32) {
    %c0_i32 = arith.constant 0 : i32
    %c0_i32_0 = arith.constant 0 : i32
    %c0_i32_1 = arith.constant 0 : i32
    return %c0_i32, %c0_i32_0 : i32, i32
  }
  func.func @transform_2(%arg0: i32) -> (i32, i32) {
    %c0_i32 = arith.constant 0 : i32
    %c0_i32_0 = arith.constant 0 : i32
    %c0_i32_1 = arith.constant 0 : i32
    return %c0_i32, %c0_i32_0 : i32, i32
  }
  func.func @transform_3(%arg0: i32) -> (i32, i32) {
    %c0_i32 = arith.constant 0 : i32
    %c0_i32_0 = arith.constant 0 : i32
    %c0_i32_1 = arith.constant 0 : i32
    return %c0_i32, %c0_i32_0 : i32, i32
  }
  func.func @transform_4(%arg0: i32) -> (i32, i32) {
    %c0_i32 = arith.constant 0 : i32
    %c0_i32_0 = arith.constant 0 : i32
    %c0_i32_1 = arith.constant 0 : i32
    return %c0_i32, %c0_i32_0 : i32, i32
  }
  func.func @transform_5(%arg0: i32) -> (i32, i32) {
    %c0_i32 = arith.constant 0 : i32
    %c0_i32_0 = arith.constant 0 : i32
    %c0_i32_1 = arith.constant 0 : i32
    return %c0_i32, %c0_i32_0 : i32, i32
  }
  func.func @transform_6(%arg0: i32) -> (i32, i32) {
    %c0_i32 = arith.constant 0 : i32
    %c0_i32_0 = arith.constant 0 : i32
    return %arg0, %c0_i32 : i32, i32
  }
  func.func @transform_7(%arg0: i32) -> (i32, i32) {
    %c0_i32 = arith.constant 0 : i32
    %c0_i32_0 = arith.constant 0 : i32
    return %arg0, %c0_i32 : i32, i32
  }
}

</mosaic_0001>

<bundles_post_ra>
// kernel: esmfold_forward.4
= control target key start
LH: loop header
LB: loop body
LE: loop exit
PB: predicated region body
PF: predicated region fallthrough
CT: control target
= control target key end

     0   :  { %s1017_s21 = smov 0   ;;  %s1206_s0 = inlined_call_operand.vmem [shape: bf16[128,16], index: 0, kind: input, shape index: {}]   ;;  %s1207_s1 = inlined_call_operand.vmem [shape: bf16[128,16], index: 1, kind: input, shape index: {}]   ;;  %s1208_s2 = inlined_call_operand.vmem [shape: bf16[32,128], index: 2, kind: input, shape index: {}]   ;;  %s1209_s3 = inlined_call_operand.vmem [shape: f32[1,128], index: 3, kind: input, shape index: {}]   ;;  %s1210_s4 = inlined_call_operand.vmem [shape: f32[1,64], index: 4, kind: input, shape index: {}]   ;;  %s1211_s5 = inlined_call_operand.vmem [shape: f32[1,64], index: 5, kind: input, shape index: {}]   ;;  %s1212_s6 = inlined_call_operand.vmem [shape: f32[128,256], index: 6, kind: output, shape index: {}]  }
   0x1 LB: > { %s866_s22 = sadd.s32 4294967295, %s978_s21   ;;  %p870_p0 = scmp.ge.s32.totalorder %s978_s21, 1  ;;  %s978_s21 = sphi %s1017_s21, %s16_s21  }
   0x2   : > { %p224_p1 = scmp.lt.s32.totalorder %s978_s21, 3 }
   0x4   : > { %p225_p2 = pnand %p870_p0, %p224_p1 }
   0x5   : > { %s871_s23 = sshll.u32 (!%p225_p2), %s866_s22, 3  ;;  %v934_v0 = vld [vmem:[%s1208_s2] sm:$0xff] (!%p225_p2)   ;;  %v935_v1 = vld [vmem:[%s1208_s2 + $0x8] sm:$0xff] (!%p225_p2)   ;;  %s980_s8 = smov (!%p225_p2), 16   ;;  %vm344_vm0 = vcmask (!%p225_p2), 130048   ;;  %vm380_vm1 = vcmask (!%p225_p2), 261120  }
   0x6   : > { %228 = sbr.rel (%p225_p2) target bundleno = 1096 (0x448), region = 44  ;;  %p261_p3 = scmp.lt.s32.totalorder (!%p225_p2), %s871_s23, 15  ;;  %904 = vmatprep.subr.bf16.mxu0 (!%p225_p2), %v934_v0  ;;  %916 = vmatprep.subr.bf16.mxu1 (!%p225_p2), %v934_v0  ;;  %v886_v18 = vld [vmem:[%s1209_s3] ss:$0 sm:$0xff] (!%p225_p2)  ;;  %vm454_vm2 = vcmask (!%p225_p2), 1048064   ;;  %vm535_vm3 = vcmask (!%p225_p2), 523264  }
   0x7   : > { %905 = vmatpush3.bf16.msra.mxu0 (!%p225_p2), %v934_v0  ;;  %918 = vmatpush3.bf16.msra.mxu1 (!%p225_p2), %v934_v0  ;;  %s981_s18 = smov (!%p225_p2), 64   ;;  %vm762_vm4 = vcmask (!%p225_p2), 531456   ;;  %vm771_vm5 = vcmask (!%p225_p2), 539648  }
   0x8   : > { %906 = vmatprep.subr.bf16.mxu0 (!%p225_p2), %v935_v1  ;;  %917 = vmatprep.subr.bf16.mxu1 (!%p225_p2), %v935_v1 }
   0xb   : > { %907 = vmatpush3.bf16.msra.mxu0 (!%p225_p2), %v935_v1  ;;  %919 = vmatpush3.bf16.msra.mxu1 (!%p225_p2), %v935_v1 }
   0xd   : > { %s1214_s23 = smov (!%p261_p3, %s871_s23), 15 }
   0xe   : > { %s872_s28 = sshll.u32 %s1214_s23, 2  ;;  %s897_s12 = sshll.u32 %s1214_s23, 4 }
   0xf   : > { %s270_s7 = scalar_lea.vmem %s1207_s1, %s872_s28  ;;  %s264_s11 = scalar_lea.vmem %s1206_s0, %s872_s28 }
  0x10   : > { %v930_v2 = vld [vmem:[%s270_s7] sm:$0xff]   ;;  %v931_v3 = vld [vmem:[%s270_s7 + $0x8] sm:$0xff]   ;;  %v932_v4 = vld [vmem:[%s270_s7 + $0x10] sm:$0xff]   ;;  %s1047_s17 = scalar_lea.vmem %s1212_s6, %s897_s12 }
  0x11   : > { %336 = vrot.lane.b32.xlu0 %v930_v2, %s980_s8  ;;  %338 = vrot.lane.b32.xlu1 %v931_v3, %s980_s8  ;;  %v933_v5 = vld [vmem:[%s270_s7 + $0x18] sm:$0xff]   ;;  %v937_v6 = vld [vmem:[%s264_s11] sm:$0xff]  }
  0x12   : > { %v936_v7 = vld [vmem:[%s264_s11 + $0x8] sm:$0xff]   ;;  %v939_v11 = vld [vmem:[%s264_s11 + $0x10] sm:$0xff]   ;;  %v938_v13 = vld [vmem:[%s264_s11 + $0x18] sm:$0xff]  }
  0x15   : > { %340 = vrot.lane.b32.xlu0 %v932_v4, %s980_s8  ;;  %342 = vrot.lane.b32.xlu1 %v933_v5, %s980_s8 }
  0x83   : > { %v337_v8 = vpop.permute.xlu0 %336  ;;  %v339_v9 = vpop.permute.xlu1 %338 }
  0x84   : > { %v347_v10 = vsel %vm344_vm0, %v937_v6, %v337_v8  ;;  %v350_v12 = vsel %vm344_vm0, %v936_v7, %v339_v9 }
  0x85   : > { %908 = vmatprep.mubr.msk.bf16.mxu0 %vm380_vm1, %v347_v10 }
  0x86   : > { %909 = vmatmul.mubr.msk.bf16.vlgmr.msra.gmra.mrb[0].mxu0 %vm380_vm1, %v350_v12 }
  0x87   : > { %v341_v14 = vpop.permute.xlu0 %340  ;;  %v343_v15 = vpop.permute.xlu1 %342 }
  0x88   : > { %v353_v16 = vsel %vm344_vm0, %v939_v11, %v341_v14  ;;  %v356_v17 = vsel %vm344_vm0, %v938_v13, %v343_v15  ;;  %v893_v11 = vld [vmem:[%s1210_s4] ss:$0 sm:$0xff] }
  0x89   : > { %912 = vmatprep.mubr.msk.bf16.mxu1 %vm380_vm1, %v353_v16 }
  0x8a   : > { %913 = vmatmul.mubr.msk.bf16.vlgmr.msra.gmra.mrb[0].mxu1 %vm380_vm1, %v356_v17 }
 0x159   : > { %v910_v19 = vpop.f32.mrb[0].mxu0 }
 0x15a   : > { %v432_v20 = vadd.f32 %v910_v19, %v886_v18  ;;  %v423_v21 = vpop.f32.mrb[1].mxu0 }
 0x15b   : > { %v424_v22 = vadd.f32 %v886_v18, %v423_v21  ;;  %v911_v23 = vpop.f32.mrb[2].mxu0 }
 0x15c   : > { %784 = vst [vmem:[%s1047_s17 + $0x20] sm:$0xff] %v432_v20  ;;  %v435_v24 = vadd.f32 %v911_v23, %v886_v18  ;;  %v426_v25 = vpop.f32.mrb[3].mxu0  ;;  %v461_v26 = vsel %vm454_vm2, %v432_v20, -inf }
 0x15d   : > { %780 = vst [vmem:[%s1047_s17] sm:$0xff] %v424_v22  ;;  %v427_v27 = vadd.f32 %v886_v18, %v426_v25  ;;  %v914_v28 = vpop.f32.mrb[0].mxu1  ;;  %462 = vmax.xlane.f32.xlu0 %v461_v26  ;;  %v455_v35 = vsel %vm454_vm2, %v424_v22, -inf }
 0x15e   : > { %786 = vst [vmem:[%s1047_s17 + $0x30] sm:$0xff] %v435_v24  ;;  %v448_v29 = vadd.f32 %v914_v28, %v886_v18  ;;  %v439_v30 = vpop.f32.mrb[1].mxu1  ;;  %v464_v38 = vsel %vm454_vm2, %v435_v24, -inf  ;;  %v894_v28 = vld [vmem:[%s1211_s5] ss:$0 sm:$0xff] }
 0x15f   : > { %782 = vst [vmem:[%s1047_s17 + $0x10] sm:$0xff] %v427_v27  ;;  %v440_v31 = vadd.f32 %v886_v18, %v439_v30  ;;  %v915_v32 = vpop.f32.mrb[2].mxu1  ;;  %v458_v39 = vsel %vm454_vm2, %v427_v27, -inf }
 0x160   : > { %792 = vst [vmem:[%s1047_s17 + $0x60] sm:$0xff] %v448_v29  ;;  %v451_v33 = vadd.f32 %v915_v32, %v886_v18  ;;  %v442_v34 = vpop.f32.mrb[3].mxu1  ;;  %v473_v41 = vsel %vm454_vm2, %v448_v29, -inf }
 0x161   : > { %788 = vst [vmem:[%s1047_s17 + $0x40] sm:$0xff] %v440_v31  ;;  %v443_v36 = vadd.f32 %v886_v18, %v442_v34  ;;  %456 = vmax.xlane.f32.xlu0 %v455_v35  ;;  %v467_v37 = vsel %vm454_vm2, %v440_v31, -inf }
 0x162   : > { %794 = vst [vmem:[%s1047_s17 + $0x70] sm:$0xff] %v451_v33  ;;  %468 = vmax.xlane.f32.xlu1 %v467_v37  ;;  %v476_v42 = vsel %vm454_vm2, %v451_v33, -inf }
 0x163   : > { %790 = vst [vmem:[%s1047_s17 + $0x50] sm:$0xff] %v443_v36  ;;  %v470_v40 = vsel %vm454_vm2, %v443_v36, -inf }
 0x165   : > { %465 = vmax.xlane.f32.xlu0 %v464_v38 }
 0x166   : > { %459 = vmax.xlane.f32.xlu1 %v458_v39 }
 0x169   : > { %471 = vmax.xlane.f32.xlu0 %v470_v40 }
 0x16a   : > { %474 = vmax.xlane.f32.xlu1 %v473_v41 }
 0x16d   : > { %477 = vmax.xlane.f32.xlu0 %v476_v42 }
 0x1ea   : > { %v463_v43 = vpop.xlane.xlu0 %462 }
 0x1eb   : > { %v481_v44 = vsub.f32 %v432_v20, %v463_v43 }
 0x1ed   : > { %v491_v45 = vmul.f32 1.442695, %v481_v44 }
 0x1ee   : > { %v457_v46 = vpop.xlane.xlu0 %456 }
 0x1ef   : > { %940 = vpow2.f32 %v491_v45  ;;  %v479_v47 = vsub.f32 %v424_v22, %v457_v46  ;;  %v469_v48 = vpop.xlane.xlu1 %468 }
 0x1f0   : > { %v483_v49 = vsub.f32 %v440_v31, %v469_v48 }
 0x1f1   : > { %v487_v50 = vmul.f32 1.442695, %v479_v47 }
 0x1f2   : > { %v495_v51 = vmul.f32 1.442695, %v483_v49  ;;  %v466_v52 = vpop.xlane.xlu0 %465 }
 0x1f3   : > { %942 = vpow2.f32 %v487_v50  ;;  %v482_v53 = vsub.f32 %v435_v24, %v466_v52  ;;  %v460_v54 = vpop.xlane.xlu1 %459 }
 0x1f4   : > { %944 = vpow2.f32 %v495_v51  ;;  %v480_v55 = vsub.f32 %v427_v27, %v460_v54 }
 0x1f5   : > { %v493_v56 = vmul.f32 1.442695, %v482_v53 }
 0x1f6   : > { %v489_v57 = vmul.f32 1.442695, %v480_v55  ;;  %v472_v58 = vpop.xlane.xlu0 %471 }
 0x1f7   : > { %946 = vpow2.f32 %v493_v56  ;;  %v484_v59 = vsub.f32 %v443_v36, %v472_v58  ;;  %v475_v60 = vpop.xlane.xlu1 %474 }
 0x1f8   : > { %948 = vpow2.f32 %v489_v57  ;;  %v485_v61 = vsub.f32 %v448_v29, %v475_v60 }
 0x1f9   : > { %v941_v62 = vpop.eup %940  ;;  %v497_v63 = vmul.f32 1.442695, %v484_v59 }
 0x1fa   : > { %v499_v0 = vmul.f32 1.442695, %v485_v61  ;;  %515 = vrot.lane.b32.xlu1 %v941_v62, %s981_s18  ;;  %v478_v1 = vpop.xlane.xlu0 %477 }
 0x1fb   : > { %950 = vpow2.f32 %v497_v63  ;;  %v486_v2 = vsub.f32 %v451_v33, %v478_v1 }
 0x1fc   : > { %952 = vpow2.f32 %v499_v0 }
 0x1fd   : > { %v943_v3 = vpop.eup %942  ;;  %v501_v4 = vmul.f32 1.442695, %v486_v2 }
 0x1fe   : > { %v1066_v5 = vpop.eup %944  ;;  %511 = vrot.lane.b32.xlu1 %v943_v3, %s981_s18 }
 0x1ff   : > { %954 = vpow2.f32 %v501_v4  ;;  %519 = vrot.lane.b32.xlu0 %v1066_v5, %s981_s18 }
 0x201   : > { %v947_v6 = vpop.eup %946 }
 0x202   : > { %v1071_v7 = vpop.eup %948  ;;  %517 = vrot.lane.b32.xlu1 %v947_v6, %s981_s18 }
 0x203   : > { %513 = vrot.lane.b32.xlu0 %v1071_v7, %s981_s18 }
 0x205   : > { %v1076_v8 = vpop.eup %950 }
 0x206   : > { %v1078_v9 = vpop.eup %952  ;;  %521 = vrot.lane.b32.xlu1 %v1076_v8, %s981_s18 }
 0x207   : > { %523 = vrot.lane.b32.xlu0 %v1078_v9, %s981_s18 }
 0x209   : > { %v1084_v10 = vpop.eup %954 }
 0x20a   : > { %525 = vrot.lane.b32.xlu1 %v1084_v10, %s981_s18 }
 0x20e   : > { %582 = vrot.lane.b32.xlu1 %v893_v11, %s981_s18 }
 0x26c   : > { %v516_v12 = vpop.permute.xlu1 %515 }
 0x26d   : > { %v542_v13 = vsel %vm535_vm3, %v516_v12, 0.0 }
 0x26e   : > { %543 = vadd.xlane.f32.xlu0 %v542_v13 }
 0x270   : > { %v512_v14 = vpop.permute.xlu1 %511 }
 0x271   : > { %v520_v15 = vpop.permute.xlu0 %519  ;;  %v536_v16 = vsel %vm535_vm3, %v512_v14, 0.0 }
 0x272   : > { %537 = vadd.xlane.f32.xlu0 %v536_v16  ;;  %v548_v25 = vsel %vm535_vm3, %v520_v15, 0.0 }
 0x274   : > { %v518_v17 = vpop.permute.xlu1 %517 }
 0x275   : > { %v514_v18 = vpop.permute.xlu0 %513  ;;  %v545_v19 = vsel %vm535_vm3, %v518_v17, 0.0 }
 0x276   : > { %546 = vadd.xlane.f32.xlu0 %v545_v19  ;;  %v539_v27 = vsel %vm535_vm3, %v514_v18, 0.0 }
 0x278   : > { %v522_v20 = vpop.permute.xlu1 %521 }
 0x279   : > { %v524_v21 = vpop.permute.xlu0 %523  ;;  %v551_v26 = vsel %vm535_vm3, %v522_v20, 0.0 }
 0x27a   : > { %v554_v22 = vsel %vm535_vm3, %v524_v21, 0.0 }
 0x27b   : > { %555 = vadd.xlane.f32.xlu1 %v554_v22 }
 0x27c   : > { %v526_v23 = vpop.permute.xlu1 %525 }
 0x27d   : > { %v557_v24 = vsel %vm535_vm3, %v526_v23, 0.0 }
 0x27e   : > { %558 = vadd.xlane.f32.xlu0 %v557_v24 }
 0x27f   : > { %549 = vadd.xlane.f32.xlu1 %v548_v25 }
 0x280   : > { %v583_v32 = vpop.permute.xlu1 %582 }
 0x282   : > { %552 = vadd.xlane.f32.xlu0 %v551_v26 }
 0x283   : > { %540 = vadd.xlane.f32.xlu1 %v539_v27 }
 0x298   : > { %655 = vrot.lane.b32.xlu0 %v894_v28, %s981_s18 }
 0x2fb   : > { %v544_v29 = vpop.xlane.xlu0 %543 }
 0x2fc   : > { %956 = vrcp.f32 %v544_v29 }
 0x2ff   : > { %v538_v30 = vpop.xlane.xlu0 %537 }
 0x300   : > { %958 = vrcp.f32 %v538_v30 }
 0x303   : > { %v547_v31 = vpop.xlane.xlu0 %546 }
 0x304   : > { %960 = vrcp.f32 %v547_v31 }
 0x306   : > { %v957_v33 = vpop.eup %956 }
 0x307   : > { %v565_v34 = vmul.f32 %v957_v33, %v941_v62 }
 0x308   : > { %v556_v35 = vpop.xlane.xlu1 %555 }
 0x309   : > { %734 = vrot.lane.b32.xlu1 %v565_v34, %s981_s18  ;;  %v587_v51 = vmul.f32 %v583_v32, %v565_v34 }
 0x30a   : > { %v959_v36 = vpop.eup %958 }
 0x30b   : > { %v559_v37 = vpop.xlane.xlu0 %558  ;;  %v561_v38 = vmul.f32 %v959_v36, %v943_v3 }
 0x30c   : > { %v550_v39 = vpop.xlane.xlu1 %549 }
 0x30d   : > { %962 = vrcp.f32 %v550_v39  ;;  %730 = vrot.lane.b32.xlu1 %v561_v38, %s981_s18  ;;  %v585_v43 = vmul.f32 %v583_v32, %v561_v38 }
 0x30e   : > { %v961_v40 = vpop.eup %960  ;;  %964 = vrcp.f32 %v556_v35 }
 0x30f   : > { %v553_v41 = vpop.xlane.xlu0 %552  ;;  %v567_v42 = vmul.f32 %v961_v40, %v947_v6 }
 0x310   : > { %966 = vrcp.f32 %v553_v41  ;;  %v541_v48 = vpop.xlane.xlu1 %540 }
 0x311   : > { %736 = vrot.lane.b32.xlu1 %v567_v42, %s981_s18  ;;  %968 = vrcp.f32 %v559_v37  ;;  %v588_v53 = vmul.f32 %v583_v32, %v567_v42 }
 0x312   : > { %970 = vrcp.f32 %v541_v48 }
 0x313   : > { %v656_v56 = vpop.permute.xlu0 %655 }
 0x314   : > { %v660_v58 = vmul.f32 %v656_v56, %v565_v34  ;;  %v661_v59 = vmul.f32 %v656_v56, %v567_v42  ;;  %v658_v2 = vmul.f32 %v656_v56, %v561_v38 }
 0x315   : > { %601 = vrot.lane.b32.xlu1 %v585_v43, %s981_s18 }
 0x317   : > { %v963_v44 = vpop.eup %962 }
 0x318   : > { %v569_v45 = vmul.f32 %v963_v44, %v1066_v5  ;;  %v965_v46 = vpop.eup %964 }
 0x319   : > { %v1112_v52 = vmul.f32 %v965_v46, %v1078_v9 }
 0x31a   : > { %v967_v47 = vpop.eup %966  ;;  %738 = vrot.lane.b32.xlu0 %v569_v45, %s981_s18  ;;  %v589_v0 = vmul.f32 %v583_v32, %v569_v45  ;;  %v662_v4 = vmul.f32 %v656_v56, %v569_v45 }
 0x31b   : > { %v571_v49 = vmul.f32 %v967_v47, %v1076_v8  ;;  %v969_v50 = vpop.eup %968  ;;  %v591_v55 = vmul.f32 %v583_v32, %v1112_v52  ;;  %v664_v61 = vmul.f32 %v656_v56, %v1112_v52 }
 0x31c   : > { %v1117_v54 = vmul.f32 %v969_v50, %v1084_v10  ;;  %v971_v60 = vpop.eup %970 }
 0x31d   : > { %740 = vrot.lane.b32.xlu1 %v571_v49, %s981_s18  ;;  %v563_v63 = vmul.f32 %v971_v60, %v1071_v7  ;;  %v590_v3 = vmul.f32 %v583_v32, %v571_v49  ;;  %v663_v6 = vmul.f32 %v656_v56, %v571_v49 }
 0x31e   : > { %605 = vrot.lane.b32.xlu0 %v587_v51, %s981_s18  ;;  %v592_v57 = vmul.f32 %v583_v32, %v1117_v54  ;;  %v665_v62 = vmul.f32 %v656_v56, %v1117_v54 }
 0x31f   : > { %v586_v1 = vmul.f32 %v583_v32, %v563_v63  ;;  %v659_v5 = vmul.f32 %v656_v56, %v563_v63 }
 0x321   : > { %607 = vrot.lane.b32.xlu1 %v588_v53, %s981_s18 }
 0x322   : > { %613 = vrot.lane.b32.xlu0 %v591_v55, %s981_s18 }
 0x325   : > { %615 = vrot.lane.b32.xlu1 %v592_v57, %s981_s18 }
 0x326   : > { %678 = vrot.lane.b32.xlu0 %v660_v58, %s981_s18 }
 0x329   : > { %680 = vrot.lane.b32.xlu1 %v661_v59, %s981_s18 }
 0x32a   : > { %686 = vrot.lane.b32.xlu0 %v664_v61, %s981_s18 }
 0x32d   : > { %688 = vrot.lane.b32.xlu1 %v665_v62, %s981_s18 }
 0x32e   : > { %609 = vrot.lane.b32.xlu0 %v589_v0, %s981_s18 }
 0x331   : > { %603 = vrot.lane.b32.xlu1 %v586_v1, %s981_s18 }
 0x332   : > { %674 = vrot.lane.b32.xlu0 %v658_v2, %s981_s18 }
 0x335   : > { %611 = vrot.lane.b32.xlu1 %v590_v3, %s981_s18 }
 0x336   : > { %682 = vrot.lane.b32.xlu0 %v662_v4, %s981_s18 }
 0x339   : > { %676 = vrot.lane.b32.xlu1 %v659_v5, %s981_s18 }
 0x33a   : > { %732 = vrot.lane.b32.xlu0 %v563_v63, %s981_s18 }
 0x33d   : > { %684 = vrot.lane.b32.xlu1 %v663_v6, %s981_s18 }
 0x37b   : > { %v735_v7 = vpop.permute.xlu1 %734 }
 0x37f   : > { %v1139_v8 = vpop.permute.xlu1 %730 }
 0x383   : > { %v1141_v9 = vpop.permute.xlu1 %736 }
 0x387   : > { %v602_v10 = vpop.permute.xlu1 %601 }
 0x388   : > { %v625_v17 = vsel %vm535_vm3, %v602_v10, 0.0 }
 0x38c   : > { %v1143_v11 = vpop.permute.xlu0 %738 }
 0x38f   : > { %v1145_v12 = vpop.permute.xlu1 %740 }
 0x390   : > { %v606_v13 = vpop.permute.xlu0 %605 }
 0x391   : > { %v631_v14 = vsel %vm535_vm3, %v606_v13, 0.0 }
 0x392   : > { %632 = vadd.xlane.f32.xlu0 %v631_v14 }
 0x393   : > { %v608_v15 = vpop.permute.xlu1 %607 }
 0x394   : > { %v614_v16 = vpop.permute.xlu0 %613  ;;  %v634_v21 = vsel %vm535_vm3, %v608_v15, 0.0 }
 0x395   : > { %v643_v18 = vsel %vm535_vm3, %v614_v16, 0.0 }
 0x396   : > { %626 = vadd.xlane.f32.xlu0 %v625_v17  ;;  %644 = vadd.xlane.f32.xlu1 %v643_v18 }
 0x397   : > { %v616_v19 = vpop.permute.xlu1 %615 }
 0x398   : > { %v679_v20 = vpop.permute.xlu0 %678  ;;  %v646_v25 = vsel %vm535_vm3, %v616_v19, 0.0 }
 0x399   : > { %v704_v22 = vsel %vm535_vm3, %v679_v20, 0.0 }
 0x39a   : > { %635 = vadd.xlane.f32.xlu0 %v634_v21  ;;  %705 = vadd.xlane.f32.xlu1 %v704_v22 }
 0x39b   : > { %v681_v23 = vpop.permute.xlu1 %680 }
 0x39c   : > { %v687_v24 = vpop.permute.xlu0 %686  ;;  %v707_v29 = vsel %vm535_vm3, %v681_v23, 0.0 }
 0x39d   : > { %v716_v26 = vsel %vm535_vm3, %v687_v24, 0.0 }
 0x39e   : > { %647 = vadd.xlane.f32.xlu0 %v646_v25  ;;  %717 = vadd.xlane.f32.xlu1 %v716_v26 }
 0x39f   : > { %v689_v27 = vpop.permute.xlu1 %688 }
 0x3a0   : > { %v610_v28 = vpop.permute.xlu0 %609  ;;  %v719_v33 = vsel %vm535_vm3, %v689_v27, 0.0 }
 0x3a1   : > { %v637_v30 = vsel %vm535_vm3, %v610_v28, 0.0 }
 0x3a2   : > { %708 = vadd.xlane.f32.xlu0 %v707_v29  ;;  %638 = vadd.xlane.f32.xlu1 %v637_v30 }
 0x3a3   : > { %v604_v31 = vpop.permute.xlu1 %603 }
 0x3a4   : > { %v675_v32 = vpop.permute.xlu0 %674  ;;  %v628_v41 = vsel %vm535_vm3, %v604_v31, 0.0 }
 0x3a5   : > { %v698_v34 = vsel %vm535_vm3, %v675_v32, 0.0 }
 0x3a6   : > { %720 = vadd.xlane.f32.xlu0 %v719_v33  ;;  %699 = vadd.xlane.f32.xlu1 %v698_v34 }
 0x3a7   : > { %v612_v35 = vpop.permute.xlu1 %611 }
 0x3a8   : > { %v683_v36 = vpop.permute.xlu0 %682  ;;  %v640_v37 = vsel %vm535_vm3, %v612_v35, 0.0 }
 0x3a9   : > { %v710_v38 = vsel %vm535_vm3, %v683_v36, 0.0 }
 0x3aa   : > { %641 = vadd.xlane.f32.xlu0 %v640_v37  ;;  %711 = vadd.xlane.f32.xlu1 %v710_v38 }
 0x3ab   : > { %v677_v39 = vpop.permute.xlu1 %676 }
 0x3ac   : > { %v701_v40 = vsel %vm535_vm3, %v677_v39, 0.0  ;;  %v733_v44 = vpop.permute.xlu0 %732 }
 0x3ae   : > { %702 = vadd.xlane.f32.xlu0 %v701_v40  ;;  %629 = vadd.xlane.f32.xlu1 %v628_v41 }
 0x3af   : > { %v685_v42 = vpop.permute.xlu1 %684 }
 0x3b0   : > { %v713_v43 = vsel %vm535_vm3, %v685_v42, 0.0 }
 0x3b2   : > { %714 = vadd.xlane.f32.xlu0 %v713_v43 }
 0x3bf   : > { %744 = vrot.lane.b32.xlu1 %v1117_v54, %s981_s18 }
 0x3c8   : > { %742 = vrot.lane.b32.xlu0 %v1112_v52, %s981_s18 }
 0x41f   : > { %v633_v45 = vpop.xlane.xlu0 %632 }
 0x420   : > { %v756_v48 = vsel %vm535_vm3, %v735_v7, %v633_v45 }
 0x423   : > { %v645_v46 = vpop.xlane.xlu1 %644  ;;  %v627_v47 = vpop.xlane.xlu0 %626 }
 0x424   : > { %v754_v60 = vsel %vm535_vm3, %v1139_v8, %v627_v47 }
 0x427   : > { %v706_v49 = vpop.xlane.xlu1 %705  ;;  %v636_v50 = vpop.xlane.xlu0 %635 }
 0x428   : > { %v765_v51 = vsel %vm762_vm4, %v756_v48, %v706_v49  ;;  %v757_v52 = vsel %vm535_vm3, %v1141_v9, %v636_v50 }
 0x429   : > { %v774_v53 = vsel %vm771_vm5, %v765_v51, 0.0 }
 0x42a   : > { %785 = vst [vmem:[%s1047_s17 + $0x28] sm:$0xff] %v774_v53 }
 0x42b   : > { %v718_v54 = vpop.xlane.xlu1 %717  ;;  %v648_v55 = vpop.xlane.xlu0 %647 }
 0x42f   : > { %v639_v56 = vpop.xlane.xlu1 %638  ;;  %v709_v57 = vpop.xlane.xlu0 %708 }
 0x430   : > { %v766_v58 = vsel %vm762_vm4, %v757_v52, %v709_v57  ;;  %v758_v1 = vsel %vm535_vm3, %v1143_v11, %v639_v56 }
 0x431   : > { %v775_v59 = vsel %vm771_vm5, %v766_v58, 0.0 }
 0x432   : > { %787 = vst [vmem:[%s1047_s17 + $0x38] sm:$0xff] %v775_v59 }
 0x433   : > { %v700_v61 = vpop.xlane.xlu1 %699  ;;  %v721_v62 = vpop.xlane.xlu0 %720 }
 0x434   : > { %v763_v63 = vsel %vm762_vm4, %v754_v60, %v700_v61 }
 0x435   : > { %v772_v0 = vsel %vm771_vm5, %v763_v63, 0.0 }
 0x436   : > { %781 = vst [vmem:[%s1047_s17 + $0x8] sm:$0xff] %v772_v0 }
 0x437   : > { %v712_v2 = vpop.xlane.xlu1 %711  ;;  %v642_v3 = vpop.xlane.xlu0 %641 }
 0x438   : > { %v767_v4 = vsel %vm762_vm4, %v758_v1, %v712_v2  ;;  %v759_v11 = vsel %vm535_vm3, %v1145_v12, %v642_v3 }
 0x439   : > { %v776_v5 = vsel %vm771_vm5, %v767_v4, 0.0 }
 0x43a   : > { %789 = vst [vmem:[%s1047_s17 + $0x48] sm:$0xff] %v776_v5 }
 0x43b   : > { %v630_v6 = vpop.xlane.xlu1 %629  ;;  %v703_v7 = vpop.xlane.xlu0 %702 }
 0x43c   : > { %v755_v8 = vsel %vm535_vm3, %v733_v44, %v630_v6 }
 0x43d   : > { %v764_v9 = vsel %vm762_vm4, %v755_v8, %v703_v7 }
 0x43e   : > { %v773_v10 = vsel %vm771_vm5, %v764_v9, 0.0 }
 0x43f   : > { %783 = vst [vmem:[%s1047_s17 + $0x18] sm:$0xff] %v773_v10  ;;  %v745_v13 = vpop.permute.xlu1 %744  ;;  %v715_v14 = vpop.xlane.xlu0 %714 }
 0x440   : > { %v761_v15 = vsel %vm535_vm3, %v745_v13, %v648_v55  ;;  %v768_v16 = vsel %vm762_vm4, %v759_v11, %v715_v14 }
 0x441   : > { %v770_v17 = vsel %vm762_vm4, %v761_v15, %v721_v62  ;;  %v777_v18 = vsel %vm771_vm5, %v768_v16, 0.0 }
 0x442   : > { %v779_v19 = vsel %vm771_vm5, %v770_v17, 0.0  ;;  %791 = vst [vmem:[%s1047_s17 + $0x58] sm:$0xff] %v777_v18 }
 0x443   : > { %795 = vst [vmem:[%s1047_s17 + $0x78] sm:$0xff] %v779_v19  ;;  %v743_v20 = vpop.permute.xlu0 %742 }
 0x444   : > { %v760_v21 = vsel %vm535_vm3, %v743_v20, %v645_v46 }
 0x445   : > { %v769_v12 = vsel %vm762_vm4, %v760_v21, %v718_v54 }
 0x446   : > { %v778_v22 = vsel %vm771_vm5, %v769_v12, 0.0 }
 0x447   : > { %793 = vst [vmem:[%s1047_s17 + $0x68] sm:$0xff] %v778_v22 }
 0x448 PF: > { %s16_s21 = sadd.s32 1, %s978_s21  }
 0x449   : > { %p13_p4 = scmp.ge.s32.totalorder %s16_s21, 4  }
 0x44b   :  { %15 = sbr.rel (!%p13_p4) target bundleno = 1 (0x1), region = 77 }

// kernel: esmfold_forward.3
= control target key start
LH: loop header
LB: loop body
LE: loop exit
PB: predicated region body
PF: predicated region fallthrough
CT: control target
= control target key end

     0   :  { %s997_s17 = smov 0   ;;  %s1106_s0 = inlined_call_operand.vmem [shape: f32[16,128], index: 0, kind: input, shape index: {}]   ;;  %s1107_s1 = inlined_call_operand.vmem [shape: f32[16,32], index: 1, kind: input, shape index: {}]   ;;  %s1108_s2 = inlined_call_operand.vmem [shape: bf16[128,32], index: 2, kind: input, shape index: {}]   ;;  %s1109_s3 = inlined_call_operand.vmem [shape: f32[1,32], index: 3, kind: input, shape index: {}]   ;;  %s1110_s4 = inlined_call_operand.vmem [shape: f32[1,32], index: 4, kind: input, shape index: {}]   ;;  %s1111_s5 = inlined_call_operand.vmem [shape: bf16[32,32], index: 5, kind: input, shape index: {}]   ;;  %s1112_s6 = inlined_call_operand.vmem [shape: f32[1,32], index: 6, kind: input, shape index: {}]   ;;  %s1113_s7 = inlined_call_operand.vmem [shape: bf16[32,32], index: 7, kind: input, shape index: {}]   ;;  %s1114_s8 = inlined_call_operand.vmem [shape: f32[1,32], index: 8, kind: input, shape index: {}]   ;;  %s1115_s9 = inlined_call_operand.vmem [shape: bf16[32,128], index: 9, kind: input, shape index: {}]   ;;  %s1116_s10 = inlined_call_operand.vmem [shape: f32[1,128], index: 10, kind: input, shape index: {}]   ;;  %s1117_s11 = inlined_call_operand.vmem [shape: f32[16,128], index: 11, kind: output, shape index: {}]  }
   0x1 LB: > { %s807_s18 = sadd.s32 4294967295, %s933_s17   ;;  %p811_p0 = scmp.ge.s32.totalorder %s933_s17, 1  ;;  %s933_s17 = sphi %s997_s17, %s21_s17  }
   0x2   : > { %p345_p1 = scmp.lt.s32.totalorder %s933_s17, 3 }
   0x4   : > { %p346_p2 = pnand %p811_p0, %p345_p1 }
   0x5   : > { %v911_v0 = vld [vmem:[%s1108_s2] sm:$0xff] (!%p346_p2)   ;;  %v935_v1 = vmov (!%p346_p2), 0.0   ;;  %v912_v2 = vld [vmem:[%s1108_s2 + $0x8] sm:$0xff] (!%p346_p2)   ;;  %vm936_vm0 = vmmov (!%p346_p2), 0   ;;  %v913_v3 = vld [vmem:[%s1108_s2 + $0x10] sm:$0xff] (!%p346_p2)   ;;  %p387_p3 = scmp.lt.s32.totalorder (!%p346_p2), %s807_s18, 1 }
   0x6   : > { %349 = sbr.rel (%p346_p2) target bundleno = 1216 (0x4c0), region = 64  ;;  %857 = vmatprep.subr.bf16.mxu0 (!%p346_p2), %v935_v1  ;;  %877 = vmatprep.subr.bf16.mxu1 (!%p346_p2), %v935_v1  ;;  %v914_v4 = vld [vmem:[%s1108_s2 + $0x18] sm:$0xff] (!%p346_p2)   ;;  %v915_v5 = vld [vmem:[%s1108_s2 + $0x20] sm:$0xff] (!%p346_p2)   ;;  %v916_v6 = vld [vmem:[%s1108_s2 + $0x28] sm:$0xff] (!%p346_p2)   ;;  %vm506_vm1 = vcmask (!%p346_p2), 261120  }
   0x7   : > { %858 = vmatpush3.bf16.msra.mxu0 (!%p346_p2), %v911_v0  ;;  %873 = vmatprep.mubr.msk.bf16.mxu0 (!%p346_p2), %vm936_vm0, %v935_v1  ;;  %v917_v7 = vld [vmem:[%s1108_s2 + $0x30] sm:$0xff] (!%p346_p2)   ;;  %v918_v8 = vld [vmem:[%s1108_s2 + $0x38] sm:$0xff] (!%p346_p2)   ;;  %v919_v21 = vld [vmem:[%s1111_s5] sm:$0xff] (!%p346_p2)  }
   0x8   : > { %859 = vmatprep.subr.bf16.mxu0 (!%p346_p2), %v935_v1  ;;  %881 = vmatprep.mubr.msk.bf16.mxu1 (!%p346_p2), %vm936_vm0, %v935_v1  ;;  %v920_v22 = vld [vmem:[%s1111_s5 + $0x8] sm:$0xff] (!%p346_p2)   ;;  %v823_v27 = vld [vmem:[%s1109_s3] ss:$0 sm:$0xff] (!%p346_p2) }
   0x9   : > { %878 = vmatpush3.bf16.msra.mxu1 (!%p346_p2), %v919_v21  ;;  %v824_v29 = vld [vmem:[%s1110_s4] ss:$0 sm:$0xff] (!%p346_p2)  ;;  %v922_v34 = vld [vmem:[%s1113_s7 + $0x8] sm:$0xff] (!%p346_p2)  }
   0xa   : > { %879 = vmatprep.subr.bf16.mxu1 (!%p346_p2), %v935_v1  ;;  %v921_v32 = vld [vmem:[%s1113_s7] sm:$0xff] (!%p346_p2)   ;;  %v924_v44 = vld [vmem:[%s1115_s9 + $0x8] sm:$0xff] (!%p346_p2)  }
   0xb   : > { %860 = vmatpush3.bf16.msra.mxu0 (!%p346_p2), %v912_v2  ;;  %v825_v35 = vld [vmem:[%s1112_s6] ss:$0 sm:$0xff] (!%p346_p2) }
   0xc   : > { %861 = vmatprep.subr.bf16.mxu0 (!%p346_p2), %v935_v1  ;;  %v923_v42 = vld [vmem:[%s1115_s9] sm:$0xff] (!%p346_p2)  }
   0xd   : > { %s1119_s18 = smov (!%p387_p3, %s807_s18), 1  ;;  %880 = vmatpush3.bf16.msra.mxu1 %v920_v22  ;;  %v829_v45 = vld [vmem:[%s1114_s8] ss:$0 sm:$0xff] }
   0xe   : > { %s1034_s12 = sshll.u32 %s1119_s18, 3  ;;  %885 = vmatprep.subr.bf16.mxu1 %v935_v1  ;;  %v833_v54 = vld [vmem:[%s1116_s10] ss:$0 sm:$0xff] }
   0xf   : > { %862 = vmatpush3.bf16.msra.mxu0 %v913_v3  ;;  %s390_s19 = scalar_lea.vmem %s1106_s0, %s1034_s12  ;;  %s394_s24 = scalar_lea.vmem %s1107_s1, %s1034_s12 }
  0x10   : > { %863 = vmatprep.subr.bf16.mxu0 %v935_v1  ;;  %v400_v9 = vld [vmem:[%s390_s19] sm:$0xff]  ;;  %s398_s13 = scalar_lea.vmem %s1117_s11, %s1034_s12 }
  0x11   : > { %v401_v10 = vpack.c.bf16 %v400_v9, %v400_v9  ;;  %v672_v47 = vld [vmem:[%s394_s24] sm:$0xff] }
  0x13   : > { %864 = vmatpush3.bf16.msra.mxu0 %v914_v4 }
  0x14   : > { %865 = vmatprep.subr.bf16.mxu0 %v935_v1 }
  0x17   : > { %866 = vmatpush3.bf16.msra.mxu0 %v915_v5 }
  0x18   : > { %867 = vmatprep.subr.bf16.mxu0 %v935_v1 }
  0x1b   : > { %868 = vmatpush3.bf16.msra.mxu0 %v916_v6 }
  0x1c   : > { %869 = vmatprep.subr.bf16.mxu0 %v935_v1 }
  0x1f   : > { %870 = vmatpush3.bf16.msra.mxu0 %v917_v7 }
  0x20   : > { %871 = vmatprep.subr.bf16.mxu0 %v935_v1 }
  0x23   : > { %872 = vmatpush3.bf16.msra.mxu0 %v918_v8 }
  0x26   : > { %874 = vmatmul.mubr.bf16.vlgmr.msra.gmra.mrb[0].mxu0 %v401_v10 }
  0xf9   : > { %v500_v11 = vpop.f32.mrb[0].mxu0 }
  0xfa   : > { %v875_v12 = vpop.f32.mrb[1].mxu0  ;;  %v507_v13 = vsel %vm506_vm1, %v500_v11, 0.0 }
  0xfb   : > { %508 = vadd.xlane.f32.xlu0 %v507_v13  ;;  %v503_v14 = vpop.f32.mrb[2].mxu0 }
  0xfc   : > { %v876_v15 = vpop.f32.mrb[3].mxu0 }
 0x188   : > { %v509_v16 = vpop.xlane.xlu0 %508 }
 0x189   : > { %v511_v17 = vmul.f32 0.03125, %v509_v16 }
 0x18b   : > { %v512_v18 = vsub.f32 %v500_v11, %v511_v17 }
 0x18d   : > { %v513_v19 = vmul.f32 %v512_v18, %v512_v18 }
 0x18f   : > { %v514_v20 = vsel %vm506_vm1, %v513_v19, 0.0 }
 0x190   : > { %515 = vadd.xlane.f32.xlu0 %v514_v20 }
 0x21d   : > { %v516_v23 = vpop.xlane.xlu0 %515 }
 0x21e   : > { %v517_v24 = vmul.f32 0.03125, %v516_v23 }
 0x220   : > { %v518_v25 = vadd.f32 1e-05, %v517_v24 }
 0x222   : > { %925 = vrsqrt.f32 %v518_v25 }
 0x22c   : > { %v926_v26 = vpop.eup %925 }
 0x22d   : > { %v520_v28 = vmul.f32 %v926_v26, %v512_v18 }
 0x22f   : > { %v528_v30 = vmul.f32 %v823_v27, %v520_v28 }
 0x231   : > { %v536_v31 = vadd.f32 %v824_v29, %v528_v30 }
 0x233   : > { %v537_v33 = vpack.c.bf16 %v536_v31, %v536_v31 }
 0x235   : > { %882 = vmatmul.mubr.msk.bf16.vlgmr.msra.gmra.mrb[0].mxu1 %vm506_vm1, %v537_v33 }
 0x236   : > { %886 = vmatpush3.bf16.msra.mxu1 %v921_v32  ;;  %889 = vmatprep.mubr.msk.bf16.mxu1 %vm936_vm0, %v935_v1 }
 0x237   : > { %887 = vmatprep.subr.bf16.mxu1 %v935_v1 }
 0x23a   : > { %888 = vmatpush3.bf16.msra.mxu1 %v922_v34 }
 0x23b   : > { %893 = vmatprep.subr.bf16.mxu1 %v935_v1 }
 0x308   : > { %v598_v36 = vpop.f32.mrb[0].mxu1 }
 0x309   : > { %v599_v37 = vadd.f32 %v825_v35, %v598_v36  ;;  %v883_v38 = vpop.f32.mrb[1].mxu1 }
 0x30a   : > { %v601_v39 = vpop.f32.mrb[2].mxu1 }
 0x30b   : > { %v604_v40 = vmax.f32 %v599_v37, 0.0  ;;  %v884_v41 = vpop.f32.mrb[3].mxu1 }
 0x30d   : > { %v605_v43 = vpack.c.bf16 %v604_v40, %v604_v40 }
 0x30f   : > { %890 = vmatmul.mubr.msk.bf16.vlgmr.msra.gmra.mrb[4].mxu1 %vm506_vm1, %v605_v43 }
 0x310   : > { %894 = vmatpush3.bf16.msra.mxu1 %v923_v42  ;;  %897 = vmatprep.mubr.msk.bf16.mxu1 %vm936_vm0, %v935_v1 }
 0x311   : > { %895 = vmatprep.subr.bf16.mxu1 %v935_v1 }
 0x314   : > { %896 = vmatpush3.bf16.msra.mxu1 %v924_v44 }
 0x3e2   : > { %v666_v46 = vpop.f32.mrb[4].mxu1 }
 0x3e3   : > { %v667_v48 = vadd.f32 %v829_v45, %v666_v46  ;;  %v891_v49 = vpop.f32.mrb[5].mxu1 }
 0x3e4   : > { %v669_v50 = vpop.f32.mrb[6].mxu1 }
 0x3e5   : > { %v673_v51 = vadd.f32 %v672_v47, %v667_v48  ;;  %v892_v52 = vpop.f32.mrb[7].mxu1 }
 0x3e7   : > { %v674_v53 = vpack.c.bf16 %v673_v51, %v673_v51 }
 0x3e9   : > { %898 = vmatmul.mubr.msk.bf16.vlgmr.msra.gmra.mrb[8].mxu1 %vm506_vm1, %v674_v53 }
 0x4bc   : > { %v735_v55 = vpop.f32.mrb[8].mxu1 }
 0x4bd   : > { %v736_v56 = vadd.f32 %v833_v54, %v735_v55  ;;  %v899_v57 = vpop.f32.mrb[9].mxu1 }
 0x4be   : > { %v738_v58 = vpop.f32.mrb[10].mxu1 }
 0x4bf   : > { %741 = vst [vmem:[%s398_s13] sm:$0xff] %v736_v56  ;;  %v900_v59 = vpop.f32.mrb[11].mxu1 }
 0x4c0 PF: > { %s21_s17 = sadd.s32 1, %s933_s17  }
 0x4c1   : > { %p18_p4 = scmp.ge.s32.totalorder %s21_s17, 4  }
 0x4c3   :  { %20 = sbr.rel (!%p18_p4) target bundleno = 1 (0x1), region = 97 }

// kernel: esmfold_forward.5
= control target key start
LH: loop header
LB: loop body
LE: loop exit
PB: predicated region body
PF: predicated region fallthrough
CT: control target
= control target key end

     0   :  { %s2878_s24 = smov 0   ;;  %s3989_s0 = inlined_call_operand.vmem [shape: f32[32,32], index: 0, kind: input, shape index: {}]   ;;  %s3990_s1 = inlined_call_operand.vmem [shape: f32[1,32], index: 1, kind: input, shape index: {}]   ;;  %s3991_s2 = inlined_call_operand.vmem [shape: f32[1,32], index: 2, kind: input, shape index: {}]   ;;  %s3992_s3 = inlined_call_operand.vmem [shape: bf16[32,1920], index: 3, kind: input, shape index: {}]   ;;  %s3993_s4 = inlined_call_operand.vmem [shape: f32[1,1920], index: 4, kind: input, shape index: {}]   ;;  %s3994_s5 = inlined_call_operand.vmem [shape: f32[1920,128], index: 5, kind: input, shape index: {}]   ;;  %s3995_s6 = inlined_call_operand.vmem [shape: f32[32,1920], index: 6, kind: output, shape index: {0}]   ;;  %s3996_s7 = inlined_call_operand.vmem [shape: f32[32,128], index: 7, kind: output, shape index: {1}]  }
   0x1 LB: > { %s2059_s25 = sadd.s32 4294967295, %s2832_s24   ;;  %p2063_p0 = scmp.ge.s32.totalorder %s2832_s24, 1  ;;  %s2832_s24 = sphi %s2878_s24, %s18_s24  }
   0x2   : > { %p241_p1 = scmp.lt.s32.totalorder %s2832_s24, 3 }
   0x4   : > { %p242_p2 = pnand %p2063_p0, %p241_p1 }
   0x5   : > { %s2064_s26 = sshll.u32 (!%p242_p2), %s2059_s25, 1  ;;  %vm301_vm0 = vcmask (!%p242_p2), 261120   ;;  %v2711_v14 = vld [vmem:[%s3992_s3 + $0x4] ss:$60 sps:$4 sm:$0xff] (!%p242_p2)   ;;  %v2714_v15 = vld [vmem:[%s3992_s3 + $0xc] ss:$60 sps:$4 sm:$0xff] (!%p242_p2)  }
   0x6   : > { %245 = sbr.rel (%p242_p2) target bundleno = 1190 (0x4a6), region = 44  ;;  %p280_p3 = scmp.lt.s32.totalorder (!%p242_p2), %s2064_s26, 3  ;;  %v2713_v16 = vld [vmem:[%s3992_s3] ss:$60 sps:$4 sm:$0xff] (!%p242_p2)   ;;  %v2716_v17 = vld [vmem:[%s3992_s3 + $0x8] ss:$60 sps:$4 sm:$0xff] (!%p242_p2)   ;;  %614 = vmatprep.subr.bf16.mxu0 (!%p242_p2), %v2711_v14  ;;  %657 = vmatprep.subr.bf16.mxu1 (!%p242_p2), %v2714_v15 }
   0x7   : > { %615 = vmatpush1.bf16.msra.mxu0 (!%p242_p2), %v2713_v16  ;;  %658 = vmatpush1.bf16.msra.mxu1 (!%p242_p2), %v2716_v17  ;;  %v2717_v18 = vld [vmem:[%s3992_s3 + $0x7c] ss:$60 sps:$4 sm:$0xff] (!%p242_p2)   ;;  %v2720_v19 = vld [vmem:[%s3992_s3 + $0x84] ss:$60 sps:$4 sm:$0xff] (!%p242_p2)   ;;  %v2725_v22 = vld [vmem:[%s3992_s3 + $0x14] ss:$60 sps:$4 sm:$0xff] (!%p242_p2)  }
   0x8   : > { %v2719_v20 = vld [vmem:[%s3992_s3 + $0x78] ss:$60 sps:$4 sm:$0xff] (!%p242_p2)   ;;  %v2722_v21 = vld [vmem:[%s3992_s3 + $0x80] ss:$60 sps:$4 sm:$0xff] (!%p242_p2)   ;;  %616 = vmatprep.subr.bf16.mxu0 (!%p242_p2), %v2717_v18  ;;  %659 = vmatprep.subr.bf16.mxu1 (!%p242_p2), %v2720_v19  ;;  %v2834_v23 = vmov (!%p242_p2), 0   ;;  %v2835_v59 = vmov (!%p242_p2), 0.0  }
   0x9   : > { %646 = vmatprep.mubr.bf16.mxu0 (!%p242_p2), %v2834_v23  ;;  %689 = vmatprep.mubr.bf16.mxu1 (!%p242_p2), %v2834_v23  ;;  %v2728_v24 = vld [vmem:[%s3992_s3 + $0x1c] ss:$60 sps:$4 sm:$0xff] (!%p242_p2)   ;;  %v2070_v33 = vld [vmem:[%s3990_s1] ss:$0 sm:$0xff] (!%p242_p2)  ;;  %v2723_v41 = vld [vmem:[%s3992_s3 + $0x10] ss:$60 sps:$4 sm:$0xff] (!%p242_p2)  }
   0xa   : > { %v2071_v37 = vld [vmem:[%s3991_s2] ss:$0 sm:$0xff] (!%p242_p2)  ;;  %v2726_v42 = vld [vmem:[%s3992_s3 + $0x18] ss:$60 sps:$4 sm:$0xff] (!%p242_p2)   ;;  %v2731_v44 = vld [vmem:[%s3992_s3 + $0x8c] ss:$60 sps:$4 sm:$0xff] (!%p242_p2)  }
   0xb   : > { %617 = vmatpush1.bf16.msra.mxu0 (!%p242_p2), %v2719_v20  ;;  %660 = vmatpush1.bf16.msra.mxu1 (!%p242_p2), %v2722_v21  ;;  %v2734_v45 = vld [vmem:[%s3992_s3 + $0x94] ss:$60 sps:$4 sm:$0xff] (!%p242_p2)   ;;  %v2729_v46 = vld [vmem:[%s3992_s3 + $0x88] ss:$60 sps:$4 sm:$0xff] (!%p242_p2)   ;;  %v2735_v50 = vld [vmem:[%s3992_s3 + $0x20] ss:$60 sps:$4 sm:$0xff] (!%p242_p2)  }
   0xc   : > { %700 = vmatprep.subr.bf16.mxu0 (!%p242_p2), %v2725_v22  ;;  %743 = vmatprep.subr.bf16.mxu1 (!%p242_p2), %v2728_v24  ;;  %v2732_v47 = vld [vmem:[%s3992_s3 + $0x90] ss:$60 sps:$4 sm:$0xff] (!%p242_p2)   ;;  %v2737_v48 = vld [vmem:[%s3992_s3 + $0x24] ss:$60 sps:$4 sm:$0xff] (!%p242_p2)   ;;  %v2743_v52 = vld [vmem:[%s3992_s3 + $0x9c] ss:$60 sps:$4 sm:$0xff] (!%p242_p2)  }
   0xd   : > { %s3998_s26 = smov (!%p280_p3, %s2064_s26), 3  ;;  %v2740_v49 = vld [vmem:[%s3992_s3 + $0x2c] ss:$60 sps:$4 sm:$0xff]   ;;  %v2746_v53 = vld [vmem:[%s3992_s3 + $0xa4] ss:$60 sps:$4 sm:$0xff]   ;;  %vm2836_vm1 = vmmov 0  }
   0xe   : > { %s2065_s27 = sshll.u32 %s3998_s26, 3  ;;  %v2738_v51 = vld [vmem:[%s3992_s3 + $0x28] ss:$60 sps:$4 sm:$0xff]   ;;  %v2741_v54 = vld [vmem:[%s3992_s3 + $0x98] ss:$60 sps:$4 sm:$0xff]   ;;  %s2698_s29 = smul.u32 120, %s3998_s26 }
   0xf   : > { %s283_s30 = scalar_lea.vmem %s3989_s0, %s2065_s27  ;;  %v2744_v55 = vld [vmem:[%s3992_s3 + $0xa0] ss:$60 sps:$4 sm:$0xff]   ;;  %v2749_v56 = vld [vmem:[%s3992_s3 + $0x34] ss:$60 sps:$4 sm:$0xff]   ;;  %v2753_v60 = vld [vmem:[%s3992_s3 + $0xac] ss:$60 sps:$4 sm:$0xff]   ;;  %s296_s23 = scalar_lea.vmem %s3996_s7, %s2065_s27 }
  0x10   : > { %v299_v0 = vld [vmem:[%s283_s30] sm:$0xff]  ;;  %v300_v1 = vld [vmem:[%s283_s30 + $0x8] sm:$0xff]  ;;  %v2750_v58 = vld [vmem:[%s3992_s3 + $0x38] ss:$60 sps:$4 sm:$0xff]   ;;  %s3138_s9 = scalar_lea.vmem %s3995_s6, %s2698_s29  ;;  %s2837_s20 = smov 91   ;;  %vm1962_vm2 = vcmask 302080  }
  0x11   : > { %v302_v2 = vsel %vm301_vm0, %v299_v0, 0.0  ;;  %v305_v3 = vsel %vm301_vm0, %v300_v1, 0.0  ;;  %v2747_v57 = vld [vmem:[%s3992_s3 + $0x30] ss:$60 sps:$4 sm:$0xff]   ;;  %v2751_v61 = vld [vmem:[%s3992_s3 + $0xa8] ss:$60 sps:$4 sm:$0xff]  }
  0x12   : > { %303 = vadd.xlane.f32.xlu0 %v302_v2  ;;  %v2754_v62 = vld [vmem:[%s3992_s3 + $0xb0] ss:$60 sps:$4 sm:$0xff]   ;;  %v1124_v63 = vld [vmem:[%s3994_s5 + $0x80] sm:$0xff]  ;;  %v1159_v14 = vld [vmem:[%s3994_s5 + $0x198] sm:$0xff] }
  0x13   : > { %v1110_v17 = vld [vmem:[%s3994_s5 + $0x10] sm:$0xff]  ;;  %v1111_v18 = vld [vmem:[%s3994_s5 + $0x18] sm:$0xff]  ;;  %v1128_v22 = vld [vmem:[%s3994_s5 + $0xa0] sm:$0xff] }
  0x14   : > { %v1142_v19 = vld [vmem:[%s3994_s5 + $0x110] sm:$0xff]  ;;  %v2448_v20 = vpack.c.bf16 %v1111_v18, %v1110_v17  ;;  %v1143_v21 = vld [vmem:[%s3994_s5 + $0x118] sm:$0xff] }
  0x15   : > { %v2480_v24 = vpack.c.bf16 %v1143_v21, %v1142_v19 }
  0x16   : > { %306 = vadd.xlane.f32.xlu0 %v305_v3  ;;  %v1157_v3 = vld [vmem:[%s3994_s5 + $0x188] sm:$0xff] }
  0x9f   : > { %v304_v4 = vpop.xlane.xlu0 %303 }
  0xa0   : > { %v309_v5 = vmul.f32 0.03125, %v304_v4  ;;  %v1108_v4 = vld [vmem:[%s3994_s5] sm:$0xff] }
  0xa2   : > { %v311_v6 = vsub.f32 %v299_v0, %v309_v5  ;;  %v1125_v0 = vld [vmem:[%s3994_s5 + $0x88] sm:$0xff] }
  0xa3   : > { %v307_v7 = vpop.xlane.xlu0 %306  ;;  %v2442_v2 = vpack.c.bf16 %v1125_v0, %v1124_v63  ;;  %v1109_v5 = vld [vmem:[%s3994_s5 + $0x8] sm:$0xff] }
  0xa4   : > { %v310_v8 = vmul.f32 0.03125, %v307_v7  ;;  %v313_v9 = vmul.f32 %v311_v6, %v311_v6  ;;  %v2444_v7 = vpack.c.bf16 %v1109_v5, %v1108_v4 }
  0xa6   : > { %v312_v10 = vsub.f32 %v300_v1, %v310_v8  ;;  %v315_v11 = vsel %vm301_vm0, %v313_v9, 0.0  ;;  %v1156_v1 = vld [vmem:[%s3994_s5 + $0x180] sm:$0xff]  ;;  %v1141_v9 = vld [vmem:[%s3994_s5 + $0x108] sm:$0xff] }
  0xa7   : > { %316 = vadd.xlane.f32.xlu1 %v315_v11  ;;  %v1140_v8 = vld [vmem:[%s3994_s5 + $0x100] sm:$0xff] }
  0xa8   : > { %v314_v12 = vmul.f32 %v312_v10, %v312_v10  ;;  %v2476_v11 = vpack.c.bf16 %v1141_v9, %v1140_v8 }
  0xaa   : > { %v318_v13 = vsel %vm301_vm0, %v314_v12, 0.0  ;;  %v1127_v12 = vld [vmem:[%s3994_s5 + $0x98] sm:$0xff] }
  0xab   : > { %319 = vadd.xlane.f32.xlu1 %v318_v13  ;;  %v1158_v13 = vld [vmem:[%s3994_s5 + $0x190] sm:$0xff] }
  0xac   : > { %v2478_v16 = vpack.c.bf16 %v1159_v14, %v1158_v13 }
 0x134   : > { %v317_v25 = vpop.xlane.xlu1 %316 }
 0x135   : > { %v321_v26 = vmul.f32 0.03125, %v317_v25 }
 0x137   : > { %v323_v27 = vadd.f32 1e-05, %v321_v26  ;;  %v1160_v26 = vld [vmem:[%s3994_s5 + $0x1a0] sm:$0xff] }
 0x138   : > { %v320_v28 = vpop.xlane.xlu1 %319 }
 0x139   : > { %2755 = vrsqrt.f32 %v323_v27  ;;  %v322_v29 = vmul.f32 0.03125, %v320_v28  ;;  %v1161_v27 = vld [vmem:[%s3994_s5 + $0x1a8] sm:$0xff]  ;;  %v1112_v28 = vld [vmem:[%s3994_s5 + $0x20] sm:$0xff] }
 0x13b   : > { %v324_v30 = vadd.f32 1e-05, %v322_v29  ;;  %v2482_v29 = vpack.c.bf16 %v1161_v27, %v1160_v26 }
 0x13d   : > { %2757 = vrsqrt.f32 %v324_v30  ;;  %v1113_v30 = vld [vmem:[%s3994_s5 + $0x28] sm:$0xff] }
 0x143   : > { %v2756_v31 = vpop.eup %2755 }
 0x144   : > { %v327_v32 = vmul.f32 %v2756_v31, %v311_v6  ;;  %v2474_v6 = vpack.c.bf16 %v1157_v3, %v1156_v1  ;;  %v1144_v31 = vld [vmem:[%s3994_s5 + $0x120] sm:$0xff] }
 0x146   : > { %v336_v35 = vmul.f32 %v2070_v33, %v327_v32  ;;  %v1145_v32 = vld [vmem:[%s3994_s5 + $0x128] sm:$0xff] }
 0x147   : > { %v2758_v34 = vpop.eup %2757 }
 0x148   : > { %v328_v36 = vmul.f32 %v2758_v34, %v312_v10  ;;  %v345_v39 = vadd.f32 %v2071_v37, %v336_v35  ;;  %v1126_v10 = vld [vmem:[%s3994_s5 + $0x90] sm:$0xff]  ;;  %v1131_v35 = vld [vmem:[%s3994_s5 + $0xb8] sm:$0xff] }
 0x149   : > { %v2446_v15 = vpack.c.bf16 %v1127_v12, %v1126_v10  ;;  %v1130_v34 = vld [vmem:[%s3994_s5 + $0xb0] sm:$0xff] }
 0x14a   : > { %v337_v38 = vmul.f32 %v2070_v33, %v328_v36  ;;  %v2452_v33 = vpack.c.bf16 %v1113_v30, %v1112_v28  ;;  %v1162_v36 = vld [vmem:[%s3994_s5 + $0x1b0] sm:$0xff] }
 0x14c   : > { %v346_v40 = vadd.f32 %v2071_v37, %v337_v38  ;;  %v2484_v37 = vpack.c.bf16 %v1145_v32, %v1144_v31  ;;  %v2454_v38 = vpack.c.bf16 %v1131_v35, %v1130_v34  ;;  %v381_v34 = vld [vmem:[%s3993_s4 + $0x8] sm:$0xff] }
 0x14e   : > { %v347_v43 = vpack.c.bf16 %v346_v40, %v345_v39  ;;  %v1163_v39 = vld [vmem:[%s3994_s5 + $0x1b8] sm:$0xff]  ;;  %v1114_v40 = vld [vmem:[%s3994_s5 + $0x30] sm:$0xff] }
 0x150   : > { %2102 = vmatmul.mubr.msk.bf16.vlgmr.msra.gmra.mrb[0].mxu0 %vm301_vm0, %v347_v43  ;;  %2103 = vmatmul.mubr.msk.bf16.vlgmr.msra.gmra.mrb[0].mxu1 %vm301_vm0, %v347_v43 }
 0x151   : > { %701 = vmatpush1.bf16.msra.mxu0 %v2723_v41  ;;  %744 = vmatpush1.bf16.msra.mxu1 %v2726_v42  ;;  %v1115_v41 = vld [vmem:[%s3994_s5 + $0x38] sm:$0xff]  ;;  %v2486_v42 = vpack.c.bf16 %v1163_v39, %v1162_v36 }
 0x152   : > { %702 = vmatprep.subr.bf16.mxu0 %v2731_v44  ;;  %745 = vmatprep.subr.bf16.mxu1 %v2734_v45  ;;  %v1147_v44 = vld [vmem:[%s3994_s5 + $0x138] sm:$0xff]  ;;  %v1132_v45 = vld [vmem:[%s3994_s5 + $0xc0] sm:$0xff] }
 0x153   : > { %732 = vmatprep.mubr.bf16.mxu0 %v2834_v23  ;;  %775 = vmatprep.mubr.bf16.mxu1 %v2834_v23 }
 0x155   : > { %703 = vmatpush1.bf16.msra.mxu0 %v2729_v46  ;;  %746 = vmatpush1.bf16.msra.mxu1 %v2732_v47  ;;  %v1133_v46 = vld [vmem:[%s3994_s5 + $0xc8] sm:$0xff]  ;;  %v1164_v47 = vld [vmem:[%s3994_s5 + $0x1c0] sm:$0xff] }
 0x156   : > { %786 = vmatprep.subr.bf16.mxu0 %v2737_v48  ;;  %829 = vmatprep.subr.bf16.mxu1 %v2740_v49  ;;  %v1165_v48 = vld [vmem:[%s3994_s5 + $0x1c8] sm:$0xff]  ;;  %v2456_v49 = vpack.c.bf16 %v1115_v41, %v1114_v40 }
 0x158   : > { %2104 = vmatmul.mubr.msk.bf16.vlgmr.msra.gmra.mrb[4].mxu0 %vm301_vm0, %v347_v43  ;;  %2105 = vmatmul.mubr.msk.bf16.vlgmr.msra.gmra.mrb[4].mxu1 %vm301_vm0, %v347_v43 }
 0x159   : > { %787 = vmatpush1.bf16.msra.mxu0 %v2735_v50  ;;  %830 = vmatpush1.bf16.msra.mxu1 %v2738_v51  ;;  %v2458_v51 = vpack.c.bf16 %v1133_v46, %v1132_v45 }
 0x15a   : > { %788 = vmatprep.subr.bf16.mxu0 %v2743_v52  ;;  %831 = vmatprep.subr.bf16.mxu1 %v2746_v53  ;;  %v2490_v52 = vpack.c.bf16 %v1165_v48, %v1164_v47  ;;  %v384_v53 = vlaneseq }
 0x15b   : > { %818 = vmatprep.mubr.bf16.mxu0 %v2834_v23  ;;  %861 = vmatprep.mubr.bf16.mxu1 %v2834_v23 }
 0x15d   : > { %789 = vmatpush1.bf16.msra.mxu0 %v2741_v54  ;;  %832 = vmatpush1.bf16.msra.mxu1 %v2744_v55  ;;  %v3117_v54 = vshrl.u32 %v384_v53, 7 }
 0x15e   : > { %872 = vmatprep.subr.bf16.mxu0 %v2749_v56  ;;  %2399 = vmatprep.subr.bf16.mxu1 %v2835_v59 }
 0x15f   : > { %v386_v55 = vsub.s32 0, %v3117_v54  ;;  %v394_v56 = vsub.s32 2, %v3117_v54  ;;  %v406_v12 = vsub.s32 5, %v3117_v54  ;;  %v414_v13 = vsub.s32 7, %v3117_v54 }
 0x160   : > { %2106 = vmatmul.mubr.msk.bf16.vlgmr.msra.gmra.mrb[8].mxu0 %vm301_vm0, %v347_v43  ;;  %2107 = vmatmul.mubr.msk.bf16.vlgmr.msra.gmra.mrb[8].mxu1 %vm301_vm0, %v347_v43 }
 0x161   : > { %873 = vmatpush1.bf16.msra.mxu0 %v2747_v57  ;;  %2400 = vmatpush3.bf16.msra.mxu1 %v2750_v58  ;;  %v380_v57 = vld [vmem:[%s3993_s4] sm:$0xff]  ;;  %v390_v58 = vsub.s32 1, %v3117_v54 }
 0x162   : > { %874 = vmatprep.subr.bf16.mxu0 %v2753_v60  ;;  %2401 = vmatprep.subr.bf16.mxu1 %v2835_v59  ;;  %v387_v60 = vrot.slane %v380_v57, %v386_v55 }
 0x163   : > { %904 = vmatprep.mubr.bf16.mxu0 %v2834_v23  ;;  %2403 = vmatprep.mubr.msk.bf16.mxu1 %vm2836_vm1, %v2835_v59  ;;  %v1129_v23 = vld [vmem:[%s3994_s5 + $0xa8] sm:$0xff]  ;;  %v398_v59 = vsub.s32 3, %v3117_v54  ;;  %v423_v45 = vrot.slane %v381_v34, %v390_v58 }
 0x164   : > { %v2450_v25 = vpack.c.bf16 %v1129_v23, %v1128_v22  ;;  %v407_v22 = vrot.slane %v380_v57, %v406_v12  ;;  %v415_v23 = vrot.slane %v380_v57, %v414_v13 }
 0x165   : > { %875 = vmatpush1.bf16.msra.mxu0 %v2751_v61  ;;  %2402 = vmatpush3.bf16.msra.mxu1 %v2754_v62  ;;  %v395_v61 = vrot.slane %v380_v57, %v394_v56  ;;  %v391_v62 = vrot.slane %v380_v57, %v390_v58  ;;  %v399_v63 = vrot.slane %v380_v57, %v398_v59 }
 0x166   : > { %2443 = vmatprep.subr.bf16.mxu0 %v2442_v2  ;;  %2475 = vmatprep.subr.bf16.mxu1 %v2474_v6  ;;  %v402_v6 = vsub.s32 4, %v3117_v54  ;;  %v431_v46 = vrot.slane %v381_v34, %v398_v59 }
 0x168   : > { %2108 = vmatmul.mubr.msk.bf16.vlgmr.msra.gmra.mrb[12].mxu0 %vm301_vm0, %v347_v43  ;;  %2404 = vmatmul.mubr.msk.bf16.vlgmr.msra.gmra.mrb[12].mxu1 %vm301_vm0, %v347_v43  ;;  %v1146_v43 = vld [vmem:[%s3994_s5 + $0x130] sm:$0xff] }
 0x169   : > { %2445 = vmatpush3.bf16.msra.mxu0 %v2444_v7  ;;  %2477 = vmatpush3.bf16.msra.mxu1 %v2476_v11  ;;  %v2488_v50 = vpack.c.bf16 %v1147_v44, %v1146_v43  ;;  %v410_v7 = vsub.s32 6, %v3117_v54  ;;  %v427_v43 = vrot.slane %v381_v34, %v394_v56 }
 0x16a   : > { %2447 = vmatprep.subr.bf16.mxu0 %v2446_v15  ;;  %2479 = vmatprep.subr.bf16.mxu1 %v2478_v16 }
 0x16b   : > { %v411_v21 = vrot.slane %v380_v57, %v410_v7 }
 0x16d   : > { %2449 = vmatpush3.bf16.msra.mxu0 %v2448_v20  ;;  %2481 = vmatpush3.bf16.msra.mxu1 %v2480_v24  ;;  %v403_v20 = vrot.slane %v380_v57, %v402_v6 }
 0x16e   : > { %2451 = vmatprep.subr.bf16.mxu0 %v2450_v25  ;;  %2483 = vmatprep.subr.bf16.mxu1 %v2482_v29 }
 0x171   : > { %2453 = vmatpush3.bf16.msra.mxu0 %v2452_v33  ;;  %2485 = vmatpush3.bf16.msra.mxu1 %v2484_v37 }
 0x172   : > { %2455 = vmatprep.subr.bf16.mxu0 %v2454_v38  ;;  %2487 = vmatprep.subr.bf16.mxu1 %v2486_v42  ;;  %v419_v42 = vrot.slane %v381_v34, %v386_v55 }
 0x175   : > { %2457 = vmatpush3.bf16.msra.mxu0 %v2456_v49  ;;  %2489 = vmatpush3.bf16.msra.mxu1 %v2488_v50 }
 0x176   : > { %2459 = vmatprep.subr.bf16.mxu0 %v2458_v51  ;;  %2491 = vmatprep.subr.bf16.mxu1 %v2490_v52 }
 0x223   : > { %v648_v0 = vpop.f32.mrb[0].mxu0  ;;  %v691_v1 = vpop.f32.mrb[0].mxu1 }
 0x224   : > { %v3140_v2 = vadd.f32 %v648_v0, %v387_v60  ;;  %v3142_v3 = vadd.f32 %v691_v1, %v395_v61  ;;  %v650_v4 = vpop.f32.mrb[1].mxu0  ;;  %v693_v5 = vpop.f32.mrb[1].mxu1 }
 0x225   : > { %v3146_v8 = vadd.f32 %v650_v4, %v391_v62  ;;  %v3148_v9 = vadd.f32 %v693_v5, %v399_v63  ;;  %v652_v10 = vpop.f32.mrb[2].mxu0  ;;  %v695_v11 = vpop.f32.mrb[2].mxu1 }
 0x226   : > { %956 = vst [vmem:[%s3138_s9] sm:$0xff] %v3140_v2  ;;  %958 = vst [vmem:[%s3138_s9 + $0x10] sm:$0xff] %v3142_v3  ;;  %v3156_v14 = vadd.f32 %v652_v10, %v387_v60  ;;  %v3158_v15 = vadd.f32 %v695_v11, %v395_v61  ;;  %v654_v16 = vpop.f32.mrb[3].mxu0  ;;  %v697_v17 = vpop.f32.mrb[3].mxu1  ;;  %v986_v41 = vmax.f32 %v3140_v2, %v3142_v3 }
 0x227   : > { %957 = vst [vmem:[%s3138_s9 + $0x8] sm:$0xff] %v3146_v8  ;;  %959 = vst [vmem:[%s3138_s9 + $0x18] sm:$0xff] %v3148_v9  ;;  %v3164_v18 = vadd.f32 %v654_v16, %v391_v62  ;;  %v3166_v19 = vadd.f32 %v697_v17, %v399_v63  ;;  %v987_v44 = vmax.f32 %v3146_v8, %v3148_v9 }
 0x228   : > { %971 = vst [vmem:[%s3138_s9 + $0x78] sm:$0xff] %v3156_v14  ;;  %973 = vst [vmem:[%s3138_s9 + $0x88] sm:$0xff] %v3158_v15  ;;  %v1002_v47 = vmax.f32 %v3156_v14, %v3158_v15 }
 0x229   : > { %972 = vst [vmem:[%s3138_s9 + $0x80] sm:$0xff] %v3164_v18  ;;  %974 = vst [vmem:[%s3138_s9 + $0x90] sm:$0xff] %v3166_v19  ;;  %v1003_v49 = vmax.f32 %v3164_v18, %v3166_v19 }
 0x22b   : > { %v734_v24 = vpop.f32.mrb[4].mxu0  ;;  %v777_v25 = vpop.f32.mrb[4].mxu1 }
 0x22c   : > { %v3182_v26 = vadd.f32 %v734_v24, %v403_v20  ;;  %v3184_v27 = vadd.f32 %v777_v25, %v411_v21  ;;  %v736_v28 = vpop.f32.mrb[5].mxu0  ;;  %v779_v29 = vpop.f32.mrb[5].mxu1  ;;  %v439_v25 = vrot.slane %v381_v34, %v406_v12 }
 0x22d   : > { %v3186_v30 = vadd.f32 %v736_v28, %v407_v22  ;;  %v3188_v31 = vadd.f32 %v779_v29, %v415_v23  ;;  %v738_v32 = vpop.f32.mrb[6].mxu0  ;;  %v781_v33 = vpop.f32.mrb[6].mxu1 }
 0x22e   : > { %960 = vst [vmem:[%s3138_s9 + $0x20] sm:$0xff] %v3182_v26  ;;  %962 = vst [vmem:[%s3138_s9 + $0x30] sm:$0xff] %v3184_v27  ;;  %v3197_v35 = vadd.f32 %v738_v32, %v403_v20  ;;  %v3199_v36 = vadd.f32 %v781_v33, %v411_v21  ;;  %v740_v37 = vpop.f32.mrb[7].mxu0  ;;  %v783_v38 = vpop.f32.mrb[7].mxu1  ;;  %v988_v48 = vmax.f32 %v986_v41, %v3182_v26 }
 0x22f   : > { %961 = vst [vmem:[%s3138_s9 + $0x28] sm:$0xff] %v3186_v30  ;;  %963 = vst [vmem:[%s3138_s9 + $0x38] sm:$0xff] %v3188_v31  ;;  %v3205_v39 = vadd.f32 %v740_v37, %v407_v22  ;;  %v3207_v40 = vadd.f32 %v783_v38, %v415_v23  ;;  %v989_v50 = vmax.f32 %v987_v44, %v3186_v30 }
 0x230   : > { %975 = vst [vmem:[%s3138_s9 + $0x98] sm:$0xff] %v3197_v35  ;;  %977 = vst [vmem:[%s3138_s9 + $0xa8] sm:$0xff] %v3199_v36  ;;  %v1004_v53 = vmax.f32 %v1002_v47, %v3197_v35  ;;  %v990_v0 = vmax.f32 %v988_v48, %v3184_v27  ;;  %v435_v21 = vrot.slane %v381_v34, %v402_v6 }
 0x231   : > { %976 = vst [vmem:[%s3138_s9 + $0xa0] sm:$0xff] %v3205_v39  ;;  %978 = vst [vmem:[%s3138_s9 + $0xb0] sm:$0xff] %v3207_v40  ;;  %v1005_v59 = vmax.f32 %v1003_v49, %v3205_v39  ;;  %v991_v11 = vmax.f32 %v989_v50, %v3188_v31  ;;  %v443_v22 = vrot.slane %v381_v34, %v410_v7 }
 0x232   : > { %v1006_v17 = vmax.f32 %v1004_v53, %v3199_v36 }
 0x233   : > { %v820_v51 = vpop.f32.mrb[8].mxu0  ;;  %v863_v52 = vpop.f32.mrb[8].mxu1  ;;  %v1007_v23 = vmax.f32 %v1005_v59, %v3207_v40 }
 0x234   : > { %v3236_v55 = vadd.f32 %v820_v51, %v419_v42  ;;  %v3238_v56 = vadd.f32 %v863_v52, %v427_v43  ;;  %v822_v57 = vpop.f32.mrb[9].mxu0  ;;  %v865_v58 = vpop.f32.mrb[9].mxu1 }
 0x235   : > { %v3241_v60 = vadd.f32 %v822_v57, %v423_v45  ;;  %v3243_v61 = vadd.f32 %v865_v58, %v431_v46  ;;  %v824_v62 = vpop.f32.mrb[10].mxu0  ;;  %v867_v63 = vpop.f32.mrb[10].mxu1 }
 0x236   : > { %964 = vst [vmem:[%s3138_s9 + $0x40] sm:$0xff] %v3236_v55  ;;  %966 = vst [vmem:[%s3138_s9 + $0x50] sm:$0xff] %v3238_v56  ;;  %v3250_v1 = vadd.f32 %v824_v62, %v419_v42  ;;  %v3252_v4 = vadd.f32 %v867_v63, %v427_v43  ;;  %v826_v5 = vpop.f32.mrb[11].mxu0  ;;  %v869_v10 = vpop.f32.mrb[11].mxu1  ;;  %v992_v20 = vmax.f32 %v990_v0, %v3236_v55  ;;  %v1116_v63 = vld [vmem:[%s3994_s5 + $0x40] sm:$0xff]  ;;  %v1117_v0 = vld [vmem:[%s3994_s5 + $0x48] sm:$0xff] }
 0x237   : > { %965 = vst [vmem:[%s3138_s9 + $0x48] sm:$0xff] %v3241_v60  ;;  %967 = vst [vmem:[%s3138_s9 + $0x58] sm:$0xff] %v3243_v61  ;;  %v3259_v13 = vadd.f32 %v826_v5, %v423_v45  ;;  %v3261_v16 = vadd.f32 %v869_v10, %v431_v46  ;;  %v993_v24 = vmax.f32 %v991_v11, %v3241_v60  ;;  %v1148_v5 = vld [vmem:[%s3994_s5 + $0x140] sm:$0xff]  ;;  %v1149_v11 = vld [vmem:[%s3994_s5 + $0x148] sm:$0xff] }
 0x238   : > { %979 = vst [vmem:[%s3138_s9 + $0xb8] sm:$0xff] %v3250_v1  ;;  %981 = vst [vmem:[%s3138_s9 + $0xc8] sm:$0xff] %v3252_v4  ;;  %v1008_v28 = vmax.f32 %v1006_v17, %v3250_v1  ;;  %v994_v7 = vmax.f32 %v992_v20, %v3238_v56  ;;  %v2460_v10 = vpack.c.bf16 %v1117_v0, %v1116_v63  ;;  %v1134_v20 = vld [vmem:[%s3994_s5 + $0xd0] sm:$0xff]  ;;  %v1123_v63 = vld [vmem:[%s3994_s5 + $0x78] sm:$0xff] }
 0x239   : > { %980 = vst [vmem:[%s3138_s9 + $0xc0] sm:$0xff] %v3259_v13  ;;  %982 = vst [vmem:[%s3138_s9 + $0xd0] sm:$0xff] %v3261_v16  ;;  %v1009_v6 = vmax.f32 %v1007_v23, %v3259_v13  ;;  %v995_v54 = vmax.f32 %v993_v24, %v3243_v61  ;;  %v2492_v17 = vpack.c.bf16 %v1149_v11, %v1148_v5  ;;  %v1167_v24 = vld [vmem:[%s3994_s5 + $0x1d8] sm:$0xff]  ;;  %v1154_v0 = vld [vmem:[%s3994_s5 + $0x170] sm:$0xff] }
 0x23a   : > { %v1010_v43 = vmax.f32 %v1008_v28, %v3252_v4  ;;  %2461 = vmatpush3.bf16.msra.mxu0 %v2460_v10  ;;  %v1119_v28 = vld [vmem:[%s3994_s5 + $0x58] sm:$0xff] }
 0x23b   : > { %v906_v29 = vpop.f32.mrb[12].mxu0  ;;  %v949_v32 = vpop.f32.mrb[12].mxu1  ;;  %v1011_v49 = vmax.f32 %v1009_v6, %v3261_v16  ;;  %2493 = vmatpush3.bf16.msra.mxu1 %v2492_v17  ;;  %v1155_v10 = vld [vmem:[%s3994_s5 + $0x178] sm:$0xff]  ;;  %v1188_v17 = vld [vmem:[%s3994_s5 + $0x280] sm:$0xff] }
 0x23c   : > { %v3284_v33 = vadd.f32 %v906_v29, %v435_v21  ;;  %v3286_v37 = vadd.f32 %v949_v32, %v443_v22  ;;  %v908_v38 = vpop.f32.mrb[13].mxu0  ;;  %v2405_v41 = vpop.f32.mrb[13].mxu1  ;;  %v1150_v32 = vld [vmem:[%s3994_s5 + $0x150] sm:$0xff]  ;;  %v2504_v11 = vpack.c.bf16 %v1155_v10, %v1154_v0  ;;  %v1207_v10 = vld [vmem:[%s3994_s5 + $0x318] sm:$0xff] }
 0x23d   : > { %v3289_v12 = vadd.f32 %v908_v38, %v439_v25  ;;  %v910_v34 = vpop.f32.mrb[14].mxu0  ;;  %v952_v42 = vpop.f32.mrb[14].mxu1  ;;  %v1136_v41 = vld [vmem:[%s3994_s5 + $0xe0] sm:$0xff] }
 0x23e   : > { %968 = vst [vmem:[%s3138_s9 + $0x60] sm:$0xff] %v3284_v33  ;;  %v996_v44 = vmax.f32 %v994_v7, %v3284_v33  ;;  %970 = vst [vmem:[%s3138_s9 + $0x70] sm:$0xff] %v3286_v37  ;;  %v911_v45 = vadd.f32 %v910_v34, %v435_v21  ;;  %v953_v46 = vadd.f32 %v952_v42, %v443_v22  ;;  %v912_v47 = vpop.f32.mrb[15].mxu0  ;;  %v2406_v48 = vpop.f32.mrb[15].mxu1  ;;  %v1135_v21 = vld [vmem:[%s3994_s5 + $0xd8] sm:$0xff]  ;;  %v1166_v22 = vld [vmem:[%s3994_s5 + $0x1d0] sm:$0xff] }
 0x23f   : > { %969 = vst [vmem:[%s3138_s9 + $0x68] sm:$0xff] %v3289_v12  ;;  %v913_v50 = vadd.f32 %v912_v47, %v439_v25  ;;  %v997_v51 = vmax.f32 %v995_v54, %v3289_v12  ;;  %v2462_v23 = vpack.c.bf16 %v1135_v21, %v1134_v20  ;;  %v1118_v25 = vld [vmem:[%s3994_s5 + $0x50] sm:$0xff]  ;;  %v2494_v6 = vpack.c.bf16 %v1167_v24, %v1166_v22  ;;  %v1151_v7 = vld [vmem:[%s3994_s5 + $0x158] sm:$0xff]  ;;  %v1137_v54 = vld [vmem:[%s3994_s5 + $0xe8] sm:$0xff] }
 0x240   : > { %983 = vst [vmem:[%s3138_s9 + $0xd8] sm:$0xff] %v911_v45  ;;  %v1012_v52 = vmax.f32 %v1010_v43, %v911_v45  ;;  %985 = vst [vmem:[%s3138_s9 + $0xe8] sm:$0xff] %v953_v46  ;;  %v998_v53 = vmax.f32 %v996_v44, %v3286_v37  ;;  %v2464_v29 = vpack.c.bf16 %v1119_v28, %v1118_v25  ;;  %v1168_v34 = vld [vmem:[%s3994_s5 + $0x1e0] sm:$0xff]  ;;  %v1169_v43 = vld [vmem:[%s3994_s5 + $0x1e8] sm:$0xff] }
 0x241   : > { %984 = vst [vmem:[%s3138_s9 + $0xe0] sm:$0xff] %v913_v50  ;;  %v1013_v57 = vmax.f32 %v1011_v49, %v913_v50  ;;  %2463 = vmatprep.subr.bf16.mxu0 %v2462_v23  ;;  %v2496_v38 = vpack.c.bf16 %v1151_v7, %v1150_v32  ;;  %2495 = vmatprep.subr.bf16.mxu1 %v2494_v6  ;;  %v1120_v44 = vld [vmem:[%s3994_s5 + $0x60] sm:$0xff]  ;;  %v1121_v45 = vld [vmem:[%s3994_s5 + $0x68] sm:$0xff]  ;;  %v1138_v50 = vld [vmem:[%s3994_s5 + $0xf0] sm:$0xff] }
 0x242   : > { %v999_v58 = vmax.f32 %v998_v53, %v997_v51  ;;  %v1014_v59 = vmax.f32 %v1012_v52, %v953_v46  ;;  %2465 = vmatpush3.bf16.msra.mxu0 %v2464_v29  ;;  %v2466_v42 = vpack.c.bf16 %v1137_v54, %v1136_v41  ;;  %v2498_v46 = vpack.c.bf16 %v1169_v43, %v1168_v34  ;;  %v1152_v48 = vld [vmem:[%s3994_s5 + $0x160] sm:$0xff]  ;;  %v1153_v49 = vld [vmem:[%s3994_s5 + $0x168] sm:$0xff]  ;;  %v1139_v52 = vld [vmem:[%s3994_s5 + $0xf8] sm:$0xff] }
 0x243   : > { %2497 = vmatpush3.bf16.msra.mxu1 %v2496_v38  ;;  %v2468_v47 = vpack.c.bf16 %v1121_v45, %v1120_v44  ;;  %v2500_v51 = vpack.c.bf16 %v1153_v49, %v1152_v48  ;;  %v1170_v53 = vld [vmem:[%s3994_s5 + $0x1f0] sm:$0xff]  ;;  %v1189_v20 = vld [vmem:[%s3994_s5 + $0x288] sm:$0xff]  ;;  %v1220_v21 = vld [vmem:[%s3994_s5 + $0x380] sm:$0xff] }
 0x244   : > { %1000 = vmax.xlane.f32.xlu0 %v999_v58  ;;  %v1015_v62 = vmax.f32 %v1014_v59, %v1013_v57  ;;  %2467 = vmatprep.subr.bf16.mxu0 %v2466_v42  ;;  %v1171_v57 = vld [vmem:[%s3994_s5 + $0x1f8] sm:$0xff]  ;;  %v2470_v58 = vpack.c.bf16 %v1139_v52, %v1138_v50  ;;  %v2506_v22 = vpack.c.bf16 %v1189_v20, %v1188_v17  ;;  %v1221_v23 = vld [vmem:[%s3994_s5 + $0x388] sm:$0xff]  ;;  %v1190_v48 = vld [vmem:[%s3994_s5 + $0x290] sm:$0xff] }
 0x245   : > { %2499 = vmatprep.subr.bf16.mxu1 %v2498_v46  ;;  %v2502_v59 = vpack.c.bf16 %v1171_v57, %v1170_v53  ;;  %v2538_v24 = vpack.c.bf16 %v1221_v23, %v1220_v21  ;;  %v1191_v49 = vld [vmem:[%s3994_s5 + $0x298] sm:$0xff]  ;;  %v1222_v52 = vld [vmem:[%s3994_s5 + $0x390] sm:$0xff]  ;;  %v1192_v20 = vld [vmem:[%s3994_s5 + $0x2a0] sm:$0xff] }
 0x246   : > { %1016 = vmax.xlane.f32.xlu1 %v1015_v62  ;;  %2469 = vmatpush3.bf16.msra.mxu0 %v2468_v47  ;;  %v1122_v62 = vld [vmem:[%s3994_s5 + $0x70] sm:$0xff]  ;;  %v1205_v47 = vld [vmem:[%s3994_s5 + $0x308] sm:$0xff]  ;;  %v1223_v53 = vld [vmem:[%s3994_s5 + $0x398] sm:$0xff]  ;;  %v2510_v0 = vpack.c.bf16 %v1191_v49, %v1190_v48 }
 0x247   : > { %2501 = vmatpush3.bf16.msra.mxu1 %v2500_v51  ;;  %v2472_v5 = vpack.c.bf16 %v1123_v63, %v1122_v62  ;;  %2471 = vmatprep.subr.bf16.mxu0 %v2470_v58  ;;  %v1175_v62 = vld [vmem:[%s3994_s5 + $0x218] sm:$0xff]  ;;  %v2542_v17 = vpack.c.bf16 %v1223_v53, %v1222_v52  ;;  %v1193_v21 = vld [vmem:[%s3994_s5 + $0x2a8] sm:$0xff]  ;;  %v1196_v49 = vld [vmem:[%s3994_s5 + $0x2c0] sm:$0xff] }
 0x248   : > { %2503 = vmatprep.subr.bf16.mxu1 %v2502_v59  ;;  %v1174_v59 = vld [vmem:[%s3994_s5 + $0x210] sm:$0xff]  ;;  %v1211_v48 = vld [vmem:[%s3994_s5 + $0x338] sm:$0xff]  ;;  %v1229_v52 = vld [vmem:[%s3994_s5 + $0x3c8] sm:$0xff] }
 0x249   : > { %v2512_v23 = vpack.c.bf16 %v1175_v62, %v1174_v59  ;;  %v1180_v59 = vld [vmem:[%s3994_s5 + $0x240] sm:$0xff]  ;;  %v1181_v62 = vld [vmem:[%s3994_s5 + $0x248] sm:$0xff] }
 0x24a   : > { %2473 = vmatpush3.bf16.msra.mxu0 %v2472_v5  ;;  %v1206_v5 = vld [vmem:[%s3994_s5 + $0x310] sm:$0xff] }
 0x24b   : > { %2505 = vmatpush3.bf16.msra.mxu1 %v2504_v11  ;;  %2507 = vmatprep.subr.bf16.mxu0 %v2506_v22 }
 0x24c   : > { %2539 = vmatprep.subr.bf16.mxu1 %v2538_v24  ;;  %v1224_v24 = vld [vmem:[%s3994_s5 + $0x3a0] sm:$0xff] }
 0x2d1   : > { %v3401_v25 = vpop.xlane.xlu0 %1000 }
 0x2d2   : > { %v1019_v28 = vsub.f32 %v3146_v8, %v3401_v25  ;;  %v1021_v29 = vsub.f32 %v3148_v9, %v3401_v25  ;;  %v1018_v32 = vsub.f32 %v3140_v2, %v3401_v25  ;;  %v1020_v7 = vsub.f32 %v3142_v3, %v3401_v25 }
 0x2d3   : > { %v3405_v6 = vpop.xlane.xlu1 %1016  ;;  %v1023_v3 = vsub.f32 %v3186_v30, %v3401_v25  ;;  %v1173_v30 = vld [vmem:[%s3994_s5 + $0x208] sm:$0xff] }
 0x2d4   : > { %v1050_v38 = vmul.f32 1.442695, %v1019_v28  ;;  %v1034_v41 = vsub.f32 %v3164_v18, %v3405_v6  ;;  %v1054_v54 = vmul.f32 1.442695, %v1021_v29  ;;  %v1036_v34 = vsub.f32 %v3166_v19, %v3405_v6  ;;  %v1225_v28 = vld [vmem:[%s3994_s5 + $0x3a8] sm:$0xff] }
 0x2d5   : > { %v1048_v8 = vmul.f32 1.442695, %v1018_v32  ;;  %v1033_v42 = vsub.f32 %v3156_v14, %v3405_v6  ;;  %v1052_v43 = vmul.f32 1.442695, %v1020_v7  ;;  %v1035_v9 = vsub.f32 %v3158_v15, %v3405_v6  ;;  %v1172_v15 = vld [vmem:[%s3994_s5 + $0x200] sm:$0xff] }
 0x2d6   : > { %2759 = vpow2.f32 %v1050_v38  ;;  %v1080_v2 = vmul.f32 1.442695, %v1034_v41  ;;  %v1084_v44 = vmul.f32 1.442695, %v1036_v34  ;;  %v1025_v18 = vsub.f32 %v3188_v31, %v3401_v25  ;;  %v1204_v31 = vld [vmem:[%s3994_s5 + $0x300] sm:$0xff]  ;;  %v1177_v38 = vld [vmem:[%s3994_s5 + $0x228] sm:$0xff] }
 0x2d7   : > { %2761 = vpow2.f32 %v1054_v54  ;;  %v1078_v19 = vmul.f32 1.442695, %v1033_v42  ;;  %v1082_v45 = vmul.f32 1.442695, %v1035_v9  ;;  %v1058_v14 = vmul.f32 1.442695, %v1023_v3 }
 0x2d8   : > { %2763 = vpow2.f32 %v1048_v8  ;;  %v1062_v46 = vmul.f32 1.442695, %v1025_v18  ;;  %v2508_v51 = vpack.c.bf16 %v1173_v30, %v1172_v15  ;;  %v2540_v58 = vpack.c.bf16 %v1205_v47, %v1204_v31  ;;  %v1176_v7 = vld [vmem:[%s3994_s5 + $0x220] sm:$0xff]  ;;  %v1209_v8 = vld [vmem:[%s3994_s5 + $0x328] sm:$0xff]  ;;  %v1194_v42 = vld [vmem:[%s3994_s5 + $0x2b0] sm:$0xff] }
 0x2d9   : > { %2765 = vpow2.f32 %v1052_v43  ;;  %v2544_v32 = vpack.c.bf16 %v1207_v10, %v1206_v5  ;;  %v1208_v41 = vld [vmem:[%s3994_s5 + $0x320] sm:$0xff]  ;;  %v2514_v34 = vpack.c.bf16 %v1193_v21, %v1192_v20  ;;  %v1195_v43 = vld [vmem:[%s3994_s5 + $0x2b8] sm:$0xff]  ;;  %v1226_v3 = vld [vmem:[%s3994_s5 + $0x3b0] sm:$0xff] }
 0x2da   : > { %2767 = vpow2.f32 %v1080_v2  ;;  %v2546_v2 = vpack.c.bf16 %v1225_v28, %v1224_v24  ;;  %v1178_v15 = vld [vmem:[%s3994_s5 + $0x230] sm:$0xff]  ;;  %v1179_v30 = vld [vmem:[%s3994_s5 + $0x238] sm:$0xff]  ;;  %v1213_v5 = vld [vmem:[%s3994_s5 + $0x348] sm:$0xff] }
 0x2db   : > { %2769 = vpow2.f32 %v1084_v44  ;;  %v1227_v44 = vld [vmem:[%s3994_s5 + $0x3b8] sm:$0xff]  ;;  %v1210_v31 = vld [vmem:[%s3994_s5 + $0x330] sm:$0xff]  ;;  %v2520_v53 = vpack.c.bf16 %v1179_v30, %v1178_v15 }
 0x2dc   : > { %2771 = vpow2.f32 %v1078_v19  ;;  %v2516_v19 = vpack.c.bf16 %v1177_v38, %v1176_v7  ;;  %v2550_v47 = vpack.c.bf16 %v1227_v44, %v1226_v3  ;;  %v1198_v10 = vld [vmem:[%s3994_s5 + $0x2d0] sm:$0xff]  ;;  %v1231_v21 = vld [vmem:[%s3994_s5 + $0x3d8] sm:$0xff]  ;;  %v1039_v3 = vsub.f32 %v3199_v36, %v3405_v6 }
 0x2dd   : > { %2773 = vpow2.f32 %v1082_v45  ;;  %v1230_v20 = vld [vmem:[%s3994_s5 + $0x3d0] sm:$0xff]  ;;  %v1215_v38 = vld [vmem:[%s3994_s5 + $0x358] sm:$0xff]  ;;  %v1027_v36 = vsub.f32 %v3241_v60, %v3401_v25 }
 0x2de   : > { %2775 = vpow2.f32 %v1058_v14  ;;  %v2548_v14 = vpack.c.bf16 %v1209_v8, %v1208_v41  ;;  %v2558_v7 = vpack.c.bf16 %v1231_v21, %v1230_v20  ;;  %v1200_v41 = vld [vmem:[%s3994_s5 + $0x2e0] sm:$0xff]  ;;  %v1202_v15 = vld [vmem:[%s3994_s5 + $0x2f0] sm:$0xff]  ;;  %v1203_v30 = vld [vmem:[%s3994_s5 + $0x2f8] sm:$0xff] }
 0x2df   : > { %2777 = vpow2.f32 %v1062_v46  ;;  %v2518_v46 = vpack.c.bf16 %v1195_v43, %v1194_v42  ;;  %v1233_v42 = vld [vmem:[%s3994_s5 + $0x3e8] sm:$0xff]  ;;  %v1037_v43 = vsub.f32 %v3197_v35, %v3405_v6  ;;  %v1216_v35 = vld [vmem:[%s3994_s5 + $0x360] sm:$0xff]  ;;  %v1234_v60 = vld [vmem:[%s3994_s5 + $0x3f0] sm:$0xff] }
 0x2e0   : > { %v2760_v50 = vpop.eup %2759 }
 0x2e1   : > { %v2762_v57 = vpop.eup %2761  ;;  %1412 = vmatprep.mubr.f32.mxu0 %v2760_v50  ;;  %v1197_v50 = vld [vmem:[%s3994_s5 + $0x2c8] sm:$0xff] }
 0x2e2   : > { %v2764_v63 = vpop.eup %2763  ;;  %1487 = vmatprep.mubr.f32.mxu1 %v2762_v57  ;;  %v2552_v57 = vpack.c.bf16 %v1211_v48, %v1210_v31  ;;  %v1235_v48 = vld [vmem:[%s3994_s5 + $0x3f8] sm:$0xff] }
 0x2e3   : > { %v2766_v11 = vpop.eup %2765  ;;  %1413 = vmatmul.mubr.f32.vlgmr.msra.gmra.mrb[16].mxu0 %v2764_v63  ;;  %v1212_v63 = vld [vmem:[%s3994_s5 + $0x340] sm:$0xff] }
 0x2e4   : > { %v2768_v22 = vpop.eup %2767  ;;  %1488 = vmatmul.mubr.f32.vlgmr.msra.gmra.mrb[16].mxu1 %v2766_v11  ;;  %2509 = vmatpush3.bf16.msra.mxu0 %v2508_v51  ;;  %v1228_v51 = vld [vmem:[%s3994_s5 + $0x3c0] sm:$0xff]  ;;  %v1199_v11 = vld [vmem:[%s3994_s5 + $0x2d8] sm:$0xff]  ;;  %v2556_v24 = vpack.c.bf16 %v1213_v5, %v1212_v63  ;;  %v1253_v5 = vld [vmem:[%s3994_s5 + $0x488] sm:$0xff] }
 0x2e5   : > { %v2770_v29 = vpop.eup %2769  ;;  %2541 = vmatpush3.bf16.msra.mxu1 %v2540_v58  ;;  %1417 = vmatprep.mubr.f32.mxu0 %v2768_v22  ;;  %v2522_v58 = vpack.c.bf16 %v1197_v50, %v1196_v49  ;;  %v1024_v22 = vsub.f32 %v3184_v27, %v3401_v25  ;;  %v2526_v28 = vpack.c.bf16 %v1199_v11, %v1198_v10  ;;  %v1086_v49 = vmul.f32 1.442695, %v1037_v43  ;;  %v1219_v63 = vld [vmem:[%s3994_s5 + $0x378] sm:$0xff]  ;;  %v1284_v11 = vld [vmem:[%s3994_s5 + $0x580] sm:$0xff] }
 0x2e6   : > { %v2772_v54 = vpop.eup %2771  ;;  %1492 = vmatprep.mubr.f32.mxu1 %v2770_v29  ;;  %2511 = vmatprep.subr.bf16.mxu0 %v2510_v0  ;;  %v2554_v0 = vpack.c.bf16 %v1229_v52, %v1228_v51  ;;  %v1183_v29 = vld [vmem:[%s3994_s5 + $0x258] sm:$0xff]  ;;  %v1038_v27 = vsub.f32 %v3205_v39, %v3405_v6  ;;  %v1232_v39 = vld [vmem:[%s3994_s5 + $0x3e0] sm:$0xff]  ;;  %v1090_v51 = vmul.f32 1.442695, %v1039_v3 }
 0x2e7   : > { %v2774_v9 = vpop.eup %2773  ;;  %2543 = vmatprep.subr.bf16.mxu1 %v2542_v17  ;;  %1418 = vmatmul.mubr.f32.gmra.mrb[18].mxu0 %v2772_v54  ;;  %v1022_v17 = vsub.f32 %v3182_v26, %v3401_v25  ;;  %v1182_v26 = vld [vmem:[%s3994_s5 + $0x250] sm:$0xff]  ;;  %v1201_v54 = vld [vmem:[%s3994_s5 + $0x2e8] sm:$0xff]  ;;  %v1239_v43 = vld [vmem:[%s3994_s5 + $0x418] sm:$0xff] }
 0x2e8   : > { %v2776_v18 = vpop.eup %2775  ;;  %1493 = vmatmul.mubr.f32.gmra.mrb[18].mxu1 %v2774_v9  ;;  %2513 = vmatpush3.bf16.msra.mxu0 %v2512_v23  ;;  %v2524_v23 = vpack.c.bf16 %v1181_v62, %v1180_v59  ;;  %v1060_v9 = vmul.f32 1.442695, %v1024_v22  ;;  %v2530_v44 = vpack.c.bf16 %v1201_v54, %v1200_v41  ;;  %v1066_v59 = vmul.f32 1.442695, %v1027_v36 }
 0x2e9   : > { %v2778_v45 = vpop.eup %2777  ;;  %2545 = vmatpush3.bf16.msra.mxu1 %v2544_v32  ;;  %1562 = vmatprep.mubr.f32.mxu0 %v2776_v18  ;;  %v1214_v32 = vld [vmem:[%s3994_s5 + $0x350] sm:$0xff]  ;;  %v1056_v8 = vmul.f32 1.442695, %v1022_v17  ;;  %v1184_v18 = vld [vmem:[%s3994_s5 + $0x260] sm:$0xff]  ;;  %v2566_v62 = vpack.c.bf16 %v1235_v48, %v1234_v60  ;;  %v1285_v17 = vld [vmem:[%s3994_s5 + $0x588] sm:$0xff] }
 0x2ea   : > { %1637 = vmatprep.mubr.f32.mxu1 %v2778_v45  ;;  %2515 = vmatprep.subr.bf16.mxu0 %v2514_v34  ;;  %v1040_v34 = vsub.f32 %v3207_v40, %v3405_v6  ;;  %v2560_v40 = vpack.c.bf16 %v1215_v38, %v1214_v32  ;;  %v1088_v45 = vmul.f32 1.442695, %v1038_v27  ;;  %v1254_v32 = vld [vmem:[%s3994_s5 + $0x490] sm:$0xff]  ;;  %v1255_v27 = vld [vmem:[%s3994_s5 + $0x498] sm:$0xff]  ;;  %v1272_v60 = vld [vmem:[%s3994_s5 + $0x520] sm:$0xff] }
 0x2eb   : > { %2547 = vmatprep.subr.bf16.mxu1 %v2546_v2  ;;  %v2528_v2 = vpack.c.bf16 %v1183_v29, %v1182_v26  ;;  %2779 = vpow2.f32 %v1056_v8  ;;  %v1268_v26 = vld [vmem:[%s3994_s5 + $0x500] sm:$0xff]  ;;  %v1269_v29 = vld [vmem:[%s3994_s5 + $0x508] sm:$0xff]  ;;  %v1287_v38 = vld [vmem:[%s3994_s5 + $0x598] sm:$0xff] }
 0x2ec   : > { %2517 = vmatpush3.bf16.msra.mxu0 %v2516_v19  ;;  %v1185_v19 = vld [vmem:[%s3994_s5 + $0x268] sm:$0xff]  ;;  %v1092_v31 = vmul.f32 1.442695, %v1040_v34  ;;  %2781 = vpow2.f32 %v1060_v9  ;;  %v2604_v8 = vpack.c.bf16 %v1269_v29, %v1268_v26  ;;  %v1270_v9 = vld [vmem:[%s3994_s5 + $0x510] sm:$0xff]  ;;  %v1244_v26 = vld [vmem:[%s3994_s5 + $0x440] sm:$0xff] }
 0x2ed   : > { %2549 = vmatpush3.bf16.msra.mxu1 %v2548_v14  ;;  %2519 = vmatprep.subr.bf16.mxu0 %v2518_v46  ;;  %v2562_v14 = vpack.c.bf16 %v1233_v42, %v1232_v39  ;;  %v1217_v46 = vld [vmem:[%s3994_s5 + $0x368] sm:$0xff]  ;;  %v2532_v50 = vpack.c.bf16 %v1185_v19, %v1184_v18  ;;  %2783 = vpow2.f32 %v1088_v45  ;;  %v2574_v39 = vpack.c.bf16 %v1255_v27, %v1254_v32  ;;  %v1238_v42 = vld [vmem:[%s3994_s5 + $0x410] sm:$0xff]  ;;  %v1276_v32 = vld [vmem:[%s3994_s5 + $0x540] sm:$0xff] }
 0x2ee   : > { %2551 = vmatprep.subr.bf16.mxu1 %v2550_v47  ;;  %v1029_v47 = vsub.f32 %v3243_v61, %v3401_v25  ;;  %v2564_v52 = vpack.c.bf16 %v1217_v46, %v1216_v35  ;;  %v1186_v61 = vld [vmem:[%s3994_s5 + $0x270] sm:$0xff]  ;;  %2785 = vpow2.f32 %v1092_v31  ;;  %v1257_v18 = vld [vmem:[%s3994_s5 + $0x4a8] sm:$0xff]  ;;  %v1288_v35 = vld [vmem:[%s3994_s5 + $0x5a0] sm:$0xff] }
 0x2ef   : > { %2787 = vpow2.f32 %v1086_v49  ;;  %v1289_v45 = vld [vmem:[%s3994_s5 + $0x5a8] sm:$0xff]  ;;  %v1240_v31 = vld [vmem:[%s3994_s5 + $0x420] sm:$0xff] }
 0x2f0   : > { %2521 = vmatpush3.bf16.msra.mxu0 %v2520_v53  ;;  %v2534_v53 = vpack.c.bf16 %v1203_v30, %v1202_v15  ;;  %v1070_v10 = vmul.f32 1.442695, %v1029_v47  ;;  %2789 = vpow2.f32 %v1090_v51  ;;  %v1241_v47 = vld [vmem:[%s3994_s5 + $0x428] sm:$0xff]  ;;  %v2610_v49 = vpack.c.bf16 %v1289_v45, %v1288_v35  ;;  %v1258_v51 = vld [vmem:[%s3994_s5 + $0x4b0] sm:$0xff] }
 0x2f1   : > { %2553 = vmatpush3.bf16.msra.mxu1 %v2552_v57  ;;  %2523 = vmatprep.subr.bf16.mxu0 %v2522_v58  ;;  %v1187_v57 = vld [vmem:[%s3994_s5 + $0x278] sm:$0xff]  ;;  %v1218_v58 = vld [vmem:[%s3994_s5 + $0x370] sm:$0xff]  ;;  %2791 = vpow2.f32 %v1066_v59  ;;  %v1245_v29 = vld [vmem:[%s3994_s5 + $0x448] sm:$0xff]  ;;  %v1044_v35 = vsub.f32 %v3261_v16, %v3405_v6 }
 0x2f2   : > { %2555 = vmatprep.subr.bf16.mxu1 %v2554_v0  ;;  %v1252_v0 = vld [vmem:[%s3994_s5 + $0x480] sm:$0xff]  ;;  %v2536_v20 = vpack.c.bf16 %v1187_v57, %v1186_v61  ;;  %v2568_v21 = vpack.c.bf16 %v1219_v63, %v1218_v58  ;;  %2793 = vpow2.f32 %v1070_v10  ;;  %v1290_v61 = vld [vmem:[%s3994_s5 + $0x5b0] sm:$0xff]  ;;  %v1291_v57 = vld [vmem:[%s3994_s5 + $0x5b8] sm:$0xff]  ;;  %v2580_v58 = vpack.c.bf16 %v1241_v47, %v1240_v31 }
 0x2f3   : > { %v2570_v22 = vpack.c.bf16 %v1253_v5, %v1252_v0  ;;  %v1242_v63 = vld [vmem:[%s3994_s5 + $0x430] sm:$0xff]  ;;  %v1243_v0 = vld [vmem:[%s3994_s5 + $0x438] sm:$0xff]  ;;  %v2614_v10 = vpack.c.bf16 %v1291_v57, %v1290_v61  ;;  %v1248_v47 = vld [vmem:[%s3994_s5 + $0x460] sm:$0xff]  ;;  %v1032_v61 = vsub.f32 %v3286_v37, %v3401_v25 }
 0x2f4   : > { %2525 = vmatpush3.bf16.msra.mxu0 %v2524_v23  ;;  %v2602_v23 = vpack.c.bf16 %v1285_v17, %v1284_v11  ;;  %v1274_v5 = vld [vmem:[%s3994_s5 + $0x530] sm:$0xff]  ;;  %v1275_v11 = vld [vmem:[%s3994_s5 + $0x538] sm:$0xff]  ;;  %v1260_v17 = vld [vmem:[%s3994_s5 + $0x4c0] sm:$0xff] }
 0x2f5   : > { %2557 = vmatpush3.bf16.msra.mxu1 %v2556_v24  ;;  %2527 = vmatprep.subr.bf16.mxu0 %v2526_v28  ;;  %v1236_v24 = vld [vmem:[%s3994_s5 + $0x400] sm:$0xff]  ;;  %v1237_v28 = vld [vmem:[%s3994_s5 + $0x408] sm:$0xff]  ;;  %v2780_v41 = vpop.eup %2779  ;;  %v1299_v57 = vld [vmem:[%s3994_s5 + $0x5f8] sm:$0xff] }
 0x2f6   : > { %2559 = vmatprep.subr.bf16.mxu1 %v2558_v7  ;;  %v1286_v7 = vld [vmem:[%s3994_s5 + $0x590] sm:$0xff]  ;;  %v2572_v54 = vpack.c.bf16 %v1237_v28, %v1236_v24  ;;  %v2782_v34 = vpop.eup %2781  ;;  %v2616_v24 = vpack.c.bf16 %v1275_v11, %v1274_v5  ;;  %v1251_v5 = vld [vmem:[%s3994_s5 + $0x478] sm:$0xff] }
 0x2f7   : > { %v2606_v3 = vpack.c.bf16 %v1287_v38, %v1286_v7  ;;  %v1277_v7 = vld [vmem:[%s3994_s5 + $0x548] sm:$0xff]  ;;  %v1262_v38 = vld [vmem:[%s3994_s5 + $0x4d0] sm:$0xff] }
 0x2f8   : > { %2529 = vmatpush3.bf16.msra.mxu0 %v2528_v2  ;;  %v2784_v2 = vpop.eup %2783  ;;  %v1250_v37 = vld [vmem:[%s3994_s5 + $0x470] sm:$0xff] }
 0x2f9   : > { %2561 = vmatpush3.bf16.msra.mxu1 %v2560_v40  ;;  %2531 = vmatprep.subr.bf16.mxu0 %v2530_v44  ;;  %v1271_v40 = vld [vmem:[%s3994_s5 + $0x518] sm:$0xff]  ;;  %v1256_v44 = vld [vmem:[%s3994_s5 + $0x4a0] sm:$0xff]  ;;  %v2786_v19 = vpop.eup %2785 }
 0x2fa   : > { %2563 = vmatprep.subr.bf16.mxu1 %v2562_v14  ;;  %v2788_v36 = vpop.eup %2787  ;;  %v2576_v14 = vpack.c.bf16 %v1239_v43, %v1238_v42  ;;  %v2608_v15 = vpack.c.bf16 %v1271_v40, %v1270_v9  ;;  %v2578_v30 = vpack.c.bf16 %v1257_v18, %v1256_v44  ;;  %v2588_v42 = vpack.c.bf16 %v1245_v29, %v1244_v26  ;;  %v1279_v44 = vld [vmem:[%s3994_s5 + $0x558] sm:$0xff]  ;;  %v1264_v18 = vld [vmem:[%s3994_s5 + $0x4e0] sm:$0xff] }
 0x2fb   : > { %v2790_v46 = vpop.eup %2789  ;;  %v2620_v43 = vpack.c.bf16 %v1277_v7, %v1276_v32  ;;  %v2600_v26 = vpack.c.bf16 %v1251_v5, %v1250_v37  ;;  %v1300_v7 = vld [vmem:[%s3994_s5 + $0x600] sm:$0xff]  ;;  %v1326_v37 = vld [vmem:[%s3994_s5 + $0x6d0] sm:$0xff]  ;;  %v1327_v5 = vld [vmem:[%s3994_s5 + $0x6d8] sm:$0xff] }
 0x2fc   : > { %2533 = vmatpush3.bf16.msra.mxu0 %v2532_v50  ;;  %v2792_v48 = vpop.eup %2791  ;;  %v1273_v50 = vld [vmem:[%s3994_s5 + $0x528] sm:$0xff] }
 0x2fd   : > { %2565 = vmatpush3.bf16.msra.mxu1 %v2564_v52  ;;  %2535 = vmatprep.subr.bf16.mxu0 %v2534_v53  ;;  %v1259_v52 = vld [vmem:[%s3994_s5 + $0x4b8] sm:$0xff]  ;;  %v2794_v53 = vpop.eup %2793  ;;  %v2612_v59 = vpack.c.bf16 %v1273_v50, %v1272_v60  ;;  %v1249_v60 = vld [vmem:[%s3994_s5 + $0x468] sm:$0xff] }
 0x2fe   : > { %2567 = vmatprep.subr.bf16.mxu1 %v2566_v62  ;;  %v2582_v62 = vpack.c.bf16 %v1259_v52, %v1258_v51  ;;  %v1281_v50 = vld [vmem:[%s3994_s5 + $0x568] sm:$0xff]  ;;  %v1266_v51 = vld [vmem:[%s3994_s5 + $0x4f0] sm:$0xff]  ;;  %v1267_v52 = vld [vmem:[%s3994_s5 + $0x4f8] sm:$0xff] }
 0x300   : > { %2537 = vmatpush3.bf16.msra.mxu0 %v2536_v20  ;;  %v1261_v20 = vld [vmem:[%s3994_s5 + $0x4c8] sm:$0xff] }
 0x301   : > { %2569 = vmatpush3.bf16.msra.mxu1 %v2568_v21  ;;  %2571 = vmatprep.subr.bf16.mxu0 %v2570_v22  ;;  %v1292_v21 = vld [vmem:[%s3994_s5 + $0x5c0] sm:$0xff]  ;;  %v1293_v22 = vld [vmem:[%s3994_s5 + $0x5c8] sm:$0xff]  ;;  %v2586_v28 = vpack.c.bf16 %v1261_v20, %v1260_v17  ;;  %v1283_v20 = vld [vmem:[%s3994_s5 + $0x578] sm:$0xff] }
 0x302   : > { %2603 = vmatprep.subr.bf16.mxu1 %v2602_v23  ;;  %v2584_v23 = vpack.c.bf16 %v1243_v0, %v1242_v63  ;;  %v2618_v27 = vpack.c.bf16 %v1293_v22, %v1292_v21  ;;  %v2598_v0 = vpack.c.bf16 %v1267_v52, %v1266_v51  ;;  %v1316_v21 = vld [vmem:[%s3994_s5 + $0x680] sm:$0xff]  ;;  %v1317_v22 = vld [vmem:[%s3994_s5 + $0x688] sm:$0xff]  ;;  %v1307_v51 = vld [vmem:[%s3994_s5 + $0x638] sm:$0xff] }
 0x303   : > { %1563 = vmatmul.mubr.f32.vlgmr.msra.gmra.mrb[20].mxu0 %v2780_v41  ;;  %v1263_v41 = vld [vmem:[%s3994_s5 + $0x4d8] sm:$0xff]  ;;  %v2634_v32 = vpack.c.bf16 %v1317_v22, %v1316_v21 }
 0x304   : > { %1638 = vmatmul.mubr.f32.vlgmr.msra.gmra.mrb[20].mxu1 %v2782_v34  ;;  %1567 = vmatprep.mubr.f32.mxu0 %v2784_v2  ;;  %v1294_v34 = vld [vmem:[%s3994_s5 + $0x5d0] sm:$0xff]  ;;  %v2590_v9 = vpack.c.bf16 %v1263_v41, %v1262_v38  ;;  %v1247_v2 = vld [vmem:[%s3994_s5 + $0x458] sm:$0xff]  ;;  %v1301_v38 = vld [vmem:[%s3994_s5 + $0x608] sm:$0xff] }
 0x305   : > { %1642 = vmatprep.mubr.f32.mxu1 %v2786_v19  ;;  %2573 = vmatpush3.bf16.msra.mxu0 %v2572_v54  ;;  %v1026_v54 = vsub.f32 %v3236_v55, %v3401_v25  ;;  %v1246_v55 = vld [vmem:[%s3994_s5 + $0x450] sm:$0xff]  ;;  %v1265_v19 = vld [vmem:[%s3994_s5 + $0x4e8] sm:$0xff] }
 0x306   : > { %2605 = vmatpush3.bf16.msra.mxu1 %v2604_v8  ;;  %2575 = vmatprep.subr.bf16.mxu0 %v2574_v39  ;;  %v1295_v8 = vld [vmem:[%s3994_s5 + $0x5d8] sm:$0xff]  ;;  %v1028_v39 = vsub.f32 %v3238_v56, %v3401_v25  ;;  %v1042_v56 = vsub.f32 %v3259_v13, %v3405_v6  ;;  %v1296_v13 = vld [vmem:[%s3994_s5 + $0x5e0] sm:$0xff]  ;;  %v2594_v31 = vpack.c.bf16 %v1265_v19, %v1264_v18  ;;  %v1318_v41 = vld [vmem:[%s3994_s5 + $0x690] sm:$0xff] }
 0x307   : > { %1568 = vmatmul.mubr.f32.gmra.mrb[22].mxu0 %v2788_v36  ;;  %2607 = vmatprep.subr.bf16.mxu1 %v2606_v3  ;;  %v1278_v3 = vld [vmem:[%s3994_s5 + $0x550] sm:$0xff]  ;;  %v2622_v40 = vpack.c.bf16 %v1295_v8, %v1294_v34  ;;  %v1064_v45 = vmul.f32 1.442695, %v1026_v54  ;;  %v1297_v36 = vld [vmem:[%s3994_s5 + $0x5e8] sm:$0xff]  ;;  %v1319_v54 = vld [vmem:[%s3994_s5 + $0x698] sm:$0xff] }
 0x308   : > { %1643 = vmatmul.mubr.f32.gmra.mrb[22].mxu1 %v2790_v46  ;;  %1712 = vmatprep.mubr.f32.mxu0 %v2792_v48  ;;  %v1068_v46 = vmul.f32 1.442695, %v1028_v39  ;;  %v2624_v16 = vpack.c.bf16 %v1279_v44, %v1278_v3  ;;  %v1096_v48 = vmul.f32 1.442695, %v1042_v56  ;;  %v1334_v34 = vld [vmem:[%s3994_s5 + $0x710] sm:$0xff]  ;;  %v1335_v8 = vld [vmem:[%s3994_s5 + $0x718] sm:$0xff] }
 0x309   : > { %2577 = vmatpush3.bf16.msra.mxu0 %v2576_v14  ;;  %1787 = vmatprep.mubr.f32.mxu1 %v2794_v53  ;;  %v1041_v14 = vsub.f32 %v3250_v1, %v3405_v6  ;;  %v1280_v1 = vld [vmem:[%s3994_s5 + $0x560] sm:$0xff]  ;;  %v1100_v53 = vmul.f32 1.442695, %v1044_v35  ;;  %2795 = vpow2.f32 %v1064_v45  ;;  %v2670_v56 = vpack.c.bf16 %v1335_v8, %v1334_v34  ;;  %v1321_v44 = vld [vmem:[%s3994_s5 + $0x6a8] sm:$0xff]  ;;  %v2825_v34 = vld [vmem:[%s3138_s9 + $0xd8] sm:$0xff] }
 0x30a   : > { %2609 = vmatpush3.bf16.msra.mxu1 %v2608_v15  ;;  %2579 = vmatprep.subr.bf16.mxu0 %v2578_v30  ;;  %v2592_v15 = vpack.c.bf16 %v1247_v2, %v1246_v55  ;;  %v1043_v30 = vsub.f32 %v3252_v4, %v3405_v6  ;;  %v1031_v4 = vsub.f32 %v3289_v12, %v3401_v25  ;;  %v1298_v12 = vld [vmem:[%s3994_s5 + $0x5f0] sm:$0xff]  ;;  %2797 = vpow2.f32 %v1068_v46  ;;  %v1303_v2 = vld [vmem:[%s3994_s5 + $0x618] sm:$0xff]  ;;  %v1336_v19 = vld [vmem:[%s3994_s5 + $0x720] sm:$0xff] }
 0x30b   : > { %2611 = vmatprep.subr.bf16.mxu1 %v2610_v49  ;;  %v2626_v49 = vpack.c.bf16 %v1297_v36, %v1296_v13  ;;  %v2628_v63 = vpack.c.bf16 %v1281_v50, %v1280_v1  ;;  %2799 = vpow2.f32 %v1096_v48  ;;  %v2630_v17 = vpack.c.bf16 %v1299_v57, %v1298_v12  ;;  %v1302_v55 = vld [vmem:[%s3994_s5 + $0x610] sm:$0xff]  ;;  %v1337_v35 = vld [vmem:[%s3994_s5 + $0x728] sm:$0xff]  ;;  %v1304_v46 = vld [vmem:[%s3994_s5 + $0x620] sm:$0xff] }
 0x30c   : > { %v1074_v11 = vmul.f32 1.442695, %v1031_v4  ;;  %2801 = vpow2.f32 %v1100_v53  ;;  %v2640_v13 = vpack.c.bf16 %v1303_v2, %v1302_v55  ;;  %v1338_v1 = vld [vmem:[%s3994_s5 + $0x730] sm:$0xff]  ;;  %v1339_v48 = vld [vmem:[%s3994_s5 + $0x738] sm:$0xff]  ;;  %v1324_v53 = vld [vmem:[%s3994_s5 + $0x6c0] sm:$0xff]  ;;  %v1045_v8 = vsub.f32 %v2825_v34, %v3405_v6 }
 0x30d   : > { %2581 = vmatpush3.bf16.msra.mxu0 %v2580_v58  ;;  %v1094_v58 = vmul.f32 1.442695, %v1041_v14  ;;  %v1306_v50 = vld [vmem:[%s3994_s5 + $0x630] sm:$0xff]  ;;  %v2678_v52 = vpack.c.bf16 %v1339_v48, %v1338_v1  ;;  %v1340_v12 = vld [vmem:[%s3994_s5 + $0x740] sm:$0xff]  ;;  %v1341_v57 = vld [vmem:[%s3994_s5 + $0x748] sm:$0xff] }
 0x30e   : > { %2613 = vmatpush3.bf16.msra.mxu1 %v2612_v59  ;;  %2583 = vmatprep.subr.bf16.mxu0 %v2582_v62  ;;  %v2596_v59 = vpack.c.bf16 %v1249_v60, %v1248_v47  ;;  %v1098_v62 = vmul.f32 1.442695, %v1043_v30  ;;  %v1323_v47 = vld [vmem:[%s3994_s5 + $0x6b8] sm:$0xff]  ;;  %v1330_v2 = vld [vmem:[%s3994_s5 + $0x6f0] sm:$0xff] }
 0x30f   : > { %2615 = vmatprep.subr.bf16.mxu1 %v2614_v10  ;;  %v1282_v10 = vld [vmem:[%s3994_s5 + $0x570] sm:$0xff]  ;;  %2803 = vpow2.f32 %v1094_v58  ;;  %v2648_v58 = vpack.c.bf16 %v1307_v51, %v1306_v50 }
 0x310   : > { %2805 = vpow2.f32 %v1098_v62  ;;  %v2632_v29 = vpack.c.bf16 %v1283_v20, %v1282_v10  ;;  %v1308_v62 = vld [vmem:[%s3994_s5 + $0x640] sm:$0xff]  ;;  %v1030_v10 = vsub.f32 %v3284_v33, %v3401_v25  ;;  %v2823_v20 = vld [vmem:[%s3138_s9 + $0xe8] sm:$0xff]  ;;  %v1310_v33 = vld [vmem:[%s3994_s5 + $0x650] sm:$0xff] }
 0x311   : > { %2585 = vmatpush3.bf16.msra.mxu0 %v2584_v23  ;;  %v1076_v23 = vmul.f32 1.442695, %v1032_v61  ;;  %2807 = vpow2.f32 %v1074_v11  ;;  %v1325_v61 = vld [vmem:[%s3994_s5 + $0x6c8] sm:$0xff]  ;;  %v1342_v11 = vld [vmem:[%s3994_s5 + $0x750] sm:$0xff]  ;;  %v1047_v21 = vsub.f32 %v2823_v20, %v3405_v6  ;;  %v1311_v25 = vld [vmem:[%s3994_s5 + $0x658] sm:$0xff] }
 0x312   : > { %2617 = vmatpush3.bf16.msra.mxu1 %v2616_v24  ;;  %2587 = vmatprep.subr.bf16.mxu0 %v2586_v28  ;;  %v1332_v24 = vld [vmem:[%s3994_s5 + $0x700] sm:$0xff]  ;;  %v1333_v28 = vld [vmem:[%s3994_s5 + $0x708] sm:$0xff] }
 0x313   : > { %2619 = vmatprep.subr.bf16.mxu1 %v2618_v27  ;;  %v2666_v27 = vpack.c.bf16 %v1333_v28, %v1332_v24  ;;  %2809 = vpow2.f32 %v1076_v23  ;;  %v2796_v39 = vpop.eup %2795  ;;  %v2654_v23 = vpack.c.bf16 %v1327_v5, %v1326_v37  ;;  %v2824_v24 = vld [vmem:[%s3138_s9 + $0xe0] sm:$0xff] }
 0x314   : > { %v1046_v28 = vsub.f32 %v2824_v24, %v3405_v6  ;;  %v1331_v6 = vld [vmem:[%s3994_s5 + $0x6f8] sm:$0xff] }
 0x315   : > { %2589 = vmatpush3.bf16.msra.mxu0 %v2588_v42  ;;  %v2636_v42 = vpack.c.bf16 %v1301_v38, %v1300_v7  ;;  %v1344_v7 = vld [vmem:[%s3994_s5 + $0x760] sm:$0xff]  ;;  %v1345_v38 = vld [vmem:[%s3994_s5 + $0x768] sm:$0xff] }
 0x316   : > { %2621 = vmatpush3.bf16.msra.mxu1 %v2620_v43  ;;  %2591 = vmatprep.subr.bf16.mxu0 %v2590_v9  ;;  %v2798_v43 = vpop.eup %2797  ;;  %v2638_v9 = vpack.c.bf16 %v1319_v54, %v1318_v41  ;;  %v1106_v41 = vmul.f32 1.442695, %v1047_v21  ;;  %v2656_v54 = vpack.c.bf16 %v1311_v25, %v1310_v33  ;;  %v2690_v55 = vpack.c.bf16 %v1345_v38, %v1344_v7 }
 0x317   : > { %2623 = vmatprep.subr.bf16.mxu1 %v2622_v40  ;;  %v2800_v3 = vpop.eup %2799  ;;  %v1320_v40 = vld [vmem:[%s3994_s5 + $0x6a0] sm:$0xff] }
 0x318   : > { %v2802_v18 = vpop.eup %2801  ;;  %v2642_v14 = vpack.c.bf16 %v1321_v44, %v1320_v40  ;;  %v1102_v44 = vmul.f32 1.442695, %v1045_v8 }
 0x319   : > { %2593 = vmatpush3.bf16.msra.mxu0 %v2592_v15  ;;  %v2804_v45 = vpop.eup %2803  ;;  %v1305_v15 = vld [vmem:[%s3994_s5 + $0x628] sm:$0xff] }
 0x31a   : > { %2625 = vmatpush3.bf16.msra.mxu1 %v2624_v16  ;;  %2595 = vmatprep.subr.bf16.mxu0 %v2594_v31  ;;  %v2806_v36 = vpop.eup %2805  ;;  %v2674_v16 = vpack.c.bf16 %v1337_v35, %v1336_v19  ;;  %v1322_v31 = vld [vmem:[%s3994_s5 + $0x6b0] sm:$0xff]  ;;  %v2644_v4 = vpack.c.bf16 %v1305_v15, %v1304_v46  ;;  %v1315_v35 = vld [vmem:[%s3994_s5 + $0x678] sm:$0xff] }
 0x31b   : > { %2627 = vmatprep.subr.bf16.mxu1 %v2626_v49  ;;  %v2808_v30 = vpop.eup %2807  ;;  %v2646_v49 = vpack.c.bf16 %v1323_v47, %v1322_v31  ;;  %v1314_v19 = vld [vmem:[%s3994_s5 + $0x670] sm:$0xff] }
 0x31d   : > { %2597 = vmatpush3.bf16.msra.mxu0 %v2596_v59  ;;  %v2810_v60 = vpop.eup %2809  ;;  %v2650_v59 = vpack.c.bf16 %v1325_v61, %v1324_v53 }
 0x31e   : > { %2629 = vmatpush3.bf16.msra.mxu1 %v2628_v63  ;;  %2599 = vmatprep.subr.bf16.mxu0 %v2598_v0  ;;  %v1309_v63 = vld [vmem:[%s3994_s5 + $0x648] sm:$0xff]  ;;  %v2682_v0 = vpack.c.bf16 %v1341_v57, %v1340_v12 }
 0x31f   : > { %2631 = vmatprep.subr.bf16.mxu1 %v2630_v17  ;;  %v1343_v17 = vld [vmem:[%s3994_s5 + $0x758] sm:$0xff]  ;;  %v2652_v22 = vpack.c.bf16 %v1309_v63, %v1308_v62 }
 0x321   : > { %2601 = vmatpush3.bf16.msra.mxu0 %v2600_v26  ;;  %v2686_v26 = vpack.c.bf16 %v1343_v17, %v1342_v11 }
 0x322   : > { %2633 = vmatpush3.bf16.msra.mxu1 %v2632_v29  ;;  %2635 = vmatprep.subr.bf16.mxu0 %v2634_v32  ;;  %v1328_v29 = vld [vmem:[%s3994_s5 + $0x6e0] sm:$0xff]  ;;  %v1329_v32 = vld [vmem:[%s3994_s5 + $0x6e8] sm:$0xff] }
 0x323   : > { %2667 = vmatprep.subr.bf16.mxu1 %v2666_v27 }
 0x324   : > { %1713 = vmatmul.mubr.f32.vlgmr.msra.gmra.mrb[24].mxu0 %v2796_v39  ;;  %v2658_v39 = vpack.c.bf16 %v1329_v32, %v1328_v29 }
 0x325   : > { %1788 = vmatmul.mubr.f32.vlgmr.msra.gmra.mrb[24].mxu1 %v2798_v43  ;;  %1717 = vmatprep.mubr.f32.mxu0 %v2800_v3  ;;  %v1313_v43 = vld [vmem:[%s3994_s5 + $0x668] sm:$0xff]  ;;  %v1346_v3 = vld [vmem:[%s3994_s5 + $0x770] sm:$0xff] }
 0x326   : > { %1792 = vmatprep.mubr.f32.mxu1 %v2802_v18  ;;  %2637 = vmatpush3.bf16.msra.mxu0 %v2636_v42  ;;  %v1312_v42 = vld [vmem:[%s3994_s5 + $0x660] sm:$0xff]  ;;  %v2662_v18 = vpack.c.bf16 %v1331_v6, %v1330_v2 }
 0x327   : > { %2669 = vmatpush3.bf16.msra.mxu1 %v2666_v27  ;;  %2639 = vmatprep.subr.bf16.mxu0 %v2638_v9  ;;  %v1072_v27 = vmul.f32 1.442695, %v1030_v10  ;;  %v1104_v9 = vmul.f32 1.442695, %v1046_v28  ;;  %v2660_v40 = vpack.c.bf16 %v1313_v43, %v1312_v42 }
 0x328   : > { %1718 = vmatmul.mubr.f32.gmra.mrb[26].mxu0 %v2804_v45  ;;  %2671 = vmatprep.subr.bf16.mxu1 %v2670_v56 }
 0x329   : > { %1793 = vmatmul.mubr.f32.gmra.mrb[26].mxu1 %v2806_v36  ;;  %1862 = vmatprep.mubr.f32.mxu0 %v2808_v30  ;;  %2811 = vpow2.f32 %v1072_v27 }
 0x32a   : > { %2641 = vmatpush3.bf16.msra.mxu0 %v2640_v13  ;;  %2439 = vmatprep.mubr.f32.mxu1 %v2810_v60  ;;  %2813 = vpow2.f32 %v1106_v41  ;;  %v2664_v13 = vpack.c.bf16 %v1315_v35, %v1314_v19 }
 0x32b   : > { %2673 = vmatpush3.bf16.msra.mxu1 %v2670_v56  ;;  %2643 = vmatprep.subr.bf16.mxu0 %v2642_v14  ;;  %v1347_v56 = vld [vmem:[%s3994_s5 + $0x778] sm:$0xff]  ;;  %2815 = vpow2.f32 %v1104_v9 }
 0x32c   : > { %2675 = vmatprep.subr.bf16.mxu1 %v2674_v16  ;;  %v2694_v45 = vpack.c.bf16 %v1347_v56, %v1346_v3  ;;  %2817 = vpow2.f32 %v1102_v44 }
 0x32e   : > { %2645 = vmatpush3.bf16.msra.mxu0 %v2644_v4 }
 0x32f   : > { %2677 = vmatpush3.bf16.msra.mxu1 %v2674_v16  ;;  %2647 = vmatprep.subr.bf16.mxu0 %v2646_v49 }
 0x330   : > { %2679 = vmatprep.subr.bf16.mxu1 %v2678_v52 }
 0x332   : > { %2649 = vmatpush3.bf16.msra.mxu0 %v2648_v58 }
 0x333   : > { %2681 = vmatpush3.bf16.msra.mxu1 %v2678_v52  ;;  %2651 = vmatprep.subr.bf16.mxu0 %v2650_v59  ;;  %v2812_v36 = vpop.eup %2811 }
 0x334   : > { %2683 = vmatprep.subr.bf16.mxu1 %v2682_v0  ;;  %v2814_v14 = vpop.eup %2813 }
 0x335   : > { %v2816_v46 = vpop.eup %2815 }
 0x336   : > { %2653 = vmatpush3.bf16.msra.mxu0 %v2652_v22  ;;  %v2818_v15 = vpop.eup %2817 }
 0x337   : > { %2685 = vmatpush3.bf16.msra.mxu1 %v2682_v0  ;;  %2655 = vmatprep.subr.bf16.mxu0 %v2654_v23 }
 0x338   : > { %2687 = vmatprep.subr.bf16.mxu1 %v2686_v26 }
 0x33a   : > { %2657 = vmatpush3.bf16.msra.mxu0 %v2656_v54 }
 0x33b   : > { %2689 = vmatpush3.bf16.msra.mxu1 %v2686_v26  ;;  %2659 = vmatprep.subr.bf16.mxu0 %v2658_v39 }
 0x33c   : > { %2691 = vmatprep.subr.bf16.mxu1 %v2690_v55 }
 0x33e   : > { %2661 = vmatpush3.bf16.msra.mxu0 %v2660_v40 }
 0x33f   : > { %2693 = vmatpush3.bf16.msra.mxu1 %v2690_v55  ;;  %2663 = vmatprep.subr.bf16.mxu0 %v2662_v18 }
 0x340   : > { %2695 = vmatprep.subr.bf16.mxu1 %v2694_v45 }
 0x342   : > { %2665 = vmatpush3.bf16.msra.mxu0 %v2664_v13 }
 0x343   : > { %2697 = vmatpush3.bf16.msra.mxu1 %v2694_v45 }
 0x345   : > { %1863 = vmatmul.mubr.f32.vlgmr.msra.gmra.mrb[28].mxu0 %v2812_v36 }
 0x346   : > { %2440 = vmatmul.mubr.f32.vlgmr.msra.gmra.mrb[28].mxu1 %v2814_v14  ;;  %1867 = vmatprep.mubr.f32.mxu0 %v2816_v46 }
 0x349   : > { %1868 = vmatmul.mubr.f32.gmra.mrb[30].mxu0 %v2818_v15 }
 0x3b6   : > { %v2147_v30 = vpop.f32.mrb[16].mxu0 }
 0x3b7   : > { %v2185_v16 = vpop.f32.mrb[16].mxu1  ;;  %v2148_v31 = vpop.f32.mrb[17].mxu0 }
 0x3b8   : > { %v2149_v47 = vadd.f32 %v2148_v31, %v2147_v30  ;;  %v2186_v60 = vpop.f32.mrb[17].mxu1 }
 0x3b9   : > { %v2187_v1 = vadd.f32 %v2186_v60, %v2185_v16 }
 0x3ba   : > { %v2150_v48 = vpop.f32.mrb[18].mxu0 }
 0x3bb   : > { %v1490_v4 = vadd.f32 %v2187_v1, %v2149_v47  ;;  %v2188_v49 = vpop.f32.mrb[18].mxu1  ;;  %v2151_v50 = vpop.f32.mrb[19].mxu0 }
 0x3bc   : > { %v2152_v51 = vadd.f32 %v2151_v50, %v2150_v48  ;;  %v2189_v52 = vpop.f32.mrb[19].mxu1 }
 0x3bd   : > { %v2190_v53 = vadd.f32 %v2189_v52, %v2188_v49 }
 0x3bf   : > { %v1495_v61 = vadd.f32 %v2190_v53, %v2152_v51 }
 0x3d6   : > { %v2223_v12 = vpop.f32.mrb[20].mxu0 }
 0x3d7   : > { %v2261_v57 = vpop.f32.mrb[20].mxu1  ;;  %v2224_v58 = vpop.f32.mrb[21].mxu0 }
 0x3d8   : > { %v2225_v59 = vadd.f32 %v2224_v58, %v2223_v12  ;;  %v2262_v62 = vpop.f32.mrb[21].mxu1 }
 0x3d9   : > { %v2263_v63 = vadd.f32 %v2262_v62, %v2261_v57 }
 0x3da   : > { %v1565_v0 = vadd.f32 %v2225_v59, %v1490_v4  ;;  %v2226_v37 = vpop.f32.mrb[22].mxu0 }
 0x3db   : > { %v2264_v5 = vpop.f32.mrb[22].mxu1  ;;  %v2227_v10 = vpop.f32.mrb[23].mxu0 }
 0x3dc   : > { %v1640_v11 = vadd.f32 %v2263_v63, %v1565_v0  ;;  %v2228_v17 = vadd.f32 %v2227_v10, %v2226_v37  ;;  %v2265_v20 = vpop.f32.mrb[23].mxu1 }
 0x3dd   : > { %v2266_v21 = vadd.f32 %v2265_v20, %v2264_v5 }
 0x3de   : > { %v1570_v22 = vadd.f32 %v2228_v17, %v1495_v61 }
 0x3e0   : > { %v1645_v23 = vadd.f32 %v2266_v21, %v1570_v22 }
 0x3f7   : > { %v2299_v33 = vpop.f32.mrb[24].mxu0 }
 0x3f8   : > { %v2337_v25 = vpop.f32.mrb[24].mxu1  ;;  %v2300_v24 = vpop.f32.mrb[25].mxu0 }
 0x3f9   : > { %v2301_v28 = vadd.f32 %v2300_v24, %v2299_v33  ;;  %v2338_v26 = vpop.f32.mrb[25].mxu1 }
 0x3fa   : > { %v2339_v29 = vadd.f32 %v2338_v26, %v2337_v25 }
 0x3fb   : > { %v1715_v32 = vadd.f32 %v2301_v28, %v1640_v11  ;;  %v2302_v27 = vpop.f32.mrb[26].mxu0 }
 0x3fc   : > { %v2340_v7 = vpop.f32.mrb[26].mxu1  ;;  %v2303_v38 = vpop.f32.mrb[27].mxu0 }
 0x3fd   : > { %v1790_v41 = vadd.f32 %v2339_v29, %v1715_v32  ;;  %v2304_v54 = vadd.f32 %v2303_v38, %v2302_v27  ;;  %v2341_v34 = vpop.f32.mrb[27].mxu1 }
 0x3fe   : > { %v2342_v8 = vadd.f32 %v2341_v34, %v2340_v7 }
 0x3ff   : > { %v1720_v39 = vadd.f32 %v2304_v54, %v1645_v23 }
 0x401   : > { %v1795_v42 = vadd.f32 %v2342_v8, %v1720_v39 }
 0x418   : > { %v2375_v43 = vpop.f32.mrb[28].mxu0 }
 0x419   : > { %v2441_v9 = vpop.f32.mrb[28].mxu1  ;;  %v2376_v55 = vpop.f32.mrb[29].mxu0 }
 0x41a   : > { %v2377_v2 = vadd.f32 %v2376_v55, %v2375_v43  ;;  %v1939_v6 = vpop.f32.mrb[29].mxu1 }
 0x41c   : > { %v1865_v3 = vadd.f32 %v2377_v2, %v1790_v41  ;;  %v2378_v56 = vpop.f32.mrb[30].mxu0 }
 0x41d   : > { %v2379_v40 = vpop.f32.mrb[31].mxu0 }
 0x41e   : > { %v1940_v44 = vadd.f32 %v1939_v6, %v1865_v3  ;;  %v2380_v18 = vadd.f32 %v2379_v40, %v2378_v56 }
 0x420   : > { %v1870_v19 = vadd.f32 %v2380_v18, %v1795_v42  ;;  %1952 = vrot.lane.b32.xlu0 %v1940_v44, %s2837_s20  ;;  %v1948_v36 = vmul.f32 100.0, %v1940_v44 }
 0x422   : > { %v1945_v35 = vadd.f32 %v2441_v9, %v1870_v19 }
 0x424   : > { %1954 = vrot.lane.b32.xlu1 %v1945_v35, %s2837_s20  ;;  %v1949_v15 = vmul.f32 100.0, %v1945_v35 }
 0x492   : > { %v1953_v45 = vpop.permute.xlu0 %1952 }
 0x493   : > { %2819 = vrcp.f32 %v1953_v45 }
 0x496   : > { %v1955_v13 = vpop.permute.xlu1 %1954 }
 0x497   : > { %2821 = vrcp.f32 %v1955_v13 }
 0x49d   : > { %v2820_v14 = vpop.eup %2819 }
 0x49e   : > { %v1959_v46 = vmul.f32 %v2820_v14, %v1948_v36 }
 0x4a0   : > { %v1963_v30 = vsel %vm1962_vm2, %v1959_v46, 0.0 }
 0x4a1   : > { %v2822_v16 = vpop.eup %2821  ;;  %1965 = vst [vmem:[%s296_s23] sm:$0xff] %v1963_v30 }
 0x4a2   : > { %v1961_v31 = vmul.f32 %v2822_v16, %v1949_v15 }
 0x4a4   : > { %v1964_v47 = vsel %vm1962_vm2, %v1961_v31, 0.0 }
 0x4a5   : > { %1966 = vst [vmem:[%s296_s23 + $0x8] sm:$0xff] %v1964_v47 }
 0x4a6 PF: > { %s18_s24 = sadd.s32 1, %s2832_s24  }
 0x4a7   : > { %p15_p4 = scmp.ge.s32.totalorder %s18_s24, 4  }
 0x4a9   :  { %17 = sbr.rel (!%p15_p4) target bundleno = 1 (0x1), region = 86 }

</bundles_post_ra>
